<compile_context>
chip_gen: v6e
topology: v6e:2x2x1
jax: 0.10.0
libtpu: 0.0.40
codegen_flags: <defaults>
</compile_context>

<pallas_src>
import functools

import jax
import jax.numpy as jnp
from jax.experimental import pallas as pl
from jax.experimental.pallas import tpu as pltpu

_EPS = 1e-5  # PyTorch nn.LayerNorm default
_VMEM_LIMIT = 48 * 1024 * 1024  # above scoped defaults, below v7x physical 64 MiB (headroom)


def _layer_norm(x, gamma, beta):
    mu = jnp.mean(x, axis=-1, keepdims=True)
    var = jnp.mean(jnp.square(x - mu), axis=-1, keepdims=True)  # biased, like PyTorch
    return (x - mu) * jax.lax.rsqrt(var + _EPS) * gamma + beta


# --------------------------------------------------------------------------- kernel A
def _qkv_projection_kernel(num_heads, x_ref, ln1_g_ref, ln1_b_ref, w_qkv_ref,
                           q_ref, k_ref, v_ref):
    """One (seq_tile, C) slab: LN1 + fused QKV matmul, written head-major (H, tile, D)."""
    s, c = x_ref.shape
    d = c // num_heads
    xn = _layer_norm(x_ref[...], ln1_g_ref[0], ln1_b_ref[0]).astype(jnp.bfloat16)
    # Single fused matmul (qkv_bias=False); Q columns are pre-scaled by 1/sqrt(D) host-side.
    qkv = jnp.dot(xn, w_qkv_ref[...],
                  preferred_element_type=jnp.float32).astype(jnp.bfloat16)  # (s, 3C)
    q = qkv[:, :c].reshape(s, num_heads, d)
    k = qkv[:, c:2 * c].reshape(s, num_heads, d)
    v = qkv[:, 2 * c:].reshape(s, num_heads, d)
    # Head-major relayout happens ONCE here (amortized over all query tiles downstream).
    q_ref[...] = jnp.swapaxes(q, 0, 1)
    k_ref[...] = jnp.swapaxes(k, 0, 1)
    v_ref[...] = jnp.swapaxes(v, 0, 1)


# --------------------------------------------------------------------------- kernel B
def _attention_mlp_kernel(x_ref, q_ref, k_ref, v_ref,
                          w_proj_ref, b_proj_ref,
                          ln2_g_ref, ln2_b_ref,
                          w_fc1_ref, b_fc1_ref,
                          w_fc2_ref, b_fc2_ref,
                          o_ref):
    """One (q_tile, C) slab: attention vs full-sequence K/V + proj + LN2 + MLP + residuals."""
    f32 = jnp.float32
    bf16 = jnp.bfloat16

    qh = q_ref[...]   # (H, TQ, D) bf16, already scaled by 1/sqrt(D)
    kh = k_ref[...]   # (H, N,  D) bf16 head-major (no per-tile transpose needed)
    vh = v_ref[...]   # (H, N,  D) bf16

    # scores[h, q, k] = sum_d qh[h,q,d] * kh[h,k,d]   (batched over heads, f32 acc)
    scores = jax.lax.dot_general(qh, kh, (((2,), (2,)), ((0,), (0,))),
                                 preferred_element_type=f32)            # (H, TQ, N)
    scores = scores - jnp.max(scores, axis=-1, keepdims=True)
    p = jnp.exp(scores)                                                 # f32 (v5e-safe)
    p = p * pl.reciprocal(jnp.sum(p, axis=-1, keepdims=True), approx=True)

    # ctx[h, q, d] = sum_k p[h,q,k] * vh[h,k,d]
    ctx = jax.lax.dot_general(p.astype(bf16), vh, (((2,), (1,)), ((0,), (0,))),
                              preferred_element_type=f32)               # (H, TQ, D)

    # Head-merge folded into the output projection: per-head (TQ,D)@(D,C) batched matmul
    # against w_proj reshaped to (H, D, C), then a cheap VPU sum over heads.
    proj_h = jax.lax.dot_general(ctx.astype(bf16), w_proj_ref[...],
                                 (((2,), (1,)), ((0,), (0,))),
                                 preferred_element_type=f32)            # (H, TQ, C)
    attended = jnp.sum(proj_h, axis=0) + b_proj_ref[0]

    post_attn = x_ref[...] + attended          # residual 1 (dropout/drop_path identities)

    # norm2 + MLP (fc1 -> exact-erf GELU -> fc2) + residual 2
    x2 = _layer_norm(post_attn, ln2_g_ref[0], ln2_b_ref[0]).astype(bf16)
    hdn = jnp.dot(x2, w_fc1_ref[...], preferred_element_type=f32) + b_fc1_ref[0]
    hdn = jax.nn.gelu(hdn, approximate=False)   # exact erf == PyTorch nn.GELU default
    mlp = jnp.dot(hdn.astype(bf16), w_fc2_ref[...],
                  preferred_element_type=f32) + b_fc2_ref[0]

    o_ref[...] = (post_attn + mlp).astype(o_ref.dtype)


# --------------------------------------------------------------------------- wrappers
def _rep_spec(shape):
    """Replicated (grid-constant) parameter block."""
    return pl.BlockSpec(shape, lambda b, i: (0,) * len(shape))


def _qkv_call(x, p, num_heads, seq_tile):
    B, N, C = x.shape
    d = C // num_heads
    return pl.pallas_call(
        functools.partial(_qkv_projection_kernel, num_heads),
        out_shape=(jax.ShapeDtypeStruct((B, num_heads, N, d), jnp.bfloat16),
                   jax.ShapeDtypeStruct((B, num_heads, N, d), jnp.bfloat16),
                   jax.ShapeDtypeStruct((B, num_heads, N, d), jnp.bfloat16)),
        grid_spec=pltpu.PrefetchScalarGridSpec(
            num_scalar_prefetch=0,
            grid=(B, N // seq_tile),
            in_specs=[
                pl.BlockSpec((None, seq_tile, C), lambda b, si: (b, si, 0)),  # x tile
                _rep_spec((1, C)), _rep_spec((1, C)),                         # ln1 g, b
                _rep_spec((C, 3 * C)),                                        # fused W_qkv
            ],
            out_specs=[
                pl.BlockSpec((None, num_heads, seq_tile, d), lambda b, si: (b, 0, si, 0)),
                pl.BlockSpec((None, num_heads, seq_tile, d), lambda b, si: (b, 0, si, 0)),
                pl.BlockSpec((None, num_heads, seq_tile, d), lambda b, si: (b, 0, si, 0)),
            ],
        ),
        compiler_params=pltpu.CompilerParams(
            dimension_semantics=("parallel", "parallel"),
            vmem_limit_bytes=_VMEM_LIMIT,
        ),
    )(x, p["ln1_g"], p["ln1_b"], p["w_qkv"])


def _attn_mlp_call(x, q, k, v, p, num_heads, q_tile):
    B, N, C = x.shape
    d = C // num_heads
    hidden = p["w_fc1"].shape[1]
    in_specs = [
        pl.BlockSpec((None, q_tile, C), lambda b, qi: (b, qi, 0)),                 # x (residual)
        pl.BlockSpec((None, num_heads, q_tile, d), lambda b, qi: (b, 0, qi, 0)),   # Q tile
        pl.BlockSpec((None, num_heads, N, d), lambda b, qi: (b, 0, 0, 0)),         # K (per-batch)
        pl.BlockSpec((None, num_heads, N, d), lambda b, qi: (b, 0, 0, 0)),         # V (per-batch)
        _rep_spec((num_heads, d, C)), _rep_spec((1, C)),                           # proj W, b
        _rep_spec((1, C)), _rep_spec((1, C)),                                      # ln2 g, b
        _rep_spec((C, hidden)), _rep_spec((1, hidden)),                            # fc1 W, b
        _rep_spec((hidden, C)), _rep_spec((1, C)),                                 # fc2 W, b
    ]
    out_specs = pl.BlockSpec((None, q_tile, C), lambda b, qi: (b, qi, 0))
    return pl.pallas_call(
        _attention_mlp_kernel,
        out_shape=jax.ShapeDtypeStruct((B, N, C), x.dtype),
        grid_spec=pltpu.PrefetchScalarGridSpec(
            num_scalar_prefetch=0,
            grid=(B, N // q_tile),
            in_specs=in_specs,
            out_specs=out_specs,
        ),
        compiler_params=pltpu.CompilerParams(
            dimension_semantics=("parallel", "parallel"),
            vmem_limit_bytes=_VMEM_LIMIT,
        ),
    )(x, q, k, v,
      p["w_proj_r"], p["b_proj"],
      p["ln2_g"], p["ln2_b"],
      p["w_fc1"], p["b_fc1"],
      p["w_fc2"], p["b_fc2"])


def prepare_params(params, num_heads):
    """One-time host-side prep: bf16 weight casts, fused/pre-scaled W_qkv, (H,D,C) proj."""
    C = params["w_q"].shape[0]
    assert C % num_heads == 0, "embed_dim must be divisible by num_heads"
    d = C // num_heads
    bf16 = jnp.bfloat16
    w_q_scaled = params["w_q"] * (d ** -0.5)                    # fold 1/sqrt(head_dim)
    w_qkv = jnp.concatenate([w_q_scaled, params["w_k"], params["w_v"]], axis=1).astype(bf16)
    w_proj_r = params["w_proj"].reshape(num_heads, d, C).astype(bf16)
    return {
        "ln1_g": params["ln1_g"], "ln1_b": params["ln1_b"],
        "ln2_g": params["ln2_g"], "ln2_b": params["ln2_b"],
        "w_qkv": w_qkv,
        "w_proj_r": w_proj_r, "b_proj": params["b_proj"],
        "w_fc1": params["w_fc1"].astype(bf16), "b_fc1": params["b_fc1"],
        "w_fc2": params["w_fc2"].astype(bf16), "b_fc2": params["b_fc2"],
    }


def transformer_encoder_block(image_patches, query_patch_positions, key_patch_positions,
                              prepared_params, num_heads, q_tile=None, seq_tile=None):
    # rope=None in this module configuration -> positions accepted but unused,
    # exactly as in the reference forward.
    del query_patch_positions, key_patch_positions
    B, N, C = image_patches.shape
    assert C % num_heads == 0, "embed_dim must be divisible by num_heads"
    if q_tile is None:
        q_tile = min(128, N)
    if seq_tile is None:
        seq_tile = min(128, N)
    assert N % q_tile == 0 and q_tile % 8 == 0, "N must be divisible by the query tile"
    assert N % seq_tile == 0 and seq_tile % 8 == 0, "N must be divisible by the seq tile"

    q, k, v = _qkv_call(image_patches, prepared_params, num_heads, seq_tile)
    return _attn_mlp_call(image_patches, q, k, v, prepared_params, num_heads, q_tile)


def init_params(key, embed_dim, mlp_ratio=4.0):
    hidden = int(embed_dim * mlp_ratio)
    ks = jax.random.split(key, 8)
    std = 0.02
    f32 = jnp.float32
    return {
        # LayerNorm defaults: gamma=1, beta=0
        "ln1_g": jnp.ones((1, embed_dim), f32),
        "ln1_b": jnp.zeros((1, embed_dim), f32),
        "ln2_g": jnp.ones((1, embed_dim), f32),
        "ln2_b": jnp.zeros((1, embed_dim), f32),
        # Fused PyTorch qkv weight maps to these as its [q | k | v] column blocks
        # after transposition to (in, out).
        "w_q": std * jax.random.normal(ks[0], (embed_dim, embed_dim), f32),
        "w_k": std * jax.random.normal(ks[1], (embed_dim, embed_dim), f32),
        "w_v": std * jax.random.normal(ks[2], (embed_dim, embed_dim), f32),
        "w_proj": std * jax.random.normal(ks[3], (embed_dim, embed_dim), f32),
        "b_proj": std * jax.random.normal(ks[4], (1, embed_dim), f32),
        "w_fc1": std * jax.random.normal(ks[5], (embed_dim, hidden), f32),
        "b_fc1": std * jax.random.normal(ks[6], (1, hidden), f32),
        "w_fc2": std * jax.random.normal(ks[7], (hidden, embed_dim), f32),
        "b_fc2": jnp.zeros((1, embed_dim), f32),
    }


if __name__ == "__main__":
    # Small but lane-aligned demo shapes: C and mlp-hidden multiples of 128, head_dim=128,
    # N a multiple of the 128-row tiles, B=2 parallel grid steps.
    B, N, C = 2, 128, 256
    num_heads = 2            # head_dim = 128
    mlp_ratio = 4.0          # mlp hidden = 1024

    root = jax.random.PRNGKey(0)
    k_x, k_p = jax.random.split(root)
    image_patches = jax.random.normal(k_x, (B, N, C), jnp.float32)
    # Patch (row, col) positions -- unused because rope=None in this configuration.
    patch_positions = jnp.tile(jnp.arange(N, dtype=jnp.int32)[None, :, None], (B, 1, 2))

    params = init_params(k_p, C, mlp_ratio)
    prepared = prepare_params(params, num_heads)

    out = transformer_encoder_block(image_patches, patch_positions, patch_positions,
                                    prepared, num_heads)
    out = jax.block_until_ready(out)
    assert out.shape == (B, N, C) and out.dtype == jnp.float32
    assert bool(jnp.all(jnp.isfinite(out)))
    print("KERNEL_OK")
</pallas_src>

<mosaic_0001>
module attributes {stable_mosaic.version = 11 : i64} {
  func.func @_qkv_projection_kernel(%arg0: i32, %arg1: i32, %arg2: memref<1x128x256xf32, #tpu.memory_space<vmem>>, %arg3: memref<1x256xf32, #tpu.memory_space<vmem>>, %arg4: memref<1x256xf32, #tpu.memory_space<vmem>>, %arg5: memref<256x768xbf16, #tpu.memory_space<vmem>>, %arg6: memref<1x2x128x128xbf16, #tpu.memory_space<vmem>>, %arg7: memref<1x2x128x128xbf16, #tpu.memory_space<vmem>>, %arg8: memref<1x2x128x128xbf16, #tpu.memory_space<vmem>>) attributes {dimension_semantics = [#tpu.dimension_semantics<parallel>, #tpu.dimension_semantics<parallel>], iteration_bounds = array<i64: 2, 1>, scalar_prefetch = 0 : i64, scratch_operands = 0 : i64, tpu.core_type = #tpu.core_type<tc>, window_params = [{transform_indices = @transform_0, window_bounds = array<i64: 1, 128, 256>}, {pipeline_mode = #tpu.pipeline_mode<synchronous>, transform_indices = @transform_1, window_bounds = array<i64: 1, 256>}, {pipeline_mode = #tpu.pipeline_mode<synchronous>, transform_indices = @transform_2, window_bounds = array<i64: 1, 256>}, {pipeline_mode = #tpu.pipeline_mode<synchronous>, transform_indices = @transform_3, window_bounds = array<i64: 256, 768>}, {transform_indices = @transform_4, window_bounds = array<i64: 1, 2, 128, 128>}, {transform_indices = @transform_5, window_bounds = array<i64: 1, 2, 128, 128>}, {transform_indices = @transform_6, window_bounds = array<i64: 1, 2, 128, 128>}]} {
    %c0 = arith.constant 0 : index
    %c0_0 = arith.constant 0 : index
    %c0_1 = arith.constant 0 : index
    %0 = vector.load %arg2[%c0, %c0_0, %c0_1] : memref<1x128x256xf32, #tpu.memory_space<vmem>>, vector<1x128x256xf32>
    %1 = vector.shape_cast %0 : vector<1x128x256xf32> to vector<128x256xf32>
    %c0_2 = arith.constant 0 : index
    %c0_3 = arith.constant 0 : index
    %2 = vector.load %arg3[%c0_2, %c0_3] : memref<1x256xf32, #tpu.memory_space<vmem>>, vector<1x256xf32>
    %3 = vector.shape_cast %2 : vector<1x256xf32> to vector<256xf32>
    %c0_4 = arith.constant 0 : index
    %c0_5 = arith.constant 0 : index
    %4 = vector.load %arg4[%c0_4, %c0_5] : memref<1x256xf32, #tpu.memory_space<vmem>>, vector<1x256xf32>
    %5 = vector.shape_cast %4 : vector<1x256xf32> to vector<256xf32>
    %cst = arith.constant dense<0.000000e+00> : vector<128xf32>
    %6 = vector.multi_reduction <add>, %1, %cst [1] : vector<128x256xf32> to vector<128xf32>
    %7 = vector.shape_cast %6 : vector<128xf32> to vector<128x1xf32>
    %cst_6 = arith.constant 2.560000e+02 : f32
    %8 = vector.broadcast %cst_6 : f32 to vector<128x1xf32>
    %9 = arith.divf %7, %8 : vector<128x1xf32>
    %10 = vector.broadcast %9 : vector<128x1xf32> to vector<128x256xf32>
    %11 = arith.subf %1, %10 : vector<128x256xf32>
    %12 = arith.mulf %11, %11 : vector<128x256xf32>
    %cst_7 = arith.constant dense<0.000000e+00> : vector<128xf32>
    %13 = vector.multi_reduction <add>, %12, %cst_7 [1] : vector<128x256xf32> to vector<128xf32>
    %14 = vector.shape_cast %13 : vector<128xf32> to vector<128x1xf32>
    %cst_8 = arith.constant 2.560000e+02 : f32
    %15 = vector.broadcast %cst_8 : f32 to vector<128x1xf32>
    %16 = arith.divf %14, %15 : vector<128x1xf32>
    %17 = vector.broadcast %9 : vector<128x1xf32> to vector<128x256xf32>
    %18 = arith.subf %1, %17 : vector<128x256xf32>
    %cst_9 = arith.constant 9.99999974E-6 : f32
    %19 = vector.broadcast %cst_9 : f32 to vector<128x1xf32>
    %20 = arith.addf %16, %19 : vector<128x1xf32>
    %21 = math.rsqrt %20 : vector<128x1xf32>
    %22 = vector.broadcast %21 : vector<128x1xf32> to vector<128x256xf32>
    %23 = arith.mulf %18, %22 : vector<128x256xf32>
    %24 = vector.shape_cast %3 : vector<256xf32> to vector<1x256xf32>
    %25 = vector.broadcast %24 : vector<1x256xf32> to vector<128x256xf32>
    %26 = arith.mulf %23, %25 : vector<128x256xf32>
    %27 = vector.shape_cast %5 : vector<256xf32> to vector<1x256xf32>
    %28 = vector.broadcast %27 : vector<1x256xf32> to vector<128x256xf32>
    %29 = arith.addf %26, %28 : vector<128x256xf32>
    %30 = arith.truncf %29 : vector<128x256xf32> to vector<128x256xbf16>
    %c0_10 = arith.constant 0 : index
    %c0_11 = arith.constant 0 : index
    %31 = vector.load %arg5[%c0_10, %c0_11] : memref<256x768xbf16, #tpu.memory_space<vmem>>, vector<256x768xbf16>
    %cst_12 = arith.constant dense<0.000000e+00> : vector<128x768xf32>
    %32 = tpu.matmul %30, %31, %cst_12 {dimension_numbers = #tpu.dot_dimension_numbers<[1], [0], [0], [1], [0, 0, 1, 1], [], []>} : vector<128x256xbf16>, vector<256x768xbf16>, vector<128x768xf32> -> vector<128x768xf32>
    %33 = arith.truncf %32 : vector<128x768xf32> to vector<128x768xbf16>
    %34 = vector.extract_strided_slice %33 {offsets = [0, 0], sizes = [128, 256], strides = [1, 1]} : vector<128x768xbf16> to vector<128x256xbf16>
    %35 = vector.shape_cast %34 : vector<128x256xbf16> to vector<128x2x128xbf16>
    %36 = vector.extract_strided_slice %33 {offsets = [0, 256], sizes = [128, 256], strides = [1, 1]} : vector<128x768xbf16> to vector<128x256xbf16>
    %37 = vector.shape_cast %36 : vector<128x256xbf16> to vector<128x2x128xbf16>
    %38 = vector.extract_strided_slice %33 {offsets = [0, 512], sizes = [128, 256], strides = [1, 1]} : vector<128x768xbf16> to vector<128x256xbf16>
    %39 = vector.shape_cast %38 : vector<128x256xbf16> to vector<128x2x128xbf16>
    %40 = tpu.transpose %35, [1, 0, 2] : vector<128x2x128xbf16> -> vector<2x128x128xbf16>
    %c0_13 = arith.constant 0 : index
    %c0_14 = arith.constant 0 : index
    %c0_15 = arith.constant 0 : index
    %c0_16 = arith.constant 0 : index
    %41 = vector.load %arg6[%c0_13, %c0_14, %c0_15, %c0_16] : memref<1x2x128x128xbf16, #tpu.memory_space<vmem>>, vector<1x2x128x128xbf16>
    %42 = vector.shape_cast %41 : vector<1x2x128x128xbf16> to vector<2x128x128xbf16>
    %43 = vector.shape_cast %40 : vector<2x128x128xbf16> to vector<1x2x128x128xbf16>
    tpu.vector_store %arg6[%c0_13, %c0_14, %c0_15, %c0_16], %43 {strides = array<i32>} : memref<1x2x128x128xbf16, #tpu.memory_space<vmem>>, vector<1x2x128x128xbf16>,
    %44 = tpu.transpose %37, [1, 0, 2] : vector<128x2x128xbf16> -> vector<2x128x128xbf16>
    %c0_17 = arith.constant 0 : index
    %c0_18 = arith.constant 0 : index
    %c0_19 = arith.constant 0 : index
    %c0_20 = arith.constant 0 : index
    %45 = vector.load %arg7[%c0_17, %c0_18, %c0_19, %c0_20] : memref<1x2x128x128xbf16, #tpu.memory_space<vmem>>, vector<1x2x128x128xbf16>
    %46 = vector.shape_cast %45 : vector<1x2x128x128xbf16> to vector<2x128x128xbf16>
    %47 = vector.shape_cast %44 : vector<2x128x128xbf16> to vector<1x2x128x128xbf16>
    tpu.vector_store %arg7[%c0_17, %c0_18, %c0_19, %c0_20], %47 {strides = array<i32>} : memref<1x2x128x128xbf16, #tpu.memory_space<vmem>>, vector<1x2x128x128xbf16>,
    %48 = tpu.transpose %39, [1, 0, 2] : vector<128x2x128xbf16> -> vector<2x128x128xbf16>
    %c0_21 = arith.constant 0 : index
    %c0_22 = arith.constant 0 : index
    %c0_23 = arith.constant 0 : index
    %c0_24 = arith.constant 0 : index
    %49 = vector.load %arg8[%c0_21, %c0_22, %c0_23, %c0_24] : memref<1x2x128x128xbf16, #tpu.memory_space<vmem>>, vector<1x2x128x128xbf16>
    %50 = vector.shape_cast %49 : vector<1x2x128x128xbf16> to vector<2x128x128xbf16>
    %51 = vector.shape_cast %48 : vector<2x128x128xbf16> to vector<1x2x128x128xbf16>
    tpu.vector_store %arg8[%c0_21, %c0_22, %c0_23, %c0_24], %51 {strides = array<i32>} : memref<1x2x128x128xbf16, #tpu.memory_space<vmem>>, vector<1x2x128x128xbf16>,
    return
  }
  func.func @transform_0(%arg0: i32, %arg1: i32) -> (i32, i32, i32) {
    %c0_i32 = arith.constant 0 : i32
    %c0_i32_0 = arith.constant 0 : i32
    return %arg0, %arg1, %c0_i32 : i32, i32, i32
  }
  func.func @transform_1(%arg0: i32, %arg1: i32) -> (i32, i32) {
    %c0_i32 = arith.constant 0 : i32
    %c0_i32_0 = arith.constant 0 : i32
    %c0_i32_1 = arith.constant 0 : i32
    return %c0_i32, %c0_i32_0 : i32, i32
  }
  func.func @transform_2(%arg0: i32, %arg1: i32) -> (i32, i32) {
    %c0_i32 = arith.constant 0 : i32
    %c0_i32_0 = arith.constant 0 : i32
    %c0_i32_1 = arith.constant 0 : i32
    return %c0_i32, %c0_i32_0 : i32, i32
  }
  func.func @transform_3(%arg0: i32, %arg1: i32) -> (i32, i32) {
    %c0_i32 = arith.constant 0 : i32
    %c0_i32_0 = arith.constant 0 : i32
    %c0_i32_1 = arith.constant 0 : i32
    return %c0_i32, %c0_i32_0 : i32, i32
  }
  func.func @transform_4(%arg0: i32, %arg1: i32) -> (i32, i32, i32, i32) {
    %c0_i32 = arith.constant 0 : i32
    %c0_i32_0 = arith.constant 0 : i32
    %c0_i32_1 = arith.constant 0 : i32
    return %arg0, %c0_i32, %arg1, %c0_i32_0 : i32, i32, i32, i32
  }
  func.func @transform_5(%arg0: i32, %arg1: i32) -> (i32, i32, i32, i32) {
    %c0_i32 = arith.constant 0 : i32
    %c0_i32_0 = arith.constant 0 : i32
    %c0_i32_1 = arith.constant 0 : i32
    return %arg0, %c0_i32, %arg1, %c0_i32_0 : i32, i32, i32, i32
  }
  func.func @transform_6(%arg0: i32, %arg1: i32) -> (i32, i32, i32, i32) {
    %c0_i32 = arith.constant 0 : i32
    %c0_i32_0 = arith.constant 0 : i32
    %c0_i32_1 = arith.constant 0 : i32
    return %arg0, %c0_i32, %arg1, %c0_i32_0 : i32, i32, i32, i32
  }
}

</mosaic_0001>

<bundles_post_ra>
// kernel: tpu_custom_call.1
= control target key start
LH: loop header
LB: loop body
LE: loop exit
PB: predicated region body
PF: predicated region fallthrough
CT: control target
= control target key end

     0   :  { %s10056_s0 = inlined_call_operand.hbm [shape: f32[2,128,256], index: 0, kind: input, shape index: {}]   ;;  %s10057_s1 = inlined_call_operand.hbm [shape: f32[1,256], index: 1, kind: input, shape index: {}]   ;;  %s10058_s2 = inlined_call_operand.vmem [shape: f32[1,256], index: 2, kind: input, shape index: {}]   ;;  %s10059_s3 = inlined_call_operand.hbm [shape: bf16[256,768], index: 3, kind: input, shape index: {}]   ;;  %s10060_s4 = inlined_call_operand.hbm [shape: bf16[2,2,128,128], index: 4, kind: output, shape index: {0}]   ;;  %s10061_s5 = inlined_call_operand.hbm [shape: bf16[2,2,128,128], index: 5, kind: output, shape index: {1}]   ;;  %s10062_s6 = inlined_call_operand.hbm [shape: bf16[2,2,128,128], index: 6, kind: output, shape index: {2}]  }
   0x1   :  { %10073 = sst [smem:[#allocation19_spill]] %s10057_s1 }
   0x2   :  { %12 = vsyncpa [#allocation3], 0 }
   0x3   :  { %14 = vsyncpa [#allocation3 + $0x1], 0 }
   0x4   :  { %15 = vsyncpa [#allocation6], 0 }
   0x5   :  { %16 = vsyncpa [#allocation4], 0 }
   0x6   :  { %18 = vsyncpa [#allocation4 + $0x1], 0 }
   0x7   :  { %19 = vsyncpa [#allocation10], 0 }
   0x8   :  { %21 = vsyncpa [#allocation10 + $0x1], 0  ;;  %s8265_s21 = smov 0   ;;  %s8267_s22 = smov 0  }
   0x9   :  { %s8269_s23 = smov 0   ;;  %s8271_s24 = smov 0  }
   0xa   :  { %s8273_s25 = smov 0   ;;  %s8275_s26 = smov 0  }
   0xb LB: > { %10074 = sst [smem:[#allocation16_spill]] %s8193_s21  ;;  %s8296_s27 = sadd.s32 4294967295, %s8213_s26   ;;  %s8213_s26 = sphi %s8275_s26, %s27_s26   ;;  %s8209_s25 = sphi %s8273_s25, %s10103_s25   ;;  %s8205_s24 = sphi %s8271_s24, %s10102_s24   ;;  %s8201_s23 = sphi %s8269_s23, %s10101_s23   ;;  %s8197_s22 = sphi %s8267_s22, %s10100_s22   ;;  %s8193_s21 = sphi %s8265_s21, %s10099_s21  }
   0xc   : > { %10075 = sst [smem:[#allocation17_spill]] %s8213_s26  ;;  %s10068_s28 = sadd.s32 4294967294, %s8213_s26  }
   0xd   : > { %p55_p0 = scmp.ne.s32.totalorder %s8201_s23, %s8197_s22  ;;  %p56_p1 = scmp.eq.s32.totalorder %s8213_s26, 0 }
   0xe   : > { %p61_p2 = scmp.ne.s32.totalorder %s8197_s22, %s8193_s21  ;;  %p10064_p3 = scmp.eq.s32.totalorder %s8296_s27, 0 }
   0xf   : > { %p150_p4 = scmp.eq.s32.totalorder %s8296_s27, 1  ;;  %p8307_p5 = por %p56_p1, %p55_p0 }
  0x10   : > { %p156_p6 = scmp.eq.s32.totalorder %s10068_s28, 1  ;;  %p8315_p7 = por %p10064_p3, %p61_p2 }
  0x11   : > { %p8319_p8 = por %p150_p4, %p55_p0  ;;  %p7366_p10 = scmp.ge.s32.totalorder %s8213_s26, 1 }
  0x12   : > { %s10077_s7 = scalar_select %p8315_p7, 1, 0 }
  0x13   : > { %s10078_s8 = scalar_select %p8319_p8, 1, 0 }
  0x14   : > { %p8323_p9 = por %p156_p6, %p61_p2  ;;  %p219_p11 = scmp.lt.s32.totalorder %s8213_s26, 3 }
  0x15   : > { %s8215_s11 = smov [#allocation5]   ;;  %p7754_p1 = scmp.lt.s32.totalorder %s8213_s26, 2 }
  0x16   : > { %s10079_s9 = scalar_select %p8323_p9, 1, 0 }
  0x17   : > { %p8330_p13 = pnand %p7366_p10, %p219_p11  ;;  %s232_s12 = sshll.u32 %s8215_s11, 4  ;;  %s233_s12 = int_to_ptr.vmem [resolvable:$true] %s232_s12 }
  0x18   : > { %10080 = sst [smem:[#allocation18_spill]] %s10079_s9  ;;  %p8339_p4 = pnand %p7754_p1, %p8307_p5 }
  0x19   : > { %s10081_s10 = scalar_select %p8330_p13, 1, 0 }
  0x1a   : > { %p7731_p0 = pneg %p8330_p13  ;;  %s8216_s14 = smov [#allocation7]  }
  0x1b   : > { %s10082_s13 = scalar_select %p8339_p4, 1, 0 }
  0x1c   : > { %s245_s15 = sshll.u32 %s8216_s14, 4  ;;  %p8345_p2 = pnand %p7731_p0, %p10064_p3  ;;  %s246_s15 = int_to_ptr.vmem [resolvable:$true] %s245_s15 }
  0x1d   : > { %s8004_s17 = scalar_lea.vmem %s233_s12, 32  ;;  %p8012_p1 = scmp.lt.s32.totalorder %s233_s12, %s233_s12 }
  0x1e   : > { %p7995_p6 = pneg %p8345_p2  ;;  %p8005_p10 = scmp.ne.s32.totalorder %s233_s12, %s8004_s17 }
  0x1f   : > { %p8013_p12 = scmp.lt.s32.totalorder %s8004_s17, %s8004_s17 }
  0x20   : > { %p8007_p5 = pnand %p8005_p10, %p7995_p6 }
  0x21   : > { %p8014_p9 = por %p8013_p12, %p8012_p1 }
  0x22   : > { %p8008_p11 = pneg %p8007_p5 }
  0x24   : > { %p8015_p8 = pnand %p8014_p9, %p8008_p11 }
  0x26   : > { %8018 = shalt.err (!%p8015_p8)
}
  0x27   : > { %s10084_s1 = sld [smem:[#allocation19_spill]]  ;;  %s8030_s20 = scalar_lea.vmem %s246_s15, 12288 }
  0x28   : > { %p8031_p0 = scmp.ne.s32.totalorder %s246_s15, %s8030_s20  ;;  %p8038_p10 = scmp.lt.s32.totalorder %s246_s15, %s246_s15 }
  0x29   : > { %p8039_p5 = scmp.lt.s32.totalorder %s8030_s20, %s8030_s20 }
  0x2a   : > { %p8033_p3 = pnand %p8031_p0, %p7995_p6 }
  0x2b   : > { %p8040_p13 = por %p8039_p5, %p8038_p10 }
  0x2c   : > { %p8034_p7 = pneg %p8033_p3 }
  0x2d   : > { %7734 = dma.hbm_to_vmem [thread:$0]  (!%p8345_p2), %s10084_s1, 32, %s233_s12, [#allocation6]  }
  0x2e   : > { %p8041_p4 = pnand %p8040_p13, %p8034_p7 }
  0x30   : > { %8044 = shalt.err (!%p8041_p4)
}
  0x31   : > { %s8217_s30 = smov 384   ;;  %s8218_s11 = smov 24  }
  0x32   : > { %7737 = dma.hbm_to_vmem [thread:$0]  (!%p8345_p2), %s10059_s3, 12288, %s246_s15, [#allocation6], %s8217_s30, %s8217_s30, %s8218_s11  }
  0x33   : > { %s259_s17 = sand.u32 1, %s8201_s23   ;;  %s39_s18 = sadd.s32 1, %s8209_s25 }
  0x34   : > { %s7370_s19 = sshll.u32 %s259_s17, 8  ;;  %p41_p3 = scmp.ge.s32.totalorder %s39_s18, 2 }
  0x35   : > { %s7679_s20 = sshll.u32 %s8209_s25, 12  ;;  %s263_s28 = scalar_lea.vmem [#allocation2], %s7370_s19 }
  0x36   : > { %s273_s29 = sshll.u32 %s263_s28, 4  ;;  %s10105_s18 = smov (%p41_p3, %s39_s18), 0  ;;  %s274_s29 = int_to_ptr.vmem [resolvable:$true] %s273_s29 }
  0x37   : > { %s272_s9 = scalar_lea.hbm %s10056_s0, %s7679_s20  ;;  %s43_s16 = ssub.s32 %s8209_s25, %s10105_s18 }
  0x38   : > { %p8377_p7 = scmp.eq.s32.totalorder %s43_s16, 0  ;;  %s260_s15 = scalar_lea.sflag [#allocation3], %s259_s17 }
  0x39   : > { %p10086_p8 = scmp.ne.s32.totalorder %s10082_s13, 0  ;;  %s8058_s30 = scalar_lea.vmem %s274_s29, 4096 }
  0x3a   : > { %p8059_p12 = scmp.ne.s32.totalorder %s274_s29, %s8058_s30  ;;  %s8219_s28 = smov [#allocation2]  }
  0x3b   : > { %p8047_p9 = pneg %p10086_p8  ;;  %s8063_s11 = sshll.u32 %s8219_s28, 4  ;;  %s8064_s11 = int_to_ptr.vmem [resolvable:$false] %s8063_s11 }
  0x3c   : > { %s8065_s12 = scalar_lea.vmem %s8064_s11, 8192  ;;  %p8066_p2 = scmp.lt.s32.totalorder %s274_s29, %s8064_s11 }
  0x3d   : > { %p8061_p13 = pnand %p8059_p12, %p8047_p9  ;;  %p8067_p6 = scmp.lt.s32.totalorder %s8065_s12, %s8058_s30 }
  0x3f   : > { %p8062_p4 = pneg %p8061_p13  ;;  %p8068_p11 = por %p8067_p6, %p8066_p2 }
  0x41   : > { %p8069_p1 = pnand %p8068_p11, %p8062_p4 }
  0x43   : > { %8072 = shalt.err (!%p8069_p1)
}
  0x44   : > { %s8220_s1 = smov 256   ;;  %s8221_s26 = smov 16  }
  0x45   : > { %7741 = dma.hbm_to_vmem [thread:$0]  (!%p10086_p8), %s272_s9, 4096, %s274_s29, %s260_s15, %s8220_s1, %s8220_s1, %s8221_s26  }
  0x46   : > { %s10087_s14 = sadd.s32 1, %s8201_s23  ;;  %p10088_p0 = scmp.ne.s32.totalorder %s10081_s10, 0 }
  0x47   : > { %s8390_s17 = scalar_select %p8377_p7, %s8201_s23, %s10087_s14  }
  0x48   : > { %285 = sbr.rel (%p10088_p0) target bundleno = 1006 (0x3ee), region = 36  ;;  %s8395_s19 = sand.u32 (!%p10088_p0), 1, %s8197_s22  }
  0x49   : > { %s7374_s20 = sshll.u32 (!%p10088_p0), %s8395_s19, 8  ;;  %s288_s16 = scalar_lea.sflag (!%p10088_p0), [#allocation3], %s8395_s19 }
  0x4a   : > { %s8399_s30 = scalar_lea.vmem (!%p10088_p0), [#allocation2], %s7374_s20  ;;  %p10089_p10 = scmp.ne.s32.totalorder (!%p10088_p0), %s10077_s7, 0 }
  0x4d   : > { %8176 = dma.done.wait (%p10089_p10), %s288_s16, 4096  }
  0x4e   : > { %8178 = vsyncadd (%p10089_p10), %s288_s16, 4294963200  ;;  %p10090_p5 = scmp.eq.s32.totalorder %s8296_s27, 0 }
  0x50   : > { %8180 = dma.done.wait (%p10090_p5), [#allocation6], 12320   ;;  %p10091_p3 = pmov %p10090_p5 }
  0x51   : > { %v8410_v0 = vld [vmem:[%s8399_s30] sm:$0xff]  ;;  %v8413_v1 = vld [vmem:[%s8399_s30 + $0x8] sm:$0xff]  ;;  %v8424_v5 = vld [vmem:[%s8399_s30 + $0x10] sm:$0xff]  ;;  %s8950_s7 = sshll.u32 %s8395_s19, 7  ;;  %s9567_s13 = sshll.u32 %s8205_s24, 11 }
  0x52   : > { %8182 = vsyncadd (%p10091_p3), [#allocation6], 4294954976  ;;  %v8416_v2 = vld [vmem:[%s8399_s30 + $0x20] sm:$0xff]  ;;  %v377_v3 = vadd.f32 %v8413_v1, %v8410_v0  ;;  %v8421_v4 = vld [vmem:[%s8399_s30 + $0x28] sm:$0xff]  ;;  %s8969_s9 = scalar_lea.vmem [#allocation8], %s8950_s7  ;;  %s9002_s10 = scalar_lea.vmem [#allocation9], %s8950_s7 }
  0x53   : > { %v8427_v6 = vld [vmem:[%s8399_s30 + $0x18] sm:$0xff]  ;;  %v383_v7 = vadd.f32 %v8421_v4, %v8416_v2  ;;  %v8432_v8 = vld [vmem:[%s8399_s30 + $0x30] sm:$0xff]  ;;  %v8442_v12 = vld [vmem:[%s8399_s30 + $0x40] sm:$0xff]  ;;  %s9587_s28 = scalar_lea.hbm %s10060_s4, %s9567_s13  ;;  %s7155_s11 = sshll.u32 %s8969_s9, 4  ;;  %s9594_s11 = int_to_ptr.vmem [resolvable:$true] %s7155_s11 }
  0x54   : > { %v8435_v9 = vld [vmem:[%s8399_s30 + $0x38] sm:$0xff]  ;;  %378 = vadd.xlane.f32.xlu0 %v377_v3  ;;  %v380_v10 = vadd.f32 %v8427_v6, %v8424_v5  ;;  %v8445_v13 = vld [vmem:[%s8399_s30 + $0x48] sm:$0xff]  ;;  %v8448_v14 = vld [vmem:[%s8399_s30 + $0x50] sm:$0xff]  ;;  %s7130_s12 = scalar_lea.sflag [#allocation4], %s8395_s19  ;;  %s8073_s1 = scalar_lea.vmem %s9594_s11, 2048 }
  0x55   : > { %384 = vadd.xlane.f32.xlu1 %v383_v7  ;;  %v386_v11 = vadd.f32 %v8435_v9, %v8432_v8  ;;  %v8451_v15 = vld [vmem:[%s8399_s30 + $0x58] sm:$0xff]  ;;  %v389_v16 = vadd.f32 %v8445_v13, %v8442_v12  ;;  %v8458_v18 = vld [vmem:[%s8399_s30 + $0x60] sm:$0xff]  ;;  %v8461_v19 = vld [vmem:[%s8399_s30 + $0x68] sm:$0xff]  ;;  %p8074_p7 = scmp.ne.s32.totalorder %s9594_s11, %s8073_s1  ;;  %p10092_p8 = scmp.ne.s32.totalorder %s10078_s8, 0 }
  0x56   : > { %v392_v17 = vadd.f32 %v8451_v15, %v8448_v14  ;;  %v8464_v20 = vld [vmem:[%s8399_s30 + $0x70] sm:$0xff]  ;;  %v8467_v21 = vld [vmem:[%s8399_s30 + $0x78] sm:$0xff]  ;;  %v8470_v22 = vld [vmem:[%s8399_s30 + $0x80] sm:$0xff]  ;;  %v395_v24 = vadd.f32 %v8461_v19, %v8458_v18  ;;  %s8225_s26 = smov [#allocation8]  }
  0x57   : > { %v8473_v23 = vld [vmem:[%s8399_s30 + $0x88] sm:$0xff]  ;;  %v8478_v25 = vld [vmem:[%s8399_s30 + $0x90] sm:$0xff]  ;;  %v8481_v26 = vld [vmem:[%s8399_s30 + $0x98] sm:$0xff]  ;;  %v398_v27 = vadd.f32 %v8467_v21, %v8464_v20  ;;  %p8075_p9 = pnand %p8074_p7, %p10092_p8  ;;  %s8077_s14 = sshll.u32 %s8225_s26, 4  ;;  %s8078_s14 = int_to_ptr.vmem [resolvable:$false] %s8077_s14 }
  0x58   : > { %381 = vadd.xlane.f32.xlu0 %v380_v10  ;;  %v8486_v28 = vld [vmem:[%s8399_s30 + $0xa0] sm:$0xff]  ;;  %v8489_v29 = vld [vmem:[%s8399_s30 + $0xa8] sm:$0xff]  ;;  %v401_v30 = vadd.f32 %v8473_v23, %v8470_v22  ;;  %v8494_v31 = vld [vmem:[%s8399_s30 + $0xb0] sm:$0xff]  ;;  %v404_v33 = vadd.f32 %v8481_v26, %v8478_v25  ;;  %s8079_s20 = scalar_lea.vmem %s8078_s14, 4096  ;;  %p8080_p13 = scmp.lt.s32.totalorder %s9594_s11, %s8078_s14 }
  0x59   : > { %387 = vadd.xlane.f32.xlu1 %v386_v11  ;;  %v8497_v32 = vld [vmem:[%s8399_s30 + $0xb8] sm:$0xff]  ;;  %v8502_v34 = vld [vmem:[%s8399_s30 + $0xc0] sm:$0xff]  ;;  %v8505_v35 = vld [vmem:[%s8399_s30 + $0xc8] sm:$0xff]  ;;  %v407_v36 = vadd.f32 %v8489_v29, %v8486_v28  ;;  %p8076_p12 = pneg %p8075_p9  ;;  %p8081_p4 = scmp.lt.s32.totalorder %s8079_s20, %s8073_s1 }
  0x5a   : > { %v8510_v37 = vld [vmem:[%s8399_s30 + $0xd0] sm:$0xff]  ;;  %v8513_v38 = vld [vmem:[%s8399_s30 + $0xd8] sm:$0xff]  ;;  %v410_v39 = vadd.f32 %v8497_v32, %v8494_v31  ;;  %v8518_v40 = vld [vmem:[%s8399_s30 + $0xe0] sm:$0xff]  ;;  %v413_v42 = vadd.f32 %v8505_v35, %v8502_v34 }
  0x5b   : > { %v8521_v41 = vld [vmem:[%s8399_s30 + $0xe8] sm:$0xff]  ;;  %v8526_v43 = vld [vmem:[%s8399_s30 + $0xf0] sm:$0xff]  ;;  %v8529_v44 = vld [vmem:[%s8399_s30 + $0xf8] sm:$0xff]  ;;  %v416_v45 = vadd.f32 %v8513_v38, %v8510_v37  ;;  %p8082_p2 = por %p8081_p4, %p8080_p13 }
  0x5c   : > { %390 = vadd.xlane.f32.xlu0 %v389_v16  ;;  %v419_v46 = vadd.f32 %v8521_v41, %v8518_v40  ;;  %v422_v47 = vadd.f32 %v8529_v44, %v8526_v43  ;;  %v7817_v48 = vld [vmem:[#allocation7 + $0x154] ss:$24 sps:$4 sm:$0xff]   ;;  %v7821_v50 = vld [vmem:[#allocation7 + $0x150] ss:$24 sps:$4 sm:$0xff]   ;;  %v7823_v52 = vld [vmem:[#allocation7 + $0x124] ss:$24 sps:$4 sm:$0xff]  }
  0x5d   : > { %393 = vadd.xlane.f32.xlu1 %v392_v17  ;;  %v7819_v49 = vld [vmem:[#allocation7 + $0x15c] ss:$24 sps:$4 sm:$0xff]   ;;  %v7822_v51 = vld [vmem:[#allocation7 + $0x158] ss:$24 sps:$4 sm:$0xff]   ;;  %v7825_v53 = vld [vmem:[#allocation7 + $0x12c] ss:$24 sps:$4 sm:$0xff]   ;;  %1312 = vmatprep.subr.bf16.mxu0 %v7817_v48  ;;  %p8083_p6 = pnand %p8082_p2, %p8076_p12 }
  0x5e   : > { %1425 = vmatprep.subr.bf16.mxu1 %v7819_v49  ;;  %1313 = vmatpush1.bf16.msra.mxu0 %v7821_v50  ;;  %v7827_v54 = vld [vmem:[#allocation7 + $0x120] ss:$24 sps:$4 sm:$0xff]   ;;  %v7829_v56 = vld [vmem:[#allocation7 + $0xf4] ss:$24 sps:$4 sm:$0xff]   ;;  %v7833_v58 = vld [vmem:[#allocation7 + $0xf0] ss:$24 sps:$4 sm:$0xff]  }
  0x5f   : > { %1426 = vmatpush1.bf16.msra.mxu1 %v7822_v51  ;;  %v7828_v55 = vld [vmem:[#allocation7 + $0x128] ss:$24 sps:$4 sm:$0xff]   ;;  %1314 = vmatprep.subr.bf16.mxu0 %v7823_v52  ;;  %v7831_v57 = vld [vmem:[#allocation7 + $0xfc] ss:$24 sps:$4 sm:$0xff]   ;;  %v7834_v59 = vld [vmem:[#allocation7 + $0xf8] ss:$24 sps:$4 sm:$0xff]  }
  0x60   : > { %396 = vadd.xlane.f32.xlu0 %v395_v24  ;;  %1427 = vmatprep.subr.bf16.mxu1 %v7825_v53  ;;  %v7835_v60 = vld [vmem:[#allocation7 + $0xc4] ss:$24 sps:$4 sm:$0xff]   ;;  %v7839_v62 = vld [vmem:[#allocation7 + $0xc0] ss:$24 sps:$4 sm:$0xff]   ;;  %v7841_v3 = vld [vmem:[#allocation7 + $0x94] ss:$24 sps:$4 sm:$0xff]  }
  0x61   : > { %399 = vadd.xlane.f32.xlu1 %v398_v27  ;;  %v7837_v61 = vld [vmem:[#allocation7 + $0xcc] ss:$24 sps:$4 sm:$0xff]   ;;  %v7840_v63 = vld [vmem:[#allocation7 + $0xc8] ss:$24 sps:$4 sm:$0xff]   ;;  %v7843_v7 = vld [vmem:[#allocation7 + $0x9c] ss:$24 sps:$4 sm:$0xff]  }
  0x62   : > { %1315 = vmatpush1.bf16.msra.mxu0 %v7827_v54  ;;  %v7845_v10 = vld [vmem:[#allocation7 + $0x90] ss:$24 sps:$4 sm:$0xff]   ;;  %v7847_v16 = vld [vmem:[#allocation7 + $0x64] ss:$24 sps:$4 sm:$0xff]   ;;  %v7851_v24 = vld [vmem:[#allocation7 + $0x60] ss:$24 sps:$4 sm:$0xff]  }
  0x63   : > { %1428 = vmatpush1.bf16.msra.mxu1 %v7828_v55  ;;  %1316 = vmatprep.subr.bf16.mxu0 %v7829_v56  ;;  %v7846_v11 = vld [vmem:[#allocation7 + $0x98] ss:$24 sps:$4 sm:$0xff]   ;;  %v7849_v17 = vld [vmem:[#allocation7 + $0x6c] ss:$24 sps:$4 sm:$0xff]   ;;  %v7852_v27 = vld [vmem:[#allocation7 + $0x68] ss:$24 sps:$4 sm:$0xff]  }
  0x64   : > { %402 = vadd.xlane.f32.xlu0 %v401_v30  ;;  %1429 = vmatprep.subr.bf16.mxu1 %v7831_v57  ;;  %v7853_v30 = vld [vmem:[#allocation7 + $0x34] ss:$24 sps:$4 sm:$0xff]   ;;  %v7869_v50 = vld [vmem:[#allocation7 + $0x2d0] ss:$24 sps:$4 sm:$0xff]  }
  0x65   : > { %405 = vadd.xlane.f32.xlu1 %v404_v33  ;;  %v7855_v33 = vld [vmem:[#allocation7 + $0x3c] ss:$24 sps:$4 sm:$0xff]   ;;  %v7870_v51 = vld [vmem:[#allocation7 + $0x2d8] ss:$24 sps:$4 sm:$0xff]  }
  0x66   : > { %1317 = vmatpush1.bf16.msra.mxu0 %v7833_v58  ;;  %v7865_v48 = vld [vmem:[#allocation7 + $0x2d4] ss:$24 sps:$4 sm:$0xff]  }
  0x67   : > { %1430 = vmatpush1.bf16.msra.mxu1 %v7834_v59  ;;  %1318 = vmatprep.subr.bf16.mxu0 %v7835_v60  ;;  %v7867_v49 = vld [vmem:[#allocation7 + $0x2dc] ss:$24 sps:$4 sm:$0xff]  }
  0x68   : > { %408 = vadd.xlane.f32.xlu0 %v407_v36  ;;  %1431 = vmatprep.subr.bf16.mxu1 %v7837_v61  ;;  %v7857_v36 = vld [vmem:[#allocation7 + $0x30] ss:$24 sps:$4 sm:$0xff]  }
  0x69   : > { %411 = vadd.xlane.f32.xlu1 %v410_v39  ;;  %v7858_v39 = vld [vmem:[#allocation7 + $0x38] ss:$24 sps:$4 sm:$0xff]  }
  0x6a   : > { %1319 = vmatpush1.bf16.msra.mxu0 %v7839_v62 }
  0x6b   : > { %1432 = vmatpush1.bf16.msra.mxu1 %v7840_v63  ;;  %1320 = vmatprep.subr.bf16.mxu0 %v7841_v3 }
  0x6c   : > { %414 = vadd.xlane.f32.xlu0 %v413_v42  ;;  %1433 = vmatprep.subr.bf16.mxu1 %v7843_v7  ;;  %v7859_v42 = vld [vmem:[#allocation7 + $0x4] ss:$24 sps:$4 sm:$0xff]  }
  0x6d   : > { %417 = vadd.xlane.f32.xlu1 %v416_v45  ;;  %v7861_v45 = vld [vmem:[#allocation7 + $0xc] ss:$24 sps:$4 sm:$0xff]  }
  0x6e   : > { %1321 = vmatpush1.bf16.msra.mxu0 %v7845_v10 }
  0x6f   : > { %1434 = vmatpush1.bf16.msra.mxu1 %v7846_v11  ;;  %1322 = vmatprep.subr.bf16.mxu0 %v7847_v16 }
  0x70   : > { %420 = vadd.xlane.f32.xlu0 %v419_v46  ;;  %1435 = vmatprep.subr.bf16.mxu1 %v7849_v17  ;;  %v7863_v46 = vld [vmem:[#allocation7] ss:$24 sps:$4 sm:$0xff]  }
  0x71   : > { %423 = vadd.xlane.f32.xlu1 %v422_v47  ;;  %v7864_v47 = vld [vmem:[#allocation7 + $0x8] ss:$24 sps:$4 sm:$0xff]  }
  0x72   : > { %1323 = vmatpush1.bf16.msra.mxu0 %v7851_v24 }
  0x73   : > { %1436 = vmatpush1.bf16.msra.mxu1 %v7852_v27  ;;  %1324 = vmatprep.subr.bf16.mxu0 %v7853_v30 }
  0x74   : > { %1437 = vmatprep.subr.bf16.mxu1 %v7855_v33 }
  0x76   : > { %1325 = vmatpush1.bf16.msra.mxu0 %v7857_v36 }
  0x77   : > { %1438 = vmatpush1.bf16.msra.mxu1 %v7858_v39  ;;  %1326 = vmatprep.subr.bf16.mxu0 %v7859_v42 }
  0x78   : > { %1439 = vmatprep.subr.bf16.mxu1 %v7861_v45 }
  0x7a   : > { %1327 = vmatpush1.bf16.msra.mxu0 %v7863_v46 }
  0x7b   : > { %1440 = vmatpush1.bf16.msra.mxu1 %v7864_v47  ;;  %1328 = vmatprep.subr.bf16.mxu0 %v7865_v48 }
  0x7c   : > { %1441 = vmatprep.subr.bf16.mxu1 %v7867_v49 }
  0x7e   : > { %1329 = vmatpush2.bf16.msra.mxu0 %v7869_v50 }
  0x7f   : > { %1442 = vmatpush2.bf16.msra.mxu1 %v7870_v51 }
  0xdd   : > { %v379_v52 = vpop.xlane.xlu0 %378 }
  0xde   : > { %v426_v53 = vmul.f32 0.00390625, %v379_v52  ;;  %v385_v54 = vpop.xlane.xlu1 %384 }
  0xdf   : > { %v428_v55 = vmul.f32 0.00390625, %v385_v54 }
  0xe0   : > { %v8538_v56 = vsub.f32 %v8410_v0, %v426_v53  ;;  %v8541_v57 = vsub.f32 %v8413_v1, %v426_v53 }
  0xe1   : > { %v8544_v58 = vsub.f32 %v8416_v2, %v428_v55  ;;  %v8547_v59 = vsub.f32 %v8421_v4, %v428_v55  ;;  %v382_v60 = vpop.xlane.xlu0 %381 }
  0xe2   : > { %v427_v61 = vmul.f32 0.00390625, %v382_v60  ;;  %v388_v62 = vpop.xlane.xlu1 %387  ;;  %v474_v63 = vmul.f32 %v8538_v56, %v8538_v56  ;;  %v475_v3 = vmul.f32 %v8541_v57, %v8541_v57 }
  0xe3   : > { %v429_v0 = vmul.f32 0.00390625, %v388_v62  ;;  %v478_v1 = vmul.f32 %v8544_v58, %v8544_v58  ;;  %v479_v2 = vmul.f32 %v8547_v59, %v8547_v59 }
  0xe4   : > { %v8558_v7 = vsub.f32 %v8424_v5, %v427_v61  ;;  %v8561_v4 = vsub.f32 %v8427_v6, %v427_v61  ;;  %v506_v10 = vadd.f32 %v475_v3, %v474_v63 }
  0xe5   : > { %v8564_v11 = vsub.f32 %v8432_v8, %v429_v0  ;;  %v8567_v16 = vsub.f32 %v8435_v9, %v429_v0  ;;  %v391_v17 = vpop.xlane.xlu0 %390  ;;  %v512_v30 = vadd.f32 %v479_v2, %v478_v1 }
  0xe6   : > { %v430_v24 = vmul.f32 0.00390625, %v391_v17  ;;  %507 = vadd.xlane.f32.xlu0 %v506_v10  ;;  %v394_v27 = vpop.xlane.xlu1 %393  ;;  %v476_v33 = vmul.f32 %v8558_v7, %v8558_v7  ;;  %v477_v5 = vmul.f32 %v8561_v4, %v8561_v4 }
  0xe7   : > { %v431_v6 = vmul.f32 0.00390625, %v394_v27  ;;  %v480_v36 = vmul.f32 %v8564_v11, %v8564_v11  ;;  %v481_v8 = vmul.f32 %v8567_v16, %v8567_v16 }
  0xe8   : > { %v8578_v9 = vsub.f32 %v8442_v12, %v430_v24  ;;  %v8581_v39 = vsub.f32 %v8445_v13, %v430_v24  ;;  %v509_v42 = vadd.f32 %v477_v5, %v476_v33  ;;  %v7873_v33 = vld [vmem:[#allocation7 + $0x2ac] ss:$24 sps:$4 sm:$0xff]  }
  0xe9   : > { %v8584_v45 = vsub.f32 %v8448_v14, %v431_v6  ;;  %v8587_v46 = vsub.f32 %v8451_v15, %v431_v6  ;;  %v397_v47 = vpop.xlane.xlu0 %396  ;;  %v515_v50 = vadd.f32 %v481_v8, %v480_v36  ;;  %v7875_v8 = vld [vmem:[#allocation7 + $0x2a0] ss:$24 sps:$4 sm:$0xff]   ;;  %1443 = vmatprep.subr.bf16.mxu1 %v7873_v33 }
  0xea   : > { %v432_v48 = vmul.f32 0.00390625, %v397_v47  ;;  %513 = vadd.xlane.f32.xlu0 %v512_v30  ;;  %510 = vadd.xlane.f32.xlu1 %v509_v42  ;;  %v400_v49 = vpop.xlane.xlu1 %399  ;;  %v482_v12 = vmul.f32 %v8578_v9, %v8578_v9  ;;  %v483_v13 = vmul.f32 %v8581_v39, %v8581_v39  ;;  %v7871_v30 = vld [vmem:[#allocation7 + $0x2a4] ss:$24 sps:$4 sm:$0xff]  }
  0xeb   : > { %v433_v51 = vmul.f32 0.00390625, %v400_v49  ;;  %v484_v14 = vmul.f32 %v8584_v45, %v8584_v45  ;;  %v485_v15 = vmul.f32 %v8587_v46, %v8587_v46  ;;  %1330 = vmatprep.subr.bf16.mxu0 %v7871_v30 }
  0xec   : > { %v8598_v52 = vsub.f32 %v8458_v18, %v432_v48  ;;  %v8601_v53 = vsub.f32 %v8461_v19, %v432_v48  ;;  %v518_v54 = vadd.f32 %v483_v13, %v482_v12  ;;  %1331 = vmatpush2.bf16.msra.mxu0 %v7875_v8  ;;  %v7888_v8 = vld [vmem:[#allocation7 + $0x248] ss:$24 sps:$4 sm:$0xff]  }
  0xed   : > { %v8604_v55 = vsub.f32 %v8464_v20, %v433_v51  ;;  %v8607_v60 = vsub.f32 %v8467_v21, %v433_v51  ;;  %v403_v61 = vpop.xlane.xlu0 %402  ;;  %v521_v3 = vadd.f32 %v485_v15, %v484_v14 }
  0xee   : > { %v434_v62 = vmul.f32 0.00390625, %v403_v61  ;;  %516 = vadd.xlane.f32.xlu1 %v515_v50  ;;  %519 = vadd.xlane.f32.xlu0 %v518_v54  ;;  %v406_v63 = vpop.xlane.xlu1 %405  ;;  %v486_v18 = vmul.f32 %v8598_v52, %v8598_v52  ;;  %v487_v19 = vmul.f32 %v8601_v53, %v8601_v53  ;;  %v7877_v61 = vld [vmem:[#allocation7 + $0x274] ss:$24 sps:$4 sm:$0xff]  }
  0xef   : > { %v435_v0 = vmul.f32 0.00390625, %v406_v63  ;;  %v488_v20 = vmul.f32 %v8604_v55, %v8604_v55  ;;  %v489_v21 = vmul.f32 %v8607_v60, %v8607_v60  ;;  %1332 = vmatprep.subr.bf16.mxu0 %v7877_v61 }
  0xf0   : > { %v8618_v1 = vsub.f32 %v8470_v22, %v434_v62  ;;  %v8621_v2 = vsub.f32 %v8473_v23, %v434_v62  ;;  %v524_v10 = vadd.f32 %v487_v19, %v486_v18  ;;  %v7879_v62 = vld [vmem:[#allocation7 + $0x27c] ss:$24 sps:$4 sm:$0xff]   ;;  %v7882_v18 = vld [vmem:[#allocation7 + $0x278] ss:$24 sps:$4 sm:$0xff]  }
  0xf1   : > { %v8624_v17 = vsub.f32 %v8478_v25, %v435_v0  ;;  %v8627_v24 = vsub.f32 %v8481_v26, %v435_v0  ;;  %v409_v27 = vpop.xlane.xlu0 %408  ;;  %v527_v36 = vadd.f32 %v489_v21, %v488_v20  ;;  %v7876_v25 = vld [vmem:[#allocation7 + $0x2a8] ss:$24 sps:$4 sm:$0xff]  }
  0xf2   : > { %v436_v5 = vmul.f32 0.00390625, %v409_v27  ;;  %522 = vadd.xlane.f32.xlu1 %v521_v3  ;;  %525 = vadd.xlane.f32.xlu0 %v524_v10  ;;  %v412_v6 = vpop.xlane.xlu1 %411  ;;  %v490_v22 = vmul.f32 %v8618_v1, %v8618_v1  ;;  %v491_v23 = vmul.f32 %v8621_v2, %v8621_v2  ;;  %v7881_v3 = vld [vmem:[#allocation7 + $0x270] ss:$24 sps:$4 sm:$0xff]  }
  0xf3   : > { %v437_v42 = vmul.f32 0.00390625, %v412_v6  ;;  %v492_v26 = vmul.f32 %v8624_v17, %v8624_v17  ;;  %v493_v47 = vmul.f32 %v8627_v24, %v8627_v24  ;;  %1444 = vmatpush2.bf16.msra.mxu1 %v7876_v25  ;;  %1333 = vmatpush2.bf16.msra.mxu0 %v7881_v3  ;;  %v7883_v6 = vld [vmem:[#allocation7 + $0x244] ss:$24 sps:$4 sm:$0xff]   ;;  %v7901_v3 = vld [vmem:[#allocation7 + $0x1b4] ss:$24 sps:$4 sm:$0xff]  }
  0xf4   : > { %v8638_v48 = vsub.f32 %v8486_v28, %v436_v5  ;;  %v8641_v49 = vsub.f32 %v8489_v29, %v436_v5  ;;  %v530_v50 = vadd.f32 %v491_v23, %v490_v22  ;;  %1445 = vmatprep.subr.bf16.mxu1 %v7879_v62  ;;  %v7887_v23 = vld [vmem:[#allocation7 + $0x240] ss:$24 sps:$4 sm:$0xff]   ;;  %1334 = vmatprep.subr.bf16.mxu0 %v7883_v6  ;;  %v7895_v62 = vld [vmem:[#allocation7 + $0x1e4] ss:$24 sps:$4 sm:$0xff]  }
  0xf5   : > { %v8644_v12 = vsub.f32 %v8494_v31, %v437_v42  ;;  %v8647_v13 = vsub.f32 %v8497_v32, %v437_v42  ;;  %v415_v51 = vpop.xlane.xlu0 %414  ;;  %v533_v54 = vadd.f32 %v493_v47, %v492_v26 }
  0xf6   : > { %v438_v14 = vmul.f32 0.00390625, %v415_v51  ;;  %528 = vadd.xlane.f32.xlu1 %v527_v36  ;;  %531 = vadd.xlane.f32.xlu0 %v530_v50  ;;  %v418_v15 = vpop.xlane.xlu1 %417  ;;  %v494_v28 = vmul.f32 %v8638_v48, %v8638_v48  ;;  %v495_v29 = vmul.f32 %v8641_v49, %v8641_v49 }
  0xf7   : > { %v439_v63 = vmul.f32 0.00390625, %v418_v15  ;;  %v496_v31 = vmul.f32 %v8644_v12, %v8644_v12  ;;  %v497_v32 = vmul.f32 %v8647_v13, %v8647_v13  ;;  %1446 = vmatpush2.bf16.msra.mxu1 %v7882_v18  ;;  %1335 = vmatpush2.bf16.msra.mxu0 %v7887_v23  ;;  %v7891_v15 = vld [vmem:[#allocation7 + $0x21c] ss:$24 sps:$4 sm:$0xff]  }
  0xf8   : > { %v8658_v19 = vsub.f32 %v8502_v34, %v438_v14  ;;  %v8661_v0 = vsub.f32 %v8505_v35, %v438_v14  ;;  %v536_v20 = vadd.f32 %v495_v29, %v494_v28  ;;  %v7889_v14 = vld [vmem:[#allocation7 + $0x214] ss:$24 sps:$4 sm:$0xff]   ;;  %v7894_v28 = vld [vmem:[#allocation7 + $0x218] ss:$24 sps:$4 sm:$0xff]  }
  0xf9   : > { %v8664_v21 = vsub.f32 %v8510_v37, %v439_v63  ;;  %v8667_v10 = vsub.f32 %v8513_v38, %v439_v63  ;;  %v421_v27 = vpop.xlane.xlu0 %420  ;;  %v539_v33 = vadd.f32 %v497_v32, %v496_v31  ;;  %v7885_v37 = vld [vmem:[#allocation7 + $0x24c] ss:$24 sps:$4 sm:$0xff]   ;;  %1336 = vmatprep.subr.bf16.mxu0 %v7889_v14  ;;  %v7899_v31 = vld [vmem:[#allocation7 + $0x1e0] ss:$24 sps:$4 sm:$0xff]   ;;  %v7903_v18 = vld [vmem:[#allocation7 + $0x1bc] ss:$24 sps:$4 sm:$0xff]  }
  0xfa   : > { %v440_v30 = vmul.f32 0.00390625, %v421_v27  ;;  %534 = vadd.xlane.f32.xlu1 %v533_v54  ;;  %537 = vadd.xlane.f32.xlu0 %v536_v20  ;;  %v424_v34 = vpop.xlane.xlu1 %423  ;;  %v498_v35 = vmul.f32 %v8658_v19, %v8658_v19  ;;  %v499_v5 = vmul.f32 %v8661_v0, %v8661_v0  ;;  %v7893_v54 = vld [vmem:[#allocation7 + $0x210] ss:$24 sps:$4 sm:$0xff]   ;;  %v7897_v63 = vld [vmem:[#allocation7 + $0x1ec] ss:$24 sps:$4 sm:$0xff]  }
  0xfb   : > { %v441_v36 = vmul.f32 0.00390625, %v424_v34  ;;  %v500_v38 = vmul.f32 %v8664_v21, %v8664_v21  ;;  %v501_v22 = vmul.f32 %v8667_v10, %v8667_v10  ;;  %1447 = vmatprep.subr.bf16.mxu1 %v7885_v37  ;;  %1337 = vmatpush2.bf16.msra.mxu0 %v7893_v54  ;;  %v7900_v32 = vld [vmem:[#allocation7 + $0x1e8] ss:$24 sps:$4 sm:$0xff]   ;;  %v7906_v27 = vld [vmem:[#allocation7 + $0x1b8] ss:$24 sps:$4 sm:$0xff]  }
  0xfc   : > { %v8678_v25 = vsub.f32 %v8518_v40, %v440_v30  ;;  %v8681_v42 = vsub.f32 %v8521_v41, %v440_v30  ;;  %v542_v26 = vadd.f32 %v499_v5, %v498_v35  ;;  %1448 = vmatpush2.bf16.msra.mxu1 %v7888_v8  ;;  %1338 = vmatprep.subr.bf16.mxu0 %v7895_v62  ;;  %v7905_v20 = vld [vmem:[#allocation7 + $0x1b0] ss:$24 sps:$4 sm:$0xff]   ;;  %v7907_v30 = vld [vmem:[#allocation7 + $0x184] ss:$24 sps:$4 sm:$0xff]  }
  0xfd   : > { %v8684_v47 = vsub.f32 %v8526_v43, %v441_v36  ;;  %v8687_v50 = vsub.f32 %v8529_v44, %v441_v36  ;;  %v545_v51 = vadd.f32 %v501_v22, %v500_v38  ;;  %1449 = vmatprep.subr.bf16.mxu1 %v7891_v15  ;;  %v7909_v34 = vld [vmem:[#allocation7 + $0x18c] ss:$24 sps:$4 sm:$0xff]   ;;  %v7912_v35 = vld [vmem:[#allocation7 + $0x188] ss:$24 sps:$4 sm:$0xff]  }
  0xfe   : > { %540 = vadd.xlane.f32.xlu1 %v539_v33  ;;  %543 = vadd.xlane.f32.xlu0 %v542_v26  ;;  %v502_v40 = vmul.f32 %v8678_v25, %v8678_v25  ;;  %v503_v41 = vmul.f32 %v8681_v42, %v8681_v42  ;;  %v7911_v33 = vld [vmem:[#allocation7 + $0x180] ss:$24 sps:$4 sm:$0xff]   ;;  %v7915_v5 = vld [vmem:[#allocation7 + $0x164] ss:$24 sps:$4 sm:$0xff]   ;;  %v635_v26 = vlaneseq }
  0xff   : > { %v504_v43 = vmul.f32 %v8684_v47, %v8684_v47  ;;  %v505_v44 = vmul.f32 %v8687_v50, %v8687_v50  ;;  %1339 = vmatpush2.bf16.msra.mxu0 %v7899_v31 }
 0x100   : > { %v548_v29 = vadd.f32 %v503_v41, %v502_v40  ;;  %1450 = vmatpush2.bf16.msra.mxu1 %v7894_v28  ;;  %1340 = vmatprep.subr.bf16.mxu0 %v7901_v3 }
 0x101   : > { %v551_v61 = vadd.f32 %v505_v44, %v504_v43  ;;  %1451 = vmatprep.subr.bf16.mxu1 %v7897_v63  ;;  %v8697_v44 = vshrl.u32 %v635_v26, 7 }
 0x102   : > { %546 = vadd.xlane.f32.xlu1 %v545_v51  ;;  %549 = vadd.xlane.f32.xlu0 %v548_v29 }
 0x103   : > { %1341 = vmatpush2.bf16.msra.mxu0 %v7905_v20  ;;  %v641_v31 = vsub.s32 1, %v8697_v44 }
 0x104   : > { %1452 = vmatpush2.bf16.msra.mxu1 %v7900_v32  ;;  %1342 = vmatprep.subr.bf16.mxu0 %v7907_v30  ;;  %v637_v32 = vsub.s32 0, %v8697_v44 }
 0x105   : > { %1453 = vmatprep.subr.bf16.mxu1 %v7903_v18  ;;  %v375_v18 = vld [vmem:[#allocation5] sm:$0x3] }
 0x106   : > { %552 = vadd.xlane.f32.xlu1 %v551_v61 }
 0x107   : > { %1343 = vmatpush2.bf16.msra.mxu0 %v7911_v33 }
 0x108   : > { %1454 = vmatpush2.bf16.msra.mxu1 %v7906_v27  ;;  %1538 = vmatprep.subr.bf16.mxu0 %v7915_v5 }
 0x109   : > { %1455 = vmatprep.subr.bf16.mxu1 %v7909_v34 }
 0x10c   : > { %1456 = vmatpush2.bf16.msra.mxu1 %v7912_v35  ;;  %v376_v35 = vld [vmem:[%s10058_s2] sm:$0x3] }
 0x10d   : > { %7683 = vmatprep.subr.bf16.mxu1 %v7915_v5  ;;  %v8704_v5 = vrot.slane %v375_v18, %v641_v31  ;;  %v8710_v26 = vrot.slane %v376_v35, %v641_v31 }
 0x16f   : > { %v508_v6 = vpop.xlane.xlu0 %507 }
 0x170   : > { %v554_v37 = vmul.f32 0.00390625, %v508_v6  ;;  %v8706_v6 = vrot.slane %v375_v18, %v637_v32 }
 0x172   : > { %v570_v36 = vadd.f32 1e-05, %v554_v37 }
 0x173   : > { %v511_v38 = vpop.xlane.xlu1 %510  ;;  %v514_v22 = vpop.xlane.xlu0 %513 }
 0x174   : > { %7961 = vrsqrt.f32 %v570_v36  ;;  %v555_v23 = vmul.f32 0.00390625, %v511_v38  ;;  %v556_v8 = vmul.f32 0.00390625, %v514_v22 }
 0x176   : > { %v571_v51 = vadd.f32 1e-05, %v555_v23  ;;  %v572_v40 = vadd.f32 1e-05, %v556_v8 }
 0x177   : > { %v517_v41 = vpop.xlane.xlu1 %516  ;;  %v520_v14 = vpop.xlane.xlu0 %519 }
 0x178   : > { %7963 = vrsqrt.f32 %v571_v51  ;;  %v557_v15 = vmul.f32 0.00390625, %v517_v41  ;;  %v558_v43 = vmul.f32 0.00390625, %v520_v14  ;;  %v8714_v14 = vrot.slane %v376_v35, %v637_v32  ;;  %v7913_v35 = vld [vmem:[#allocation7 + $0x160] ss:$24 sps:$4 sm:$0xff]  }
 0x179   : > { %7965 = vrsqrt.f32 %v572_v40 }
 0x17a   : > { %v573_v54 = vadd.f32 1e-05, %v557_v15  ;;  %v574_v28 = vadd.f32 1e-05, %v558_v43 }
 0x17b   : > { %v523_v29 = vpop.xlane.xlu1 %522  ;;  %v526_v61 = vpop.xlane.xlu0 %525 }
 0x17c   : > { %7967 = vrsqrt.f32 %v573_v54  ;;  %v559_v62 = vmul.f32 0.00390625, %v523_v29  ;;  %v560_v63 = vmul.f32 0.00390625, %v526_v61 }
 0x17d   : > { %7969 = vrsqrt.f32 %v574_v28 }
 0x17e   : > { %v575_v3 = vadd.f32 1e-05, %v559_v62  ;;  %v576_v34 = vadd.f32 1e-05, %v560_v63 }
 0x17f   : > { %v529_v20 = vpop.xlane.xlu1 %528  ;;  %v532_v33 = vpop.xlane.xlu0 %531 }
 0x180   : > { %7971 = vrsqrt.f32 %v575_v3  ;;  %v561_v27 = vmul.f32 0.00390625, %v529_v20  ;;  %v562_v23 = vmul.f32 0.00390625, %v532_v33 }
 0x181   : > { %v7962_v30 = vpop.eup %7961 }
 0x182   : > { %v577_v37 = vadd.f32 1e-05, %v561_v27  ;;  %v603_v36 = vmul.f32 %v7962_v30, %v8541_v57  ;;  %v602_v38 = vmul.f32 %v7962_v30, %v8538_v56  ;;  %v578_v28 = vadd.f32 1e-05, %v562_v23 }
 0x183   : > { %v535_v22 = vpop.xlane.xlu1 %534  ;;  %v538_v3 = vpop.xlane.xlu0 %537 }
 0x184   : > { %7973 = vrsqrt.f32 %v577_v37  ;;  %v563_v8 = vmul.f32 0.00390625, %v535_v22  ;;  %v646_v40 = vmul.f32 %v8704_v5, %v603_v36  ;;  %v645_v41 = vmul.f32 %v8706_v6, %v602_v38  ;;  %v7918_v22 = vld [vmem:[#allocation7 + $0x134] ss:$24 sps:$4 sm:$0xff]  }
 0x185   : > { %v7964_v51 = vpop.eup %7963  ;;  %7975 = vrsqrt.f32 %v576_v34  ;;  %v564_v36 = vmul.f32 0.00390625, %v538_v3 }
 0x186   : > { %v7966_v15 = vpop.eup %7965  ;;  %v579_v43 = vadd.f32 1e-05, %v563_v8  ;;  %v605_v57 = vmul.f32 %v7964_v51, %v8561_v4  ;;  %v604_v56 = vmul.f32 %v7964_v51, %v8558_v7  ;;  %v689_v63 = vadd.f32 %v8710_v26, %v646_v40 }
 0x187   : > { %v607_v54 = vmul.f32 %v7966_v15, %v8547_v59  ;;  %v541_v29 = vpop.xlane.xlu1 %540  ;;  %v688_v32 = vadd.f32 %v8714_v14, %v645_v41  ;;  %v606_v7 = vmul.f32 %v7966_v15, %v8544_v58 }
 0x188   : > { %v648_v61 = vmul.f32 %v8704_v5, %v605_v57  ;;  %v647_v31 = vmul.f32 %v8706_v6, %v604_v56  ;;  %7977 = vrsqrt.f32 %v579_v43  ;;  %v565_v20 = vmul.f32 0.00390625, %v541_v29  ;;  %v7916_v43 = vld [vmem:[#allocation7 + $0x130] ss:$24 sps:$4 sm:$0xff]   ;;  %v7921_v29 = vld [vmem:[#allocation7 + $0x104] ss:$24 sps:$4 sm:$0xff]  }
 0x189   : > { %v7968_v62 = vpop.eup %7967  ;;  %v650_v30 = vmul.f32 %v8704_v5, %v607_v54  ;;  %7979 = vrsqrt.f32 %v578_v28  ;;  %v649_v23 = vmul.f32 %v8706_v6, %v606_v7  ;;  %v580_v54 = vadd.f32 1e-05, %v564_v36 }
 0x18a   : > { %v691_v18 = vadd.f32 %v8710_v26, %v648_v61  ;;  %v609_v4 = vmul.f32 %v7968_v62, %v8567_v16  ;;  %v7970_v59 = vpop.eup %7969  ;;  %v690_v27 = vadd.f32 %v8714_v14, %v647_v31  ;;  %v608_v34 = vmul.f32 %v7968_v62, %v8564_v11 }
 0x18b   : > { %v611_v11 = vmul.f32 %v7970_v59, %v8581_v39  ;;  %v581_v51 = vadd.f32 1e-05, %v565_v20  ;;  %v547_v40 = vpop.xlane.xlu1 %546  ;;  %v693_v41 = vadd.f32 %v8710_v26, %v650_v30  ;;  %v7919_v20 = vld [vmem:[#allocation7 + $0x100] ss:$24 sps:$4 sm:$0xff]  }
 0x18c   : > { %v8729_v33 = vpack.c.bf16 %v691_v18, %v689_v63  ;;  %v8731_v38 = vpack.c.bf16 %v690_v27, %v688_v32  ;;  %v652_v16 = vmul.f32 %v8704_v5, %v609_v4  ;;  %v651_v58 = vmul.f32 %v8706_v6, %v608_v34 }
 0x18d   : > { %v7972_v37 = vpop.eup %7971  ;;  %v654_v61 = vmul.f32 %v8704_v5, %v611_v11  ;;  %v567_v31 = vmul.f32 0.00390625, %v547_v40  ;;  %v692_v32 = vadd.f32 %v8714_v14, %v649_v23  ;;  %7981 = vrsqrt.f32 %v581_v51 }
 0x18e   : > { %1344 = vmatprep.mubr.bf16.mxu0 %v8729_v33  ;;  %1457 = vmatprep.mubr.bf16.mxu1 %v8729_v33  ;;  %v613_v8 = vmul.f32 %v7972_v37, %v8587_v46  ;;  %v695_v15 = vadd.f32 %v8710_v26, %v652_v16  ;;  %v694_v57 = vadd.f32 %v8714_v14, %v651_v58  ;;  %v544_v46 = vpop.xlane.xlu0 %543  ;;  %7983 = vrsqrt.f32 %v580_v54  ;;  %v7922_v58 = vld [vmem:[#allocation7 + $0xd0] ss:$24 sps:$4 sm:$0xff]   ;;  %v7925_v54 = vld [vmem:[#allocation7 + $0xa0] ss:$24 sps:$4 sm:$0xff]  }
 0x18f   : > { %1345 = vmatmul.mubr.bf16.vlgmr.msra.gmra.mxu0 %v8731_v38  ;;  %1458 = vmatmul.mubr.bf16.vlgmr.msra.gmra.mxu1 %v8731_v38  ;;  %v612_v62 = vmul.f32 %v7972_v37, %v8584_v45  ;;  %v610_v18 = vmul.f32 %v7970_v59, %v8578_v9  ;;  %v566_v7 = vmul.f32 0.00390625, %v544_v46  ;;  %v697_v27 = vadd.f32 %v8710_v26, %v654_v61  ;;  %v7924_v37 = vld [vmem:[#allocation7 + $0xd4] ss:$24 sps:$4 sm:$0xff]   ;;  %v553_v59 = vpop.xlane.xlu1 %552 }
 0x190   : > { %1539 = vmatpush1.bf16.msra.mxu0 %v7913_v35  ;;  %7699 = vmatpush1.bf16.msra.mxu1 %v7913_v35  ;;  %v656_v56 = vmul.f32 %v8704_v5, %v613_v8  ;;  %v8746_v28 = vpack.c.bf16 %v695_v15, %v693_v41  ;;  %v8756_v45 = vpack.c.bf16 %v694_v57, %v692_v32  ;;  %v583_v35 = vadd.f32 1e-05, %v567_v31  ;;  %v7930_v31 = vld [vmem:[#allocation7 + $0x74] ss:$24 sps:$4 sm:$0xff]   ;;  %v7928_v32 = vld [vmem:[#allocation7 + $0x70] ss:$24 sps:$4 sm:$0xff]  }
 0x191   : > { %v7974_v39 = vpop.eup %7973  ;;  %1540 = vmatprep.subr.bf16.mxu0 %v7918_v22  ;;  %7684 = vmatprep.subr.bf16.mxu1 %v7918_v22  ;;  %v655_v30 = vmul.f32 %v8706_v6, %v612_v62  ;;  %v653_v36 = vmul.f32 %v8706_v6, %v610_v18  ;;  %v582_v22 = vadd.f32 1e-05, %v566_v7  ;;  %v569_v41 = vmul.f32 0.00390625, %v553_v59  ;;  %v7931_v59 = vld [vmem:[#allocation7 + $0x40] ss:$24 sps:$4 sm:$0xff]  }
 0x192   : > { %v7976_v63 = vpop.eup %7975  ;;  %1354 = vmatprep.mubr.bf16.mxu0 %v8746_v28  ;;  %1467 = vmatprep.mubr.bf16.mxu1 %v8746_v28  ;;  %v699_v3 = vadd.f32 %v8710_v26, %v656_v56  ;;  %v617_v4 = vmul.f32 %v7974_v39, %v8607_v60  ;;  %v616_v51 = vmul.f32 %v7974_v39, %v8604_v55  ;;  %7985 = vrsqrt.f32 %v583_v35  ;;  %v550_v40 = vpop.xlane.xlu0 %549 }
 0x193   : > { %v615_v34 = vmul.f32 %v7976_v63, %v8601_v53  ;;  %v7927_v53 = vld [vmem:[#allocation7 + $0xa4] ss:$24 sps:$4 sm:$0xff]   ;;  %v698_v11 = vadd.f32 %v8714_v14, %v655_v30  ;;  %v696_v15 = vadd.f32 %v8714_v14, %v653_v36  ;;  %v614_v57 = vmul.f32 %v7976_v63, %v8598_v52 }
 0x194   : > { %1541 = vmatpush1.bf16.msra.mxu0 %v7916_v43  ;;  %7700 = vmatpush1.bf16.msra.mxu1 %v7916_v43  ;;  %v8763_v60 = vpack.c.bf16 %v699_v3, %v697_v27  ;;  %v660_v16 = vmul.f32 %v8704_v5, %v617_v4  ;;  %7987 = vrsqrt.f32 %v582_v22  ;;  %v568_v55 = vmul.f32 0.00390625, %v550_v40  ;;  %v7933_v4 = vld [vmem:[#allocation7 + $0x44] ss:$24 sps:$4 sm:$0xff]   ;;  %v7936_v22 = vld [vmem:[#allocation7 + $0x14] ss:$24 sps:$4 sm:$0xff]  }
 0x195   : > { %1542 = vmatprep.subr.bf16.mxu0 %v7921_v29  ;;  %7685 = vmatprep.subr.bf16.mxu1 %v7921_v29  ;;  %v7978_v9 = vpop.eup %7977  ;;  %v658_v8 = vmul.f32 %v8704_v5, %v615_v34  ;;  %v8777_v39 = vpack.c.bf16 %v698_v11, %v696_v15  ;;  %v659_v61 = vmul.f32 %v8706_v6, %v616_v51  ;;  %v585_v62 = vadd.f32 1e-05, %v569_v41 }
 0x196   : > { %v7980_v23 = vpop.eup %7979  ;;  %v703_v43 = vadd.f32 %v8710_v26, %v660_v16  ;;  %v621_v56 = vmul.f32 %v7978_v9, %v8627_v24  ;;  %v657_v24 = vmul.f32 %v8706_v6, %v614_v57  ;;  %v584_v18 = vadd.f32 1e-05, %v568_v55 }
 0x197   : > { %1355 = vmatmul.mubr.bf16.gmra.mxu0 %v8756_v45  ;;  %1468 = vmatmul.mubr.bf16.gmra.mxu1 %v8756_v45  ;;  %v619_v46 = vmul.f32 %v7980_v23, %v8621_v2  ;;  %v701_v29 = vadd.f32 %v8710_v26, %v658_v8  ;;  %v702_v7 = vadd.f32 %v8714_v14, %v659_v61  ;;  %7989 = vrsqrt.f32 %v585_v62  ;;  %v7940_v62 = vld [vmem:[#allocation7 + $0x2b0] ss:$24 sps:$4 sm:$0xff]  }
 0x198   : > { %1543 = vmatpush1.bf16.msra.mxu0 %v7919_v20  ;;  %7701 = vmatpush1.bf16.msra.mxu1 %v7919_v20  ;;  %v664_v2 = vmul.f32 %v8704_v5, %v621_v56  ;;  %v620_v20 = vmul.f32 %v7978_v9, %v8624_v17  ;;  %v700_v30 = vadd.f32 %v8714_v14, %v657_v24  ;;  %7991 = vrsqrt.f32 %v584_v18  ;;  %v7937_v56 = vld [vmem:[#allocation7 + $0x2e0] ss:$24 sps:$4 sm:$0xff]   ;;  %v7945_v24 = vld [vmem:[#allocation7 + $0x284] ss:$24 sps:$4 sm:$0xff]  }
 0x199   : > { %1364 = vmatprep.mubr.bf16.mxu0 %v8763_v60  ;;  %1477 = vmatprep.mubr.bf16.mxu1 %v8763_v60  ;;  %v8783_v52 = vpack.c.bf16 %v703_v43, %v701_v29  ;;  %v662_v3 = vmul.f32 %v8704_v5, %v619_v46  ;;  %v618_v35 = vmul.f32 %v7980_v23, %v8618_v1  ;;  %v7942_v29 = vld [vmem:[#allocation7 + $0x2b4] ss:$24 sps:$4 sm:$0xff]  }
 0x19a   : > { %1544 = vmatprep.subr.bf16.mxu0 %v7924_v37  ;;  %7686 = vmatprep.subr.bf16.mxu1 %v7924_v37  ;;  %v7982_v63 = vpop.eup %7981  ;;  %v707_v34 = vadd.f32 %v8710_v26, %v664_v2  ;;  %v8797_v17 = vpack.c.bf16 %v702_v7, %v700_v30  ;;  %v663_v9 = vmul.f32 %v8706_v6, %v620_v20  ;;  %v7943_v20 = vld [vmem:[#allocation7 + $0x280] ss:$24 sps:$4 sm:$0xff]  }
 0x19b   : > { %v7984_v27 = vpop.eup %7983  ;;  %v625_v37 = vmul.f32 %v7982_v63, %v8647_v13  ;;  %v705_v36 = vadd.f32 %v8710_v26, %v662_v3  ;;  %v661_v13 = vmul.f32 %v8706_v6, %v618_v35  ;;  %v624_v40 = vmul.f32 %v7982_v63, %v8644_v12  ;;  %v7948_v35 = vld [vmem:[#allocation7 + $0x254] ss:$24 sps:$4 sm:$0xff]  }
 0x19c   : > { %1545 = vmatpush1.bf16.msra.mxu0 %v7922_v58  ;;  %7702 = vmatpush1.bf16.msra.mxu1 %v7922_v58  ;;  %v623_v16 = vmul.f32 %v7984_v27, %v8641_v49  ;;  %v7939_v49 = vld [vmem:[#allocation7 + $0x2e4] ss:$24 sps:$4 sm:$0xff]   ;;  %v706_v8 = vadd.f32 %v8714_v14, %v663_v9  ;;  %v622_v43 = vmul.f32 %v7984_v27, %v8638_v48 }
 0x19d   : > { %1546 = vmatprep.subr.bf16.mxu0 %v7927_v53  ;;  %7687 = vmatprep.subr.bf16.mxu1 %v7927_v53  ;;  %v8803_v1 = vpack.c.bf16 %v707_v34, %v705_v36  ;;  %v668_v23 = vmul.f32 %v8704_v5, %v625_v37  ;;  %v7934_v53 = vld [vmem:[#allocation7 + $0x10] ss:$24 sps:$4 sm:$0xff]   ;;  %v704_v41 = vadd.f32 %v8714_v14, %v661_v13  ;;  %v7951_v36 = vld [vmem:[#allocation7 + $0x224] ss:$24 sps:$4 sm:$0xff]  }
 0x19e   : > { %v666_v51 = vmul.f32 %v8704_v5, %v623_v16  ;;  %v667_v55 = vmul.f32 %v8706_v6, %v624_v40 }
 0x19f   : > { %1365 = vmatmul.mubr.bf16.gmra.mxu0 %v8777_v39  ;;  %1478 = vmatmul.mubr.bf16.gmra.mxu1 %v8777_v39  ;;  %v7986_v58 = vpop.eup %7985  ;;  %v711_v15 = vadd.f32 %v8710_v26, %v668_v23  ;;  %v8817_v46 = vpack.c.bf16 %v706_v8, %v704_v41  ;;  %v7949_v23 = vld [vmem:[#allocation7 + $0x220] ss:$24 sps:$4 sm:$0xff]  }
 0x1a0   : > { %1547 = vmatpush1.bf16.msra.mxu0 %v7925_v54  ;;  %7703 = vmatpush1.bf16.msra.mxu1 %v7925_v54  ;;  %v629_v57 = vmul.f32 %v7986_v58, %v8667_v10  ;;  %v709_v12 = vadd.f32 %v8710_v26, %v666_v51  ;;  %v665_v10 = vmul.f32 %v8706_v6, %v622_v43  ;;  %v7952_v51 = vld [vmem:[#allocation7 + $0x1f0] ss:$24 sps:$4 sm:$0xff]   ;;  %v7955_v41 = vld [vmem:[#allocation7 + $0x1c0] ss:$24 sps:$4 sm:$0xff]   ;;  %v7960_v43 = vld [vmem:[#allocation7 + $0x194] ss:$24 sps:$4 sm:$0xff]  }
 0x1a1   : > { %1374 = vmatprep.mubr.bf16.mxu0 %v8783_v52  ;;  %1487 = vmatprep.mubr.bf16.mxu1 %v8783_v52  ;;  %v7988_v11 = vpop.eup %7987  ;;  %v710_v2 = vadd.f32 %v8714_v14, %v667_v55  ;;  %v628_v63 = vmul.f32 %v7986_v58, %v8664_v21 }
 0x1a2   : > { %1548 = vmatprep.subr.bf16.mxu0 %v7930_v31  ;;  %7688 = vmatprep.subr.bf16.mxu1 %v7930_v31  ;;  %v627_v54 = vmul.f32 %v7988_v11, %v8661_v0  ;;  %v8823_v48 = vpack.c.bf16 %v711_v15, %v709_v12  ;;  %v672_v0 = vmul.f32 %v8704_v5, %v629_v57 }
 0x1a3   : > { %v708_v3 = vadd.f32 %v8714_v14, %v665_v10  ;;  %v671_v21 = vmul.f32 %v8706_v6, %v628_v63 }
 0x1a4   : > { %1549 = vmatpush1.bf16.msra.mxu0 %v7928_v32  ;;  %7704 = vmatpush1.bf16.msra.mxu1 %v7928_v32  ;;  %v7990_v61 = vpop.eup %7989  ;;  %v670_v31 = vmul.f32 %v8704_v5, %v627_v54  ;;  %v715_v18 = vadd.f32 %v8710_v26, %v672_v0 }
 0x1a5   : > { %1550 = vmatprep.subr.bf16.mxu0 %v7933_v4  ;;  %7689 = vmatprep.subr.bf16.mxu1 %v7933_v4  ;;  %v7992_v32 = vpop.eup %7991  ;;  %v626_v4 = vmul.f32 %v7988_v11, %v8658_v19  ;;  %v633_v7 = vmul.f32 %v7990_v61, %v8687_v50  ;;  %v8837_v30 = vpack.c.bf16 %v710_v2, %v708_v3 }
 0x1a6   : > { %v713_v27 = vadd.f32 %v8710_v26, %v670_v31  ;;  %v631_v34 = vmul.f32 %v7992_v32, %v8681_v42  ;;  %v714_v42 = vadd.f32 %v8714_v14, %v671_v21  ;;  %v632_v16 = vmul.f32 %v7990_v61, %v8684_v47 }
 0x1a7   : > { %1375 = vmatmul.mubr.bf16.gmra.mxu0 %v8797_v17  ;;  %1488 = vmatmul.mubr.bf16.gmra.mxu1 %v8797_v17  ;;  %v669_v50 = vmul.f32 %v8706_v6, %v626_v4  ;;  %v676_v37 = vmul.f32 %v8704_v5, %v633_v7  ;;  %v630_v13 = vmul.f32 %v7992_v32, %v8678_v25  ;;  %v7957_v25 = vld [vmem:[#allocation7 + $0x1c4] ss:$24 sps:$4 sm:$0xff]  }
 0x1a8   : > { %1551 = vmatpush1.bf16.msra.mxu0 %v7931_v59  ;;  %7705 = vmatpush1.bf16.msra.mxu1 %v7931_v59  ;;  %v8843_v19 = vpack.c.bf16 %v715_v18, %v713_v27  ;;  %v7946_v59 = vld [vmem:[#allocation7 + $0x250] ss:$24 sps:$4 sm:$0xff]   ;;  %v674_v9 = vmul.f32 %v8704_v5, %v631_v34  ;;  %v675_v5 = vmul.f32 %v8706_v6, %v632_v16 }
 0x1a9   : > { %1384 = vmatprep.mubr.bf16.mxu0 %v8803_v1  ;;  %1497 = vmatprep.mubr.bf16.mxu1 %v8803_v1  ;;  %v719_v58 = vadd.f32 %v8710_v26, %v676_v37  ;;  %v673_v8 = vmul.f32 %v8706_v6, %v630_v13  ;;  %v7958_v6 = vld [vmem:[#allocation7 + $0x190] ss:$24 sps:$4 sm:$0xff]  }
 0x1aa   : > { %1552 = vmatprep.subr.bf16.mxu0 %v7936_v22  ;;  %7690 = vmatprep.subr.bf16.mxu1 %v7936_v22  ;;  %v712_v22 = vadd.f32 %v8714_v14, %v669_v50  ;;  %v717_v11 = vadd.f32 %v8710_v26, %v674_v9  ;;  %v718_v40 = vadd.f32 %v8714_v14, %v675_v5 }
 0x1ab   : > { %v716_v26 = vadd.f32 %v8714_v14, %v673_v8  ;;  %v8222_v14 = vmov 1983009808  }
 0x1ac   : > { %1553 = vmatpush1.bf16.msra.mxu0 %v7934_v53  ;;  %7706 = vmatpush1.bf16.msra.mxu1 %v7934_v53  ;;  %v732_v53 = vpack.c.bf16 %v714_v42, %v712_v22  ;;  %v735_v47 = vpack.c.bf16 %v719_v58, %v717_v11 }
 0x1ad   : > { %1554 = vmatprep.subr.bf16.mxu0 %v7939_v49  ;;  %7691 = vmatprep.subr.bf16.mxu1 %v7939_v49  ;;  %v7954_v49 = vld [vmem:[#allocation7 + $0x1f4] ss:$24 sps:$4 sm:$0xff]   ;;  %v734_v15 = vpack.c.bf16 %v718_v40, %v716_v26 }
 0x1af   : > { %1385 = vmatmul.mubr.bf16.gmra.mxu0 %v8817_v46  ;;  %1498 = vmatmul.mubr.bf16.gmra.mxu1 %v8817_v46 }
 0x1b0   : > { %1555 = vmatpush2.bf16.msra.mxu0 %v7937_v56  ;;  %7707 = vmatpush2.bf16.msra.mxu1 %v7937_v56 }
 0x1b1   : > { %1394 = vmatprep.mubr.bf16.mxu0 %v8823_v48  ;;  %1507 = vmatprep.mubr.bf16.mxu1 %v8823_v48 }
 0x1b2   : > { %1556 = vmatprep.subr.bf16.mxu0 %v7942_v29  ;;  %7692 = vmatprep.subr.bf16.mxu1 %v7942_v29 }
 0x1b4   : > { %1557 = vmatpush2.bf16.msra.mxu0 %v7940_v62  ;;  %7708 = vmatpush2.bf16.msra.mxu1 %v7940_v62 }
 0x1b5   : > { %1558 = vmatprep.subr.bf16.mxu0 %v7945_v24  ;;  %7693 = vmatprep.subr.bf16.mxu1 %v7945_v24 }
 0x1b7   : > { %1395 = vmatmul.mubr.bf16.gmra.mxu0 %v8837_v30  ;;  %1508 = vmatmul.mubr.bf16.gmra.mxu1 %v8837_v30 }
 0x1b8   : > { %1559 = vmatpush2.bf16.msra.mxu0 %v7943_v20  ;;  %7709 = vmatpush2.bf16.msra.mxu1 %v7943_v20 }
 0x1b9   : > { %1404 = vmatprep.mubr.bf16.mxu0 %v8843_v19  ;;  %1517 = vmatprep.mubr.bf16.mxu1 %v8843_v19 }
 0x1ba   : > { %1560 = vmatprep.subr.bf16.mxu0 %v7948_v35  ;;  %7694 = vmatprep.subr.bf16.mxu1 %v7948_v35 }
 0x1bc   : > { %1561 = vmatpush2.bf16.msra.mxu0 %v7946_v59  ;;  %7710 = vmatpush2.bf16.msra.mxu1 %v7946_v59 }
 0x1bd   : > { %1562 = vmatprep.subr.bf16.mxu0 %v7951_v36  ;;  %7695 = vmatprep.subr.bf16.mxu1 %v7951_v36 }
 0x1bf   : > { %1405 = vmatmul.mubr.bf16.gmra.mxu0 %v732_v53  ;;  %1518 = vmatmul.mubr.bf16.gmra.mxu1 %v732_v53 }
 0x1c0   : > { %1563 = vmatpush2.bf16.msra.mxu0 %v7949_v23  ;;  %7711 = vmatpush2.bf16.msra.mxu1 %v7949_v23 }
 0x1c1   : > { %1414 = vmatprep.mubr.bf16.mxu0 %v735_v47  ;;  %1527 = vmatprep.mubr.bf16.mxu1 %v735_v47 }
 0x1c2   : > { %1564 = vmatprep.subr.bf16.mxu0 %v7954_v49  ;;  %7696 = vmatprep.subr.bf16.mxu1 %v7954_v49 }
 0x1c4   : > { %1565 = vmatpush2.bf16.msra.mxu0 %v7952_v51  ;;  %7712 = vmatpush2.bf16.msra.mxu1 %v7952_v51 }
 0x1c5   : > { %1566 = vmatprep.subr.bf16.mxu0 %v7957_v25  ;;  %7697 = vmatprep.subr.bf16.mxu1 %v7957_v25 }
 0x1c7   : > { %1415 = vmatmul.mubr.bf16.gmra.mxu0 %v734_v15  ;;  %1528 = vmatmul.mubr.bf16.gmra.mxu1 %v734_v15 }
 0x1c8   : > { %1567 = vmatpush2.bf16.msra.mxu0 %v7955_v41  ;;  %7713 = vmatpush2.bf16.msra.mxu1 %v7955_v41 }
 0x1c9   : > { %1570 = vmatprep.mubr.bf16.mxu0 %v8729_v33  ;;  %1610 = vmatprep.mubr.bf16.mxu1 %v8803_v1  ;;  %v1771_v33 = vunpack.c.l.s4 %v8222_v14 }
 0x1ca   : > { %1568 = vmatprep.subr.bf16.mxu0 %v7960_v43  ;;  %7698 = vmatprep.subr.bf16.mxu1 %v7960_v43 }
 0x1cc   : > { %1569 = vmatpush2.bf16.msra.mxu0 %v7958_v6  ;;  %7714 = vmatpush2.bf16.msra.mxu1 %v7958_v6 }
 0x1cf   : > { %1571 = vmatmul.mubr.bf16.vlgmr.msra.gmra.mxu0 %v8731_v38  ;;  %1611 = vmatmul.mubr.bf16.vlgmr.msra.gmra.mxu1 %v8817_v46  ;;  %v8223_v38 = vmov 1934713408  }
 0x1d0   : > { %1580 = vmatprep.mubr.bf16.mxu0 %v8746_v28  ;;  %1620 = vmatprep.mubr.bf16.mxu1 %v8823_v48  ;;  %v1786_v28 = vunpack.c.l.s4 %v8223_v38  ;;  %v8224_v48 = vmov 0  }
 0x1d1   : > { %v8878_v10 = vpack.i.b16 %v8224_v48, %v8224_v48 }
 0x1d2   : > { %v1787_v54 = vunpack.c.0.s8 %v1786_v28 }
 0x1d4   : > { %v8881_v62 = vsub.s32 %v1787_v54, %v8697_v44 }
 0x1d7   : > { %1581 = vmatmul.mubr.bf16.gmra.mxu0 %v8756_v45  ;;  %1621 = vmatmul.mubr.bf16.gmra.mxu1 %v8837_v30 }
 0x1d8   : > { %1590 = vmatprep.mubr.bf16.mxu0 %v8763_v60  ;;  %1630 = vmatprep.mubr.bf16.mxu1 %v8843_v19  ;;  %v1772_v60 = vunpack.c.0.s8 %v1771_v33 }
 0x1da   : > { %v8874_v61 = vsub.s32 %v1772_v60, %v8697_v44 }
 0x1df   : > { %1591 = vmatmul.mubr.bf16.gmra.mxu0 %v8777_v39  ;;  %1631 = vmatmul.mubr.bf16.gmra.mxu1 %v732_v53 }
 0x1e0   : > { %1600 = vmatprep.mubr.bf16.mxu0 %v8783_v52  ;;  %1640 = vmatprep.mubr.bf16.mxu1 %v735_v47 }
 0x1e7   : > { %1601 = vmatmul.mubr.bf16.gmra.mxu0 %v8797_v17  ;;  %1641 = vmatmul.mubr.bf16.gmra.mxu1 %v734_v15 }
 0x24f   : > { %v1346_v45 = vpop.f32.mrf.mxu0  ;;  %v1459_v1 = vpop.f32.mrf.mxu1 }
 0x251   : > { %v1348_v57 = vpop.f32.mrf.mxu0  ;;  %v1461_v56 = vpop.f32.mrf.mxu1 }
 0x253   : > { %v1350_v46 = vpop.f32.mrf.mxu0  ;;  %v1463_v12 = vpop.f32.mrf.mxu1 }
 0x254   : > { %v1651_v39 = vpack.c.bf16 %v1350_v46, %v1346_v45  ;;  %v1653_v55 = vpack.c.bf16 %v1463_v12, %v1459_v1 }
 0x255   : > { %v1352_v29 = vpop.f32.mrf.mxu0  ;;  %v1465_v52 = vpop.f32.mrf.mxu1 }
 0x256   : > { %v1652_v17 = vpack.c.bf16 %v1352_v29, %v1348_v57  ;;  %v1654_v0 = vpack.c.bf16 %v1465_v52, %v1461_v56  ;;  %v1703_v31 = vshrl.u32 %v1651_v39, 16  ;;  %v2557_v3 = vshrl.u32 %v1653_v55, 16 }
 0x257   : > { %v8883_v18 = vpop.f32.mrf.mxu0  ;;  %v8887_v27 = vpop.f32.mrf.mxu1 }
 0x258   : > { %v1701_v24 = vpack.i.b16 %v1652_v17, %v1651_v39  ;;  %v1704_v2 = vshrl.u32 %v1652_v17, 16  ;;  %v2555_v63 = vpack.i.b16 %v1654_v0, %v1653_v55  ;;  %v2558_v32 = vshrl.u32 %v1654_v0, 16 }
 0x259   : > { %v8901_v9 = vpop.f32.mrf.mxu0  ;;  %v8907_v23 = vpop.f32.mrf.mxu1 }
 0x25a   : > { %v1705_v4 = vpack.i.b16 %v1704_v2, %v1703_v31  ;;  %v1769_v7 = vcombine.high %v1701_v24, %v8878_v10  ;;  %v1776_v20 = vrot.slane %v1701_v24, %v8874_v61  ;;  %v2559_v30 = vpack.i.b16 %v2558_v32, %v2557_v3 }
 0x25b   : > { %v2617_v21 = vcombine.high %v2555_v63, %v8878_v10  ;;  %v2624_v44 = vrot.slane %v2555_v63, %v8874_v61  ;;  %v8919_v43 = vpop.f32.mrf.mxu0  ;;  %v8923_v28 = vpop.f32.mrf.mxu1 }
 0x25c   : > { %v1783_v34 = vrot.slane %v1769_v7, %v8874_v61  ;;  %v1784_v35 = vcombine.high %v1776_v20, %v8224_v48  ;;  %v1791_v19 = vrot.slane %v1776_v20, %v8881_v62  ;;  %v1818_v50 = vcombine.high %v1705_v4, %v8878_v10 }
 0x25d   : > { %v1825_v37 = vrot.slane %v1705_v4, %v8874_v61  ;;  %v2631_v59 = vrot.slane %v2617_v21, %v8874_v61  ;;  %v2632_v36 = vcombine.high %v2624_v44, %v8224_v48  ;;  %v8899_v42 = vrot.slane %v2624_v44, %v8881_v62  ;;  %v1362_v17 = vpop.f32.mrf.mxu0  ;;  %v1475_v63 = vpop.f32.mrf.mxu1 }
 0x25e   : > { %v1798_v16 = vrot.slane %v1784_v35, %v8881_v62  ;;  %v1799_v22 = vcombine.high %v1783_v34, %v8224_v48  ;;  %v1806_v58 = vrot.slane %v1783_v34, %v8881_v62  ;;  %v1832_v13 = vrot.slane %v1818_v50, %v8874_v61 }
 0x25f   : > { %v1833_v53 = vcombine.high %v1825_v37, %v8224_v48  ;;  %v1840_v11 = vrot.slane %v1825_v37, %v8881_v62  ;;  %v2646_v5 = vrot.slane %v2632_v36, %v8881_v62  ;;  %v2647_v49 = vcombine.high %v2631_v59, %v8224_v48  ;;  %v1366_v37 = vpop.f32.mrf.mxu0 }
 0x260   : > { %v1813_v47 = vrot.slane %v1799_v22, %v8881_v62  ;;  %v1848_v8 = vcombine.high %v1832_v13, %v8224_v48  ;;  %v1855_v51 = vrot.slane %v1832_v13, %v8881_v62  ;;  %v4249_v25 = vcombine.low %v1791_v19, %v1798_v16 }
 0x261   : > { %v1847_v40 = vrot.slane %v1833_v53, %v8881_v62  ;;  %v7476_v26 = vcombine.high %v1791_v19, %v1798_v16  ;;  %v2654_v41 = vrot.slane %v2631_v59, %v8881_v62  ;;  %v2661_v15 = vrot.slane %v2647_v49, %v8881_v62 }
 0x262   : > { %v1862_v6 = vrot.slane %v1848_v8, %v8881_v62  ;;  %v4256_v14 = vrot.slane %v4249_v25, %v8874_v61  ;;  %v4265_v33 = vcombine.low %v1806_v58, %v1813_v47  ;;  %v7477_v38 = vcombine.high %v1806_v58, %v1813_v47  ;;  %v1479_v58 = vpop.f32.mrf.mxu1 }
 0x263   : > { %v4264_v45 = vrot.slane %v7476_v26, %v8874_v61  ;;  %v4298_v1 = vcombine.low %v1840_v11, %v1847_v40  ;;  %v7478_v57 = vcombine.high %v1840_v11, %v1847_v40  ;;  %v2666_v56 = vcombine.high %v2559_v30, %v8878_v10 }
 0x264   : > { %v4272_v60 = vrot.slane %v4265_v33, %v8874_v61  ;;  %v4280_v54 = vrot.slane %v7477_v38, %v8874_v61  ;;  %v4314_v46 = vcombine.low %v1855_v51, %v1862_v6  ;;  %v7479_v12 = vcombine.high %v1855_v51, %v1862_v6  ;;  %v8955_v6 = vpop.f32.mrf.mxu0  ;;  %v8958_v38 = vpop.f32.mrf.mxu1 }
 0x265   : > { %v4281_v39 = vcombine.low %v4256_v14, %v4264_v45  ;;  %v4305_v55 = vrot.slane %v4298_v1, %v8874_v61  ;;  %v4313_v29 = vrot.slane %v7478_v57, %v8874_v61  ;;  %v2673_v52 = vrot.slane %v2559_v30, %v8874_v61 }
 0x266   : > { %v4289_v0 = vcombine.low %v4272_v60, %v4280_v54  ;;  %v4321_v31 = vrot.slane %v4314_v46, %v8874_v61  ;;  %v4329_v24 = vrot.slane %v7479_v12, %v8874_v61  ;;  %v2680_v2 = vrot.slane %v2666_v56, %v8874_v61 }
 0x267   : > { %v4288_v32 = vrot.slane %v4281_v39, %v8881_v62  ;;  %v4330_v3 = vcombine.low %v4305_v55, %v4313_v29  ;;  %v2681_v4 = vcombine.high %v2673_v52, %v8224_v48  ;;  %v2688_v7 = vrot.slane %v2673_v52, %v8881_v62 }
 0x268   : > { %v4296_v20 = vrot.slane %v4289_v0, %v8881_v62  ;;  %v4338_v21 = vcombine.low %v4321_v31, %v4329_v24  ;;  %v2696_v30 = vcombine.high %v2680_v2, %v8224_v48  ;;  %v2703_v44 = vrot.slane %v2680_v2, %v8881_v62  ;;  %v1370_v0 = vpop.f32.mrf.mxu0  ;;  %v1483_v2 = vpop.f32.mrf.mxu1 }
 0x269   : > { %v4337_v34 = vrot.slane %v4330_v3, %v8881_v62  ;;  %v2695_v35 = vrot.slane %v2681_v4, %v8881_v62  ;;  %v5209_v19 = vcombine.low %v8899_v42, %v2646_v5  ;;  %v7540_v50 = vcombine.high %v8899_v42, %v2646_v5 }
 0x26a   : > { %v4297_v59 = vcombine.low %v4288_v32, %v4296_v20  ;;  %v4345_v36 = vrot.slane %v4338_v21, %v8881_v62  ;;  %v2710_v16 = vrot.slane %v2696_v30, %v8881_v62  ;;  %v5225_v22 = vcombine.low %v2654_v41, %v2661_v15 }
 0x26b   : > { %v5216_v13 = vrot.slane %v5209_v19, %v8874_v61  ;;  %v5224_v53 = vrot.slane %v7540_v50, %v8874_v61  ;;  %v7541_v11 = vcombine.high %v2654_v41, %v2661_v15  ;;  %v5258_v49 = vcombine.low %v2688_v7, %v2695_v35 }
 0x26c   : > { %v4346_v47 = vcombine.low %v4337_v34, %v4345_v36  ;;  %v5036_v8 = vshrl.u32 %v4297_v59, 16  ;;  %v5232_v42 = vrot.slane %v5225_v22, %v8874_v61  ;;  %v7542_v5 = vcombine.high %v2688_v7, %v2695_v35 }
 0x26d   : > { %v5240_v51 = vrot.slane %v7541_v11, %v8874_v61  ;;  %v5241_v25 = vcombine.low %v5216_v13, %v5224_v53  ;;  %v5265_v40 = vrot.slane %v5258_v49, %v8874_v61  ;;  %v5274_v26 = vcombine.low %v2703_v44, %v2710_v16 }
 0x26e   : > { %v5035_v14 = vpack.i.b16 %v4346_v47, %v4297_v59  ;;  %v5037_v33 = vshrl.u32 %v4346_v47, 16  ;;  %v5273_v41 = vrot.slane %v7542_v5, %v8874_v61  ;;  %v7543_v15 = vcombine.high %v2703_v44, %v2710_v16 }
 0x26f   : > { %v5248_v45 = vrot.slane %v5241_v25, %v8881_v62  ;;  %v5249_v1 = vcombine.low %v5232_v42, %v5240_v51  ;;  %v5281_v57 = vrot.slane %v5274_v26, %v8874_v61  ;;  %v1657_v56 = vpack.c.bf16 %v8919_v43, %v8883_v18 }
 0x270   : > { %v5038_v60 = vpack.i.b16 %v5037_v33, %v5036_v8  ;;  %v7508_v54 = vcombine.low %v5035_v14, %v5035_v14  ;;  %v7509_v46 = vcombine.high %v5035_v14, %v5035_v14  ;;  %v5289_v12 = vrot.slane %v7543_v15, %v8874_v61 }
 0x271   : > { %v5256_v39 = vrot.slane %v5249_v1, %v8881_v62  ;;  %v5290_v55 = vcombine.low %v5265_v40, %v5273_v41  ;;  %v1717_v29 = vshrl.u32 %v1657_v56, 16  ;;  %v1659_v52 = vpack.c.bf16 %v8923_v28, %v8887_v27 }
 0x272   : > { %v7524_v31 = vcombine.low %v5038_v60, %v5038_v60  ;;  %v7525_v24 = vcombine.high %v5038_v60, %v5038_v60  ;;  %5177 = vst [vmem:[%s8969_s9] sm:$0xf] %v7508_v54  ;;  %5178 = vst [vmem:[%s8969_s9 + $0x4] sm:$0xf] %v7509_v46  ;;  %v5298_v18 = vcombine.low %v5281_v57, %v5289_v12 }
 0x273   : > { %v1658_v43 = vpack.c.bf16 %v1362_v17, %v8901_v9  ;;  %v5257_v32 = vcombine.low %v5248_v45, %v5256_v39  ;;  %v5297_v3 = vrot.slane %v5290_v55, %v8881_v62  ;;  %v2565_v4 = vshrl.u32 %v1659_v52, 16 }
 0x274   : > { %v1660_v27 = vpack.c.bf16 %v1475_v63, %v8907_v23  ;;  %5193 = vst [vmem:[%s8969_s9 + $0x40] sm:$0xf] %v7524_v31  ;;  %5194 = vst [vmem:[%s8969_s9 + $0x44] sm:$0xf] %v7525_v24  ;;  %v5305_v28 = vrot.slane %v5298_v18, %v8881_v62  ;;  %v8979_v21 = vpack.c.bf16 %v1370_v0, %v1366_v37 }
 0x275   : > { %v1715_v7 = vpack.i.b16 %v1658_v43, %v1657_v56  ;;  %v1718_v20 = vshrl.u32 %v1658_v43, 16  ;;  %v5996_v30 = vshrl.u32 %v5257_v32, 16  ;;  %v8981_v35 = vpack.c.bf16 %v1483_v2, %v1479_v58 }
 0x276   : > { %v2563_v44 = vpack.i.b16 %v1660_v27, %v1659_v52  ;;  %v2566_v34 = vshrl.u32 %v1660_v27, 16  ;;  %v5306_v9 = vcombine.low %v5297_v3, %v5305_v28  ;;  %v1725_v37 = vshrl.u32 %v8979_v21, 16 }
 0x277   : > { %v1719_v17 = vpack.i.b16 %v1718_v20, %v1717_v29  ;;  %v1867_v19 = vcombine.high %v1715_v7, %v8878_v10  ;;  %v1874_v50 = vrot.slane %v1715_v7, %v8874_v61 }
 0x278   : > { %v8985_v23 = vpack.i.b16 %v2566_v34, %v2565_v4  ;;  %v2715_v63 = vcombine.high %v2563_v44, %v8878_v10  ;;  %v2722_v59 = vrot.slane %v2563_v44, %v8874_v61  ;;  %v5995_v36 = vpack.i.b16 %v5306_v9, %v5257_v32 }
 0x279   : > { %v5997_v16 = vshrl.u32 %v5306_v9, 16  ;;  %v1881_v22 = vrot.slane %v1867_v19, %v8874_v61  ;;  %v1882_v58 = vcombine.high %v1874_v50, %v8224_v48  ;;  %v1889_v13 = vrot.slane %v1874_v50, %v8881_v62 }
 0x27a   : > { %v1916_v53 = vcombine.high %v1719_v17, %v8878_v10  ;;  %v1923_v11 = vrot.slane %v1719_v17, %v8874_v61  ;;  %v2729_v49 = vrot.slane %v2715_v63, %v8874_v61  ;;  %v7572_v8 = vcombine.low %v5995_v36, %v5995_v36 }
 0x27b   : > { %v5998_v47 = vpack.i.b16 %v5997_v16, %v5996_v30  ;;  %v7573_v42 = vcombine.high %v5995_v36, %v5995_v36  ;;  %v1896_v5 = vrot.slane %v1882_v58, %v8881_v62  ;;  %v1897_v51 = vcombine.high %v1881_v22, %v8224_v48 }
 0x27c   : > { %v1904_v25 = vrot.slane %v1881_v22, %v8881_v62  ;;  %v1930_v40 = vrot.slane %v1916_v53, %v8874_v61  ;;  %v1931_v26 = vcombine.high %v1923_v11, %v8224_v48  ;;  %6137 = vst [vmem:[%s9002_s10] sm:$0xf] %v7572_v8  ;;  %v1938_v41 = vrot.slane %v1923_v11, %v8881_v62 }
 0x27d   : > { %v7588_v14 = vcombine.low %v5998_v47, %v5998_v47  ;;  %v7589_v33 = vcombine.high %v5998_v47, %v5998_v47  ;;  %6138 = vst [vmem:[%s9002_s10 + $0x4] sm:$0xf] %v7573_v42  ;;  %v4347_v15 = vcombine.low %v1889_v13, %v1896_v5  ;;  %v1911_v45 = vrot.slane %v1897_v51, %v8881_v62 }
 0x27e   : > { %v1945_v1 = vrot.slane %v1931_v26, %v8881_v62  ;;  %v1946_v57 = vcombine.high %v1930_v40, %v8224_v48  ;;  %v1953_v56 = vrot.slane %v1930_v40, %v8881_v62  ;;  %v7480_v54 = vcombine.high %v1889_v13, %v1896_v5 }
 0x27f   : > { %6153 = vst [vmem:[%s9002_s10 + $0x40] sm:$0xf] %v7588_v14  ;;  %6154 = vst [vmem:[%s9002_s10 + $0x44] sm:$0xf] %v7589_v33  ;;  %v4354_v60 = vrot.slane %v4347_v15, %v8874_v61  ;;  %v2730_v46 = vcombine.high %v2722_v59, %v8224_v48  ;;  %v2737_v12 = vrot.slane %v2722_v59, %v8881_v62  ;;  %v2573_v14 = vshrl.u32 %v8981_v35, 16 }
 0x280   : > { %v1960_v39 = vrot.slane %v1946_v57, %v8881_v62  ;;  %v4363_v55 = vcombine.low %v1904_v25, %v1911_v45  ;;  %v7481_v29 = vcombine.high %v1904_v25, %v1911_v45  ;;  %v4396_v52 = vcombine.low %v1938_v41, %v1945_v1 }
 0x281   : > { %v4362_v0 = vrot.slane %v7480_v54, %v8874_v61  ;;  %v7482_v31 = vcombine.high %v1938_v41, %v1945_v1  ;;  %v2744_v24 = vrot.slane %v2730_v46, %v8881_v62  ;;  %v2745_v18 = vcombine.high %v2729_v49, %v8224_v48  ;;  %v1372_v54 = vpop.f32.mrf.mxu0 }
 0x282   : > { %v4370_v43 = vrot.slane %v4363_v55, %v8874_v61  ;;  %v4378_v2 = vrot.slane %v7481_v29, %v8874_v61  ;;  %v4403_v32 = vrot.slane %v4396_v52, %v8874_v61  ;;  %v4412_v3 = vcombine.low %v1953_v56, %v1960_v39  ;;  %v1485_v29 = vpop.f32.mrf.mxu1 }
 0x283   : > { %v4379_v4 = vcombine.low %v4354_v60, %v4362_v0  ;;  %v4411_v27 = vrot.slane %v7482_v31, %v8874_v61  ;;  %v7483_v28 = vcombine.high %v1953_v56, %v1960_v39  ;;  %v2752_v7 = vrot.slane %v2729_v49, %v8881_v62 }
 0x284   : > { %v4387_v20 = vcombine.low %v4370_v43, %v4378_v2  ;;  %v4419_v30 = vrot.slane %v4412_v3, %v8874_v61  ;;  %v2759_v44 = vrot.slane %v2745_v18, %v8881_v62  ;;  %v2764_v34 = vcombine.high %v8985_v23, %v8878_v10 }
 0x285   : > { %v4386_v9 = vrot.slane %v4379_v4, %v8881_v62  ;;  %v4427_v17 = vrot.slane %v7483_v28, %v8874_v61  ;;  %v4428_v19 = vcombine.low %v4403_v32, %v4411_v27  ;;  %v2771_v50 = vrot.slane %v8985_v23, %v8874_v61 }
 0x286   : > { %v4394_v63 = vrot.slane %v4387_v20, %v8881_v62  ;;  %v2778_v59 = vrot.slane %v2764_v34, %v8874_v61  ;;  %v5307_v36 = vcombine.low %v2737_v12, %v2744_v24  ;;  %v7544_v16 = vcombine.high %v2737_v12, %v2744_v24 }
 0x287   : > { %v4435_v22 = vrot.slane %v4428_v19, %v8881_v62  ;;  %v4436_v58 = vcombine.low %v4419_v30, %v4427_v17  ;;  %v2779_v13 = vcombine.high %v2771_v50, %v8224_v48  ;;  %v2786_v53 = vrot.slane %v2771_v50, %v8881_v62 }
 0x288   : > { %v4395_v11 = vcombine.low %v4386_v9, %v4394_v63  ;;  %v2794_v49 = vcombine.high %v2778_v59, %v8224_v48  ;;  %v2801_v47 = vrot.slane %v2778_v59, %v8881_v62  ;;  %v5314_v23 = vrot.slane %v5307_v36, %v8874_v61 }
 0x289   : > { %v4443_v8 = vrot.slane %v4436_v58, %v8881_v62  ;;  %v2793_v42 = vrot.slane %v2779_v13, %v8881_v62  ;;  %v5322_v5 = vrot.slane %v7544_v16, %v8874_v61  ;;  %v5323_v51 = vcombine.low %v2752_v7, %v2759_v44  ;;  %v9070_v58 = vpop.f32.mrf.mxu0 }
 0x28a   : > { %v5042_v25 = vshrl.u32 %v4395_v11, 16  ;;  %v2808_v40 = vrot.slane %v2794_v49, %v8881_v62  ;;  %v7545_v26 = vcombine.high %v2752_v7, %v2759_v44  ;;  %v1664_v32 = vpack.c.bf16 %v1372_v54, %v8955_v6 }
 0x28b   : > { %v4444_v33 = vcombine.low %v4435_v22, %v4443_v8  ;;  %v5330_v41 = vrot.slane %v5323_v51, %v8874_v61  ;;  %v5339_v15 = vcombine.low %v5314_v23, %v5322_v5  ;;  %v5356_v45 = vcombine.low %v2786_v53, %v2793_v42 }
 0x28c   : > { %v5338_v1 = vrot.slane %v7545_v26, %v8874_v61  ;;  %v7546_v57 = vcombine.high %v2786_v53, %v2793_v42  ;;  %v5372_v56 = vcombine.low %v2801_v47, %v2808_v40  ;;  %v7547_v60 = vcombine.high %v2801_v47, %v2808_v40 }
 0x28d   : > { %v5041_v46 = vpack.i.b16 %v4444_v33, %v4395_v11  ;;  %v5043_v12 = vshrl.u32 %v4444_v33, 16  ;;  %v5346_v39 = vrot.slane %v5339_v15, %v8881_v62  ;;  %v5363_v55 = vrot.slane %v5356_v45, %v8874_v61  ;;  %v9082_v33 = vpop.f32.mrf.mxu0 }
 0x28e   : > { %v5347_v52 = vcombine.low %v5330_v41, %v5338_v1  ;;  %v5371_v0 = vrot.slane %v7546_v57, %v8874_v61  ;;  %v5379_v31 = vrot.slane %v5372_v56, %v8874_v61  ;;  %v5387_v24 = vrot.slane %v7547_v60, %v8874_v61 }
 0x28f   : > { %v5044_v18 = vpack.i.b16 %v5043_v12, %v5042_v25  ;;  %v7510_v43 = vcombine.low %v5041_v46, %v5041_v46  ;;  %v7511_v2 = vcombine.high %v5041_v46, %v5041_v46  ;;  %v1666_v28 = vpack.c.bf16 %v1485_v29, %v8958_v38 }
 0x290   : > { %v5354_v3 = vrot.slane %v5347_v52, %v8881_v62  ;;  %v5388_v4 = vcombine.low %v5363_v55, %v5371_v0  ;;  %v5396_v27 = vcombine.low %v5379_v31, %v5387_v24  ;;  %v1723_v30 = vpack.i.b16 %v1664_v32, %v8979_v21  ;;  %v1380_v31 = vpop.f32.mrf.mxu0 }
 0x291   : > { %v7526_v7 = vcombine.low %v5044_v18, %v5044_v18  ;;  %v7527_v20 = vcombine.high %v5044_v18, %v5044_v18  ;;  %5179 = vst [vmem:[%s8969_s9 + $0x8] sm:$0xf] %v7510_v43  ;;  %5180 = vst [vmem:[%s8969_s9 + $0xc] sm:$0xf] %v7511_v2  ;;  %v1726_v44 = vshrl.u32 %v1664_v32, 16  ;;  %v2571_v6 = vpack.i.b16 %v1666_v28, %v8981_v35 }
 0x292   : > { %v5355_v34 = vcombine.low %v5346_v39, %v5354_v3  ;;  %v5395_v9 = vrot.slane %v5388_v4, %v8881_v62  ;;  %v5403_v17 = vrot.slane %v5396_v27, %v8881_v62  ;;  %v1965_v38 = vcombine.high %v1723_v30, %v8878_v10 }
 0x293   : > { %5195 = vst [vmem:[%s8969_s9 + $0x48] sm:$0xf] %v7526_v7  ;;  %5196 = vst [vmem:[%s8969_s9 + $0x4c] sm:$0xf] %v7527_v20  ;;  %v1727_v19 = vpack.i.b16 %v1726_v44, %v1725_v37  ;;  %v1972_v50 = vrot.slane %v1723_v30, %v8874_v61  ;;  %v2574_v63 = vshrl.u32 %v1666_v28, 16  ;;  %v2813_v16 = vcombine.high %v2571_v6, %v8878_v10  ;;  %v1489_v30 = vpop.f32.mrf.mxu1 }
 0x294   : > { %v5404_v59 = vcombine.low %v5395_v9, %v5403_v17  ;;  %v6002_v36 = vshrl.u32 %v5355_v34, 16  ;;  %v2820_v22 = vrot.slane %v2571_v6, %v8874_v61  ;;  %v1979_v35 = vrot.slane %v1965_v38, %v8874_v61  ;;  %v1382_v6 = vpop.f32.mrf.mxu0 }
 0x295   : > { %v1980_v13 = vcombine.high %v1972_v50, %v8224_v48  ;;  %v1987_v21 = vrot.slane %v1972_v50, %v8881_v62  ;;  %v2014_v37 = vcombine.high %v1727_v19, %v8878_v10  ;;  %v2021_v49 = vrot.slane %v1727_v19, %v8874_v61 }
 0x296   : > { %v6001_v53 = vpack.i.b16 %v5404_v59, %v5355_v34  ;;  %v6003_v11 = vshrl.u32 %v5404_v59, 16  ;;  %v2575_v47 = vpack.i.b16 %v2574_v63, %v2573_v14  ;;  %v1995_v8 = vcombine.high %v1979_v35, %v8224_v48 }
 0x297   : > { %v1994_v23 = vrot.slane %v1980_v13, %v8881_v62  ;;  %v2002_v42 = vrot.slane %v1979_v35, %v8881_v62  ;;  %v2028_v5 = vrot.slane %v2014_v37, %v8874_v61  ;;  %v2029_v26 = vcombine.high %v2021_v49, %v8224_v48 }
 0x298   : > { %v6004_v51 = vpack.i.b16 %v6003_v11, %v6002_v36  ;;  %v7574_v25 = vcombine.low %v6001_v53, %v6001_v53  ;;  %v7575_v40 = vcombine.high %v6001_v53, %v6001_v53  ;;  %v2009_v14 = vrot.slane %v1995_v8, %v8881_v62  ;;  %v1491_v11 = vpop.f32.mrf.mxu1 }
 0x299   : > { %v2036_v41 = vrot.slane %v2021_v49, %v8881_v62  ;;  %v2044_v15 = vcombine.high %v2028_v5, %v8224_v48  ;;  %v2051_v45 = vrot.slane %v2028_v5, %v8881_v62  ;;  %v2043_v56 = vrot.slane %v2029_v26, %v8881_v62 }
 0x29a   : > { %v7590_v1 = vcombine.low %v6004_v51, %v6004_v51  ;;  %v7591_v57 = vcombine.high %v6004_v51, %v6004_v51  ;;  %6139 = vst [vmem:[%s9002_s10 + $0x8] sm:$0xf] %v7574_v25  ;;  %6140 = vst [vmem:[%s9002_s10 + $0xc] sm:$0xf] %v7575_v40  ;;  %v4445_v60 = vcombine.low %v1987_v21, %v1994_v23 }
 0x29b   : > { %v2058_v54 = vrot.slane %v2044_v15, %v8881_v62  ;;  %v7484_v46 = vcombine.high %v1987_v21, %v1994_v23  ;;  %v4461_v12 = vcombine.low %v2002_v42, %v2009_v14  ;;  %v7485_v39 = vcombine.high %v2002_v42, %v2009_v14  ;;  %v1386_v42 = vpop.f32.mrf.mxu0 }
 0x29c   : > { %6155 = vst [vmem:[%s9002_s10 + $0x48] sm:$0xf] %v7590_v1  ;;  %6156 = vst [vmem:[%s9002_s10 + $0x4c] sm:$0xf] %v7591_v57  ;;  %v4452_v55 = vrot.slane %v4445_v60, %v8874_v61  ;;  %v4494_v29 = vcombine.low %v2036_v41, %v2043_v56  ;;  %v7486_v52 = vcombine.high %v2036_v41, %v2043_v56  ;;  %v1493_v56 = vpop.f32.mrf.mxu1 }
 0x29d   : > { %v2827_v0 = vrot.slane %v2813_v16, %v8874_v61  ;;  %v4460_v24 = vrot.slane %v7484_v46, %v8874_v61  ;;  %v4468_v18 = vrot.slane %v4461_v12, %v8874_v61  ;;  %v4476_v43 = vrot.slane %v7485_v39, %v8874_v61  ;;  %v9126_v39 = vpop.f32.mrf.mxu0 }
 0x29e   : > { %v4510_v2 = vcombine.low %v2051_v45, %v2058_v54  ;;  %v4501_v32 = vrot.slane %v4494_v29, %v8874_v61  ;;  %v4509_v3 = vrot.slane %v7486_v52, %v8874_v61  ;;  %v7487_v4 = vcombine.high %v2051_v45, %v2058_v54 }
 0x29f   : > { %v2828_v27 = vcombine.high %v2820_v22, %v8224_v48  ;;  %v4477_v28 = vcombine.low %v4452_v55, %v4460_v24  ;;  %v4485_v7 = vcombine.low %v4468_v18, %v4476_v43  ;;  %v2843_v17 = vcombine.high %v2827_v0, %v8224_v48 }
 0x2a0   : > { %v4517_v20 = vrot.slane %v4510_v2, %v8874_v61  ;;  %v4525_v44 = vrot.slane %v7487_v4, %v8874_v61  ;;  %v4526_v34 = vcombine.low %v4501_v32, %v4509_v3  ;;  %v2835_v50 = vrot.slane %v2820_v22, %v8881_v62  ;;  %v1495_v4 = vpop.f32.mrf.mxu1 }
 0x2a1   : > { %v2842_v9 = vrot.slane %v2828_v27, %v8881_v62  ;;  %v4484_v19 = vrot.slane %v4477_v28, %v8881_v62  ;;  %v4492_v38 = vrot.slane %v4485_v7, %v8881_v62  ;;  %v2862_v63 = vcombine.high %v2575_v47, %v8878_v10 }
 0x2a2   : > { %v4534_v59 = vcombine.low %v4517_v20, %v4525_v44  ;;  %v2850_v36 = vrot.slane %v2827_v0, %v8881_v62  ;;  %v2857_v16 = vrot.slane %v2843_v17, %v8881_v62  ;;  %v2869_v35 = vrot.slane %v2575_v47, %v8874_v61  ;;  %v1390_v20 = vpop.f32.mrf.mxu0 }
 0x2a3   : > { %v4493_v13 = vcombine.low %v4484_v19, %v4492_v38  ;;  %v2876_v21 = vrot.slane %v2862_v63, %v8874_v61  ;;  %v5405_v37 = vcombine.low %v2835_v50, %v2842_v9  ;;  %v7548_v53 = vcombine.high %v2835_v50, %v2842_v9 }
 0x2a4   : > { %v4533_v49 = vrot.slane %v4526_v34, %v8881_v62  ;;  %v4541_v23 = vrot.slane %v4534_v59, %v8881_v62  ;;  %v2877_v22 = vcombine.high %v2869_v35, %v8224_v48  ;;  %v5421_v8 = vcombine.low %v2850_v36, %v2857_v16 }
 0x2a5   : > { %v5048_v5 = vshrl.u32 %v4493_v13, 16  ;;  %v2884_v51 = vrot.slane %v2869_v35, %v8881_v62  ;;  %v2892_v25 = vcombine.high %v2876_v21, %v8224_v48  ;;  %v5412_v47 = vrot.slane %v5405_v37, %v8874_v61 }
 0x2a6   : > { %v4542_v40 = vcombine.low %v4533_v49, %v4541_v23  ;;  %v2891_v26 = vrot.slane %v2877_v22, %v8881_v62  ;;  %v2899_v14 = vrot.slane %v2876_v21, %v8881_v62  ;;  %v5420_v41 = vrot.slane %v7548_v53, %v8874_v61  ;;  %v1499_v23 = vpop.f32.mrf.mxu1 }
 0x2a7   : > { %v2906_v15 = vrot.slane %v2892_v25, %v8881_v62  ;;  %v5428_v45 = vrot.slane %v5421_v8, %v8874_v61  ;;  %v7549_v1 = vcombine.high %v2850_v36, %v2857_v16  ;;  %v1669_v57 = vpack.c.bf16 %v1380_v31, %v9070_v58 }
 0x2a8   : > { %v5047_v60 = vpack.i.b16 %v4542_v40, %v4493_v13  ;;  %v5049_v54 = vshrl.u32 %v4542_v40, 16  ;;  %v5437_v46 = vcombine.low %v5412_v47, %v5420_v41  ;;  %v5454_v12 = vcombine.low %v2884_v51, %v2891_v26 }
 0x2a9   : > { %v5436_v55 = vrot.slane %v7549_v1, %v8874_v61  ;;  %v7550_v29 = vcombine.high %v2884_v51, %v2891_v26  ;;  %v5470_v52 = vcombine.low %v2899_v14, %v2906_v15  ;;  %v7551_v0 = vcombine.high %v2899_v14, %v2906_v15 }
 0x2aa   : > { %v5050_v24 = vpack.i.b16 %v5049_v54, %v5048_v5  ;;  %v7512_v18 = vcombine.low %v5047_v60, %v5047_v60  ;;  %v7513_v43 = vcombine.high %v5047_v60, %v5047_v60  ;;  %v1671_v2 = vpack.c.bf16 %v1493_v56, %v1489_v30  ;;  %v9160_v56 = vpop.f32.mrf.mxu1 }
 0x2ab   : > { %v5445_v58 = vcombine.low %v5428_v45, %v5436_v55  ;;  %v5461_v31 = vrot.slane %v5454_v12, %v8874_v61  ;;  %v5469_v32 = vrot.slane %v7550_v29, %v8874_v61  ;;  %v5477_v3 = vrot.slane %v5470_v52, %v8874_v61 }
 0x2ac   : > { %v7528_v27 = vcombine.low %v5050_v24, %v5050_v24  ;;  %v7529_v28 = vcombine.high %v5050_v24, %v5050_v24  ;;  %5181 = vst [vmem:[%s8969_s9 + $0x10] sm:$0xf] %v7512_v18  ;;  %5182 = vst [vmem:[%s8969_s9 + $0x14] sm:$0xf] %v7513_v43  ;;  %v5485_v7 = vrot.slane %v7551_v0, %v8874_v61  ;;  %v1733_v19 = vshrl.u32 %v1669_v57, 16 }
 0x2ad   : > { %v5444_v44 = vrot.slane %v5437_v46, %v8881_v62  ;;  %v5452_v30 = vrot.slane %v5445_v58, %v8881_v62  ;;  %v5486_v34 = vcombine.low %v5461_v31, %v5469_v32  ;;  %v1670_v9 = vpack.c.bf16 %v1382_v6, %v9082_v33 }
 0x2ae   : > { %5197 = vst [vmem:[%s8969_s9 + $0x50] sm:$0xf] %v7528_v27  ;;  %5198 = vst [vmem:[%s8969_s9 + $0x54] sm:$0xf] %v7529_v28  ;;  %v5494_v17 = vcombine.low %v5477_v3, %v5485_v7  ;;  %v2581_v38 = vshrl.u32 %v1671_v2, 16  ;;  %v1672_v50 = vpack.c.bf16 %v1495_v4, %v1491_v11  ;;  %v9140_v16 = vpack.c.bf16 %v1390_v20, %v1386_v42  ;;  %v1503_v4 = vpop.f32.mrf.mxu1 }
 0x2af   : > { %v5453_v63 = vcombine.low %v5444_v44, %v5452_v30  ;;  %v1731_v59 = vpack.i.b16 %v1670_v9, %v1669_v57  ;;  %v1734_v36 = vshrl.u32 %v1670_v9, 16  ;;  %v5493_v35 = vrot.slane %v5486_v34, %v8881_v62 }
 0x2b0   : > { %v5501_v13 = vrot.slane %v5494_v17, %v8881_v62  ;;  %v2579_v21 = vpack.i.b16 %v1672_v50, %v1671_v2  ;;  %v2582_v37 = vshrl.u32 %v1672_v50, 16  ;;  %v9180_v50 = vpack.c.bf16 %v1503_v4, %v1499_v23 }
 0x2b1   : > { %v6008_v53 = vshrl.u32 %v5453_v63, 16  ;;  %v1735_v49 = vpack.i.b16 %v1734_v36, %v1733_v19  ;;  %v2063_v33 = vcombine.high %v1731_v59, %v8878_v10  ;;  %v2070_v6 = vrot.slane %v1731_v59, %v8874_v61 }
 0x2b2   : > { %v5502_v22 = vcombine.low %v5493_v35, %v5501_v13  ;;  %v9146_v11 = vpack.i.b16 %v2582_v37, %v2581_v38  ;;  %v2911_v8 = vcombine.high %v2579_v21, %v8878_v10  ;;  %v2918_v42 = vrot.slane %v2579_v21, %v8874_v61 }
 0x2b3   : > { %v2077_v5 = vrot.slane %v2063_v33, %v8874_v61  ;;  %v2078_v51 = vcombine.high %v2070_v6, %v8224_v48  ;;  %v2085_v25 = vrot.slane %v2070_v6, %v8881_v62  ;;  %v2112_v47 = vcombine.high %v1735_v49, %v8878_v10 }
 0x2b4   : > { %v6007_v40 = vpack.i.b16 %v5502_v22, %v5453_v63  ;;  %v6009_v26 = vshrl.u32 %v5502_v22, 16  ;;  %v2119_v14 = vrot.slane %v1735_v49, %v8874_v61  ;;  %v2925_v41 = vrot.slane %v2911_v8, %v8874_v61  ;;  %v1392_v49 = vpop.f32.mrf.mxu0 }
 0x2b5   : > { %v2092_v15 = vrot.slane %v2078_v51, %v8881_v62  ;;  %v2093_v45 = vcombine.high %v2077_v5, %v8224_v48  ;;  %v2100_v1 = vrot.slane %v2077_v5, %v8881_v62  ;;  %v2126_v57 = vrot.slane %v2112_v47, %v8874_v61 }
 0x2b6   : > { %v6010_v60 = vpack.i.b16 %v6009_v26, %v6008_v53  ;;  %v7576_v54 = vcombine.low %v6007_v40, %v6007_v40  ;;  %v7577_v46 = vcombine.high %v6007_v40, %v6007_v40  ;;  %v2127_v12 = vcombine.high %v2119_v14, %v8224_v48 }
 0x2b7   : > { %v2107_v55 = vrot.slane %v2093_v45, %v8881_v62  ;;  %v2134_v29 = vrot.slane %v2119_v14, %v8881_v62  ;;  %v2142_v52 = vcombine.high %v2126_v57, %v8224_v48  ;;  %v2149_v0 = vrot.slane %v2126_v57, %v8881_v62 }
 0x2b8   : > { %v7592_v24 = vcombine.low %v6010_v60, %v6010_v60  ;;  %v7593_v18 = vcombine.high %v6010_v60, %v6010_v60  ;;  %6141 = vst [vmem:[%s9002_s10 + $0x10] sm:$0xf] %v7576_v54  ;;  %6142 = vst [vmem:[%s9002_s10 + $0x14] sm:$0xf] %v7577_v46  ;;  %v2141_v43 = vrot.slane %v2127_v12, %v8881_v62 }
 0x2b9   : > { %v4543_v2 = vcombine.low %v2085_v25, %v2092_v15  ;;  %v2156_v58 = vrot.slane %v2142_v52, %v8881_v62  ;;  %v7488_v31 = vcombine.high %v2085_v25, %v2092_v15  ;;  %v4559_v32 = vcombine.low %v2100_v1, %v2107_v55 }
 0x2ba   : > { %v7489_v3 = vcombine.high %v2100_v1, %v2107_v55  ;;  %6157 = vst [vmem:[%s9002_s10 + $0x50] sm:$0xf] %v7592_v24  ;;  %6158 = vst [vmem:[%s9002_s10 + $0x54] sm:$0xf] %v7593_v18  ;;  %v4592_v28 = vcombine.low %v2134_v29, %v2141_v43  ;;  %v7490_v7 = vcombine.high %v2134_v29, %v2141_v43 }
 0x2bb   : > { %v4550_v27 = vrot.slane %v4543_v2, %v8874_v61  ;;  %v2926_v20 = vcombine.high %v2918_v42, %v8224_v48  ;;  %v4558_v44 = vrot.slane %v7488_v31, %v8874_v61  ;;  %v4566_v30 = vrot.slane %v4559_v32, %v8874_v61 }
 0x2bc   : > { %v4574_v34 = vrot.slane %v7489_v3, %v8874_v61  ;;  %v4608_v9 = vcombine.low %v2149_v0, %v2156_v58  ;;  %v4599_v17 = vrot.slane %v4592_v28, %v8874_v61  ;;  %v4607_v19 = vrot.slane %v7490_v7, %v8874_v61  ;;  %v1505_v7 = vpop.f32.mrf.mxu1 }
 0x2bd   : > { %v7491_v38 = vcombine.high %v2149_v0, %v2156_v58  ;;  %v4575_v63 = vcombine.low %v4550_v27, %v4558_v44  ;;  %v2940_v35 = vrot.slane %v2926_v20, %v8881_v62  ;;  %v2933_v37 = vrot.slane %v2918_v42, %v8881_v62 }
 0x2be   : > { %v4583_v59 = vcombine.low %v4566_v30, %v4574_v34  ;;  %v4615_v36 = vrot.slane %v4608_v9, %v8874_v61  ;;  %v4624_v21 = vcombine.low %v4599_v17, %v4607_v19  ;;  %v2941_v53 = vcombine.high %v2925_v41, %v8224_v48 }
 0x2bf   : > { %v4623_v13 = vrot.slane %v7491_v38, %v8874_v61  ;;  %v4582_v33 = vrot.slane %v4575_v63, %v8881_v62  ;;  %v2960_v23 = vcombine.high %v9146_v11, %v8878_v10  ;;  %v2967_v22 = vrot.slane %v9146_v11, %v8874_v61  ;;  %v1396_v11 = vpop.f32.mrf.mxu0 }
 0x2c0   : > { %v4590_v6 = vrot.slane %v4583_v59, %v8881_v62  ;;  %v2948_v5 = vrot.slane %v2925_v41, %v8881_v62  ;;  %v2955_v51 = vrot.slane %v2941_v53, %v8881_v62  ;;  %v5503_v25 = vcombine.low %v2933_v37, %v2940_v35 }
 0x2c1   : > { %v4632_v8 = vcombine.low %v4615_v36, %v4623_v13  ;;  %v4631_v47 = vrot.slane %v4624_v21, %v8881_v62  ;;  %v2974_v40 = vrot.slane %v2960_v23, %v8874_v61  ;;  %v2975_v26 = vcombine.high %v2967_v22, %v8224_v48  ;;  %v9208_v32 = vpop.f32.mrf.mxu0 }
 0x2c2   : > { %v4591_v42 = vcombine.low %v4582_v33, %v4590_v6  ;;  %v5510_v15 = vrot.slane %v5503_v25, %v8874_v61  ;;  %v7552_v45 = vcombine.high %v2933_v37, %v2940_v35  ;;  %v5519_v1 = vcombine.low %v2948_v5, %v2955_v51 }
 0x2c3   : > { %v4639_v14 = vrot.slane %v4632_v8, %v8881_v62  ;;  %v2982_v41 = vrot.slane %v2967_v22, %v8881_v62  ;;  %v2989_v60 = vrot.slane %v2975_v26, %v8881_v62  ;;  %v2990_v54 = vcombine.high %v2974_v40, %v8224_v48  ;;  %v1400_v13 = vpop.f32.mrf.mxu0 }
 0x2c4   : > { %v5054_v57 = vshrl.u32 %v4591_v42, 16  ;;  %v2997_v12 = vrot.slane %v2974_v40, %v8881_v62  ;;  %v5518_v55 = vrot.slane %v7552_v45, %v8874_v61  ;;  %v7553_v29 = vcombine.high %v2948_v5, %v2955_v51  ;;  %v1509_v40 = vpop.f32.mrf.mxu1 }
 0x2c5   : > { %v4640_v46 = vcombine.low %v4631_v47, %v4639_v14  ;;  %v3004_v52 = vrot.slane %v2990_v54, %v8881_v62  ;;  %v5526_v0 = vrot.slane %v5519_v1, %v8874_v61  ;;  %v5552_v24 = vcombine.low %v2982_v41, %v2989_v60 }
 0x2c6   : > { %v7554_v18 = vcombine.high %v2982_v41, %v2989_v60  ;;  %v5534_v58 = vrot.slane %v7553_v29, %v8874_v61  ;;  %v5535_v31 = vcombine.low %v5510_v15, %v5518_v55  ;;  %v1741_v34 = vshrl.u32 %v9140_v16, 16 }
 0x2c7   : > { %v5053_v43 = vpack.i.b16 %v4640_v46, %v4591_v42  ;;  %v5055_v2 = vshrl.u32 %v4640_v46, 16  ;;  %v5559_v3 = vrot.slane %v5552_v24, %v8874_v61  ;;  %v5568_v27 = vcombine.low %v2997_v12, %v3004_v52 }
 0x2c8   : > { %v5567_v4 = vrot.slane %v7554_v18, %v8874_v61  ;;  %v7555_v28 = vcombine.high %v2997_v12, %v3004_v52  ;;  %v5543_v9 = vcombine.low %v5526_v0, %v5534_v58  ;;  %v1676_v36 = vpack.c.bf16 %v1392_v49, %v9126_v39  ;;  %v9246_v52 = vpop.f32.mrf.mxu1 }
 0x2c9   : > { %v5056_v20 = vpack.i.b16 %v5055_v2, %v5054_v57  ;;  %v7514_v44 = vcombine.low %v5053_v43, %v5053_v43  ;;  %v7515_v30 = vcombine.high %v5053_v43, %v5053_v43  ;;  %v5575_v17 = vrot.slane %v5568_v27, %v8874_v61 }
 0x2ca   : > { %v5583_v19 = vrot.slane %v7555_v28, %v8874_v61  ;;  %v5584_v38 = vcombine.low %v5559_v3, %v5567_v4  ;;  %v1678_v35 = vpack.c.bf16 %v1505_v7, %v9160_v56  ;;  %v5542_v21 = vrot.slane %v5535_v31, %v8881_v62 }
 0x2cb   : > { %v7530_v63 = vcombine.low %v5056_v20, %v5056_v20  ;;  %v7531_v59 = vcombine.high %v5056_v20, %v5056_v20  ;;  %5183 = vst [vmem:[%s8969_s9 + $0x18] sm:$0xf] %v7514_v44  ;;  %5184 = vst [vmem:[%s8969_s9 + $0x1c] sm:$0xf] %v7515_v30  ;;  %v5550_v37 = vrot.slane %v5543_v9, %v8881_v62  ;;  %v2589_v33 = vshrl.u32 %v9180_v50, 16  ;;  %v1513_v9 = vpop.f32.mrf.mxu1 }
 0x2cc   : > { %v5592_v53 = vcombine.low %v5575_v17, %v5583_v19  ;;  %v1739_v6 = vpack.i.b16 %v1676_v36, %v9140_v16  ;;  %v1742_v23 = vshrl.u32 %v1676_v36, 16  ;;  %v2587_v22 = vpack.i.b16 %v1678_v35, %v9180_v50 }
 0x2cd   : > { %5199 = vst [vmem:[%s8969_s9 + $0x58] sm:$0xf] %v7530_v63  ;;  %5200 = vst [vmem:[%s8969_s9 + $0x5c] sm:$0xf] %v7531_v59  ;;  %v2590_v8 = vshrl.u32 %v1678_v35, 16  ;;  %v5551_v5 = vcombine.low %v5542_v21, %v5550_v37  ;;  %v5591_v39 = vrot.slane %v5584_v38, %v8881_v62  ;;  %v9228_v49 = vpack.c.bf16 %v1400_v13, %v1396_v11 }
 0x2ce   : > { %v5599_v56 = vrot.slane %v5592_v53, %v8881_v62  ;;  %v1743_v51 = vpack.i.b16 %v1742_v23, %v1741_v34  ;;  %v2161_v25 = vcombine.high %v1739_v6, %v8878_v10  ;;  %v2168_v42 = vrot.slane %v1739_v6, %v8874_v61 }
 0x2cf   : > { %v9232_v47 = vpack.i.b16 %v2590_v8, %v2589_v33  ;;  %v6014_v26 = vshrl.u32 %v5551_v5, 16  ;;  %v3009_v50 = vcombine.high %v2587_v22, %v8878_v10  ;;  %v3016_v14 = vrot.slane %v2587_v22, %v8874_v61 }
 0x2d0   : > { %v5600_v16 = vcombine.low %v5591_v39, %v5599_v56  ;;  %v2175_v15 = vrot.slane %v2161_v25, %v8874_v61  ;;  %v2176_v45 = vcombine.high %v2168_v42, %v8224_v48  ;;  %v2183_v1 = vrot.slane %v2168_v42, %v8881_v62  ;;  %v1402_v25 = vpop.f32.mrf.mxu0 }
 0x2d1   : > { %v2210_v11 = vcombine.high %v1743_v51, %v8878_v10  ;;  %v2217_v60 = vrot.slane %v1743_v51, %v8874_v61  ;;  %v3023_v54 = vrot.slane %v3009_v50, %v8874_v61  ;;  %v3024_v63 = vcombine.high %v3016_v14, %v8224_v48 }
 0x2d2   : > { %v6013_v57 = vpack.i.b16 %v5600_v16, %v5551_v5  ;;  %v6015_v41 = vshrl.u32 %v5600_v16, 16  ;;  %v2190_v46 = vrot.slane %v2176_v45, %v8881_v62  ;;  %v2191_v12 = vcombine.high %v2175_v15, %v8224_v48 }
 0x2d3   : > { %v2198_v55 = vrot.slane %v2175_v15, %v8881_v62  ;;  %v2224_v29 = vrot.slane %v2210_v11, %v8874_v61  ;;  %v2225_v43 = vcombine.high %v2217_v60, %v8224_v48  ;;  %v2232_v58 = vrot.slane %v2217_v60, %v8881_v62 }
 0x2d4   : > { %v6016_v0 = vpack.i.b16 %v6015_v41, %v6014_v26  ;;  %v7578_v24 = vcombine.low %v6013_v57, %v6013_v57  ;;  %v7579_v18 = vcombine.high %v6013_v57, %v6013_v57  ;;  %v2205_v2 = vrot.slane %v2191_v12, %v8881_v62 }
 0x2d5   : > { %v2240_v31 = vcombine.high %v2224_v29, %v8224_v48  ;;  %v2247_v3 = vrot.slane %v2224_v29, %v8881_v62  ;;  %v2239_v28 = vrot.slane %v2225_v43, %v8881_v62  ;;  %v4641_v7 = vcombine.low %v2183_v1, %v2190_v46 }
 0x2d6   : > { %v7594_v4 = vcombine.low %v6016_v0, %v6016_v0  ;;  %v7595_v27 = vcombine.high %v6016_v0, %v6016_v0  ;;  %6143 = vst [vmem:[%s9002_s10 + $0x18] sm:$0xf] %v7578_v24  ;;  %6144 = vst [vmem:[%s9002_s10 + $0x1c] sm:$0xf] %v7579_v18  ;;  %v7492_v44 = vcombine.high %v2183_v1, %v2190_v46 }
 0x2d7   : > { %v2254_v20 = vrot.slane %v2240_v31, %v8881_v62  ;;  %v4657_v30 = vcombine.low %v2198_v55, %v2205_v2  ;;  %v7493_v34 = vcombine.high %v2198_v55, %v2205_v2  ;;  %v4648_v17 = vrot.slane %v4641_v7, %v8874_v61 }
 0x2d8   : > { %6159 = vst [vmem:[%s9002_s10 + $0x58] sm:$0xf] %v7594_v4  ;;  %6160 = vst [vmem:[%s9002_s10 + $0x5c] sm:$0xf] %v7595_v27  ;;  %v4690_v19 = vcombine.low %v2232_v58, %v2239_v28  ;;  %v7494_v38 = vcombine.high %v2232_v58, %v2239_v28  ;;  %v4656_v59 = vrot.slane %v7492_v44, %v8874_v61 }
 0x2d9   : > { %v4664_v36 = vrot.slane %v4657_v30, %v8874_v61  ;;  %v4672_v35 = vrot.slane %v7493_v34, %v8874_v61  ;;  %v4706_v13 = vcombine.low %v2247_v3, %v2254_v20  ;;  %v7495_v53 = vcombine.high %v2247_v3, %v2254_v20 }
 0x2da   : > { %v4697_v21 = vrot.slane %v4690_v19, %v8874_v61  ;;  %v4705_v37 = vrot.slane %v7494_v38, %v8874_v61  ;;  %v9266_v33 = vpack.c.bf16 %v1513_v9, %v1509_v40  ;;  %v4673_v6 = vcombine.low %v4648_v17, %v4656_v59  ;;  %v1515_v38 = vpop.f32.mrf.mxu1 }
 0x2db   : > { %v4681_v23 = vcombine.low %v4664_v36, %v4672_v35  ;;  %v4713_v22 = vrot.slane %v4706_v13, %v8874_v61  ;;  %v3038_v8 = vrot.slane %v3024_v63, %v8881_v62  ;;  %v4721_v5 = vrot.slane %v7495_v53, %v8874_v61 }
 0x2dc   : > { %v4722_v39 = vcombine.low %v4697_v21, %v4705_v37  ;;  %v3031_v56 = vrot.slane %v3016_v14, %v8881_v62  ;;  %v3039_v51 = vcombine.high %v3023_v54, %v8224_v48  ;;  %v4680_v42 = vrot.slane %v4673_v6, %v8881_v62 }
 0x2dd   : > { %v4688_v16 = vrot.slane %v4681_v23, %v8881_v62  ;;  %v3058_v40 = vcombine.high %v9232_v47, %v8878_v10  ;;  %v3065_v26 = vrot.slane %v9232_v47, %v8874_v61  ;;  %v4730_v50 = vcombine.low %v4713_v22, %v4721_v5  ;;  %v1406_v47 = vpop.f32.mrf.mxu0 }
 0x2de   : > { %v3046_v15 = vrot.slane %v3023_v54, %v8881_v62  ;;  %v3053_v45 = vrot.slane %v3039_v51, %v8881_v62  ;;  %v5601_v1 = vcombine.low %v3031_v56, %v3038_v8  ;;  %v4729_v11 = vrot.slane %v4722_v39, %v8881_v62 }
 0x2df   : > { %v4689_v14 = vcombine.low %v4680_v42, %v4688_v16  ;;  %v3072_v57 = vrot.slane %v3058_v40, %v8874_v61  ;;  %v3073_v41 = vcombine.high %v3065_v26, %v8224_v48  ;;  %v4737_v60 = vrot.slane %v4730_v50, %v8881_v62  ;;  %v9294_v30 = vpop.f32.mrf.mxu0 }
 0x2e0   : > { %v5608_v46 = vrot.slane %v5601_v1, %v8874_v61  ;;  %v7556_v12 = vcombine.high %v3031_v56, %v3038_v8  ;;  %v5617_v55 = vcombine.low %v3046_v15, %v3053_v45  ;;  %v3080_v54 = vrot.slane %v3065_v26, %v8881_v62 }
 0x2e1   : > { %v5060_v29 = vshrl.u32 %v4689_v14, 16  ;;  %v3087_v0 = vrot.slane %v3073_v41, %v8881_v62  ;;  %v3088_v24 = vcombine.high %v3072_v57, %v8224_v48  ;;  %v4738_v18 = vcombine.low %v4729_v11, %v4737_v60  ;;  %v1410_v5 = vpop.f32.mrf.mxu0 }
 0x2e2   : > { %v3095_v43 = vrot.slane %v3072_v57, %v8881_v62  ;;  %v5616_v2 = vrot.slane %v7556_v12, %v8874_v61  ;;  %v7557_v58 = vcombine.high %v3046_v15, %v3053_v45  ;;  %v5624_v3 = vrot.slane %v5617_v55, %v8874_v61  ;;  %v1519_v57 = vpop.f32.mrf.mxu1 }
 0x2e3   : > { %v3102_v31 = vrot.slane %v3088_v24, %v8881_v62  ;;  %v5650_v4 = vcombine.low %v3080_v54, %v3087_v0  ;;  %v7558_v27 = vcombine.high %v3080_v54, %v3087_v0  ;;  %v5059_v28 = vpack.i.b16 %v4738_v18, %v4689_v14 }
 0x2e4   : > { %v5061_v7 = vshrl.u32 %v4738_v18, 16  ;;  %v5632_v20 = vrot.slane %v7557_v58, %v8874_v61  ;;  %v5633_v44 = vcombine.low %v5608_v46, %v5616_v2  ;;  %v1749_v35 = vshrl.u32 %v9228_v49, 16 }
 0x2e5   : > { %v5657_v34 = vrot.slane %v5650_v4, %v8874_v61  ;;  %v5665_v9 = vrot.slane %v7558_v27, %v8874_v61  ;;  %v5666_v17 = vcombine.low %v3095_v43, %v3102_v31  ;;  %v7559_v19 = vcombine.high %v3095_v43, %v3102_v31  ;;  %v9332_v31 = vpop.f32.mrf.mxu1 }
 0x2e6   : > { %v5062_v63 = vpack.i.b16 %v5061_v7, %v5060_v29  ;;  %v7516_v59 = vcombine.low %v5059_v28, %v5059_v28  ;;  %v7517_v36 = vcombine.high %v5059_v28, %v5059_v28  ;;  %v5641_v13 = vcombine.low %v5624_v3, %v5632_v20 }
 0x2e7   : > { %v5673_v21 = vrot.slane %v5666_v17, %v8874_v61  ;;  %v5681_v37 = vrot.slane %v7559_v19, %v8874_v61  ;;  %v5682_v53 = vcombine.low %v5657_v34, %v5665_v9  ;;  %v1682_v22 = vpack.c.bf16 %v1402_v25, %v9208_v32 }
 0x2e8   : > { %v7532_v6 = vcombine.low %v5062_v63, %v5062_v63  ;;  %v7533_v23 = vcombine.high %v5062_v63, %v5062_v63  ;;  %5185 = vst [vmem:[%s8969_s9 + $0x20] sm:$0xf] %v7516_v59  ;;  %5186 = vst [vmem:[%s8969_s9 + $0x24] sm:$0xf] %v7517_v36  ;;  %v1684_v8 = vpack.c.bf16 %v1515_v38, %v9246_v52  ;;  %v2597_v42 = vshrl.u32 %v9266_v33, 16 }
 0x2e9   : > { %v5640_v39 = vrot.slane %v5633_v44, %v8881_v62  ;;  %v5648_v56 = vrot.slane %v5641_v13, %v8881_v62  ;;  %v5690_v51 = vcombine.low %v5673_v21, %v5681_v37  ;;  %v1747_v16 = vpack.i.b16 %v1682_v22, %v9228_v49  ;;  %v1523_v13 = vpop.f32.mrf.mxu1 }
 0x2ea   : > { %5201 = vst [vmem:[%s8969_s9 + $0x60] sm:$0xf] %v7532_v6  ;;  %5202 = vst [vmem:[%s8969_s9 + $0x64] sm:$0xf] %v7533_v23  ;;  %v1750_v40 = vshrl.u32 %v1682_v22, 16  ;;  %v2595_v26 = vpack.i.b16 %v1684_v8, %v9266_v33  ;;  %v2598_v50 = vshrl.u32 %v1684_v8, 16  ;;  %v5689_v32 = vrot.slane %v5682_v53, %v8881_v62 }
 0x2eb   : > { %v5649_v15 = vcombine.low %v5640_v39, %v5648_v56  ;;  %v5697_v52 = vrot.slane %v5690_v51, %v8881_v62  ;;  %v9314_v25 = vpack.c.bf16 %v1410_v5, %v1406_v47  ;;  %v2259_v1 = vcombine.high %v1747_v16, %v8878_v10 }
 0x2ec   : > { %v1751_v45 = vpack.i.b16 %v1750_v40, %v1749_v35  ;;  %v2266_v14 = vrot.slane %v1747_v16, %v8874_v61  ;;  %v9318_v11 = vpack.i.b16 %v2598_v50, %v2597_v42  ;;  %v3107_v33 = vcombine.high %v2595_v26, %v8878_v10 }
 0x2ed   : > { %v5698_v49 = vcombine.low %v5689_v32, %v5697_v52  ;;  %v6020_v41 = vshrl.u32 %v5649_v15, 16  ;;  %v3114_v60 = vrot.slane %v2595_v26, %v8874_v61  ;;  %v2273_v46 = vrot.slane %v2259_v1, %v8874_v61  ;;  %v1412_v1 = vpop.f32.mrf.mxu0 }
 0x2ee   : > { %v2274_v12 = vcombine.high %v2266_v14, %v8224_v48  ;;  %v2281_v55 = vrot.slane %v2266_v14, %v8881_v62  ;;  %v2308_v47 = vcombine.high %v1751_v45, %v8878_v10  ;;  %v2315_v0 = vrot.slane %v1751_v45, %v8874_v61 }
 0x2ef   : > { %v6019_v29 = vpack.i.b16 %v5698_v49, %v5649_v15  ;;  %v6021_v54 = vshrl.u32 %v5698_v49, 16  ;;  %v3121_v24 = vrot.slane %v3107_v33, %v8874_v61  ;;  %v2289_v43 = vcombine.high %v2273_v46, %v8224_v48 }
 0x2f0   : > { %v2288_v18 = vrot.slane %v2274_v12, %v8881_v62  ;;  %v2296_v2 = vrot.slane %v2273_v46, %v8881_v62  ;;  %v2322_v58 = vrot.slane %v2308_v47, %v8874_v61  ;;  %v2323_v28 = vcombine.high %v2315_v0, %v8224_v48 }
 0x2f1   : > { %v6022_v3 = vpack.i.b16 %v6021_v54, %v6020_v41  ;;  %v7580_v4 = vcombine.low %v6019_v29, %v6019_v29  ;;  %v7581_v27 = vcombine.high %v6019_v29, %v6019_v29  ;;  %v2303_v7 = vrot.slane %v2289_v43, %v8881_v62 }
 0x2f2   : > { %v2330_v20 = vrot.slane %v2315_v0, %v8881_v62  ;;  %v2338_v44 = vcombine.high %v2322_v58, %v8224_v48  ;;  %v2345_v34 = vrot.slane %v2322_v58, %v8881_v62  ;;  %v2337_v19 = vrot.slane %v2323_v28, %v8881_v62 }
 0x2f3   : > { %v7596_v9 = vcombine.low %v6022_v3, %v6022_v3  ;;  %v7597_v17 = vcombine.high %v6022_v3, %v6022_v3  ;;  %6145 = vst [vmem:[%s9002_s10 + $0x20] sm:$0xf] %v7580_v4  ;;  %6146 = vst [vmem:[%s9002_s10 + $0x24] sm:$0xf] %v7581_v27  ;;  %v4739_v38 = vcombine.low %v2281_v55, %v2288_v18 }
 0x2f4   : > { %v2352_v63 = vrot.slane %v2338_v44, %v8881_v62  ;;  %v7496_v59 = vcombine.high %v2281_v55, %v2288_v18  ;;  %v4755_v36 = vcombine.low %v2296_v2, %v2303_v7  ;;  %v7497_v35 = vcombine.high %v2296_v2, %v2303_v7 }
 0x2f5   : > { %6161 = vst [vmem:[%s9002_s10 + $0x60] sm:$0xf] %v7596_v9  ;;  %6162 = vst [vmem:[%s9002_s10 + $0x64] sm:$0xf] %v7597_v17  ;;  %v4746_v21 = vrot.slane %v4739_v38, %v8874_v61  ;;  %v4788_v37 = vcombine.low %v2330_v20, %v2337_v19  ;;  %v7498_v53 = vcombine.high %v2330_v20, %v2337_v19 }
 0x2f6   : > { %v3122_v6 = vcombine.high %v3114_v60, %v8224_v48  ;;  %v4754_v23 = vrot.slane %v7496_v59, %v8874_v61  ;;  %v4762_v22 = vrot.slane %v4755_v36, %v8874_v61  ;;  %v4770_v8 = vrot.slane %v7497_v35, %v8874_v61 }
 0x2f7   : > { %v4804_v5 = vcombine.low %v2345_v34, %v2352_v63  ;;  %v4795_v39 = vrot.slane %v4788_v37, %v8874_v61  ;;  %v4803_v56 = vrot.slane %v7498_v53, %v8874_v61  ;;  %v7499_v51 = vcombine.high %v2345_v34, %v2352_v63  ;;  %v1525_v53 = vpop.f32.mrf.mxu1 }
 0x2f8   : > { %v9352_v42 = vpack.c.bf16 %v1523_v13, %v1519_v57  ;;  %v4771_v16 = vcombine.low %v4746_v21, %v4754_v23  ;;  %v4779_v40 = vcombine.low %v4762_v22, %v4770_v8  ;;  %v3136_v50 = vrot.slane %v3122_v6, %v8881_v62 }
 0x2f9   : > { %v4811_v26 = vrot.slane %v4804_v5, %v8874_v61  ;;  %v4819_v15 = vrot.slane %v7499_v51, %v8874_v61  ;;  %v4820_v32 = vcombine.low %v4795_v39, %v4803_v56  ;;  %v3129_v52 = vrot.slane %v3114_v60, %v8881_v62 }
 0x2fa   : > { %v3137_v45 = vcombine.high %v3121_v24, %v8224_v48  ;;  %v4778_v14 = vrot.slane %v4771_v16, %v8881_v62  ;;  %v4786_v49 = vrot.slane %v4779_v40, %v8881_v62  ;;  %v3156_v57 = vcombine.high %v9318_v11, %v8878_v10 }
 0x2fb   : > { %v3163_v41 = vrot.slane %v9318_v11, %v8874_v61  ;;  %v4828_v33 = vcombine.low %v4811_v26, %v4819_v15  ;;  %v3144_v46 = vrot.slane %v3121_v24, %v8881_v62  ;;  %v5699_v55 = vcombine.low %v3129_v52, %v3136_v50  ;;  %v1416_v11 = vpop.f32.mrf.mxu0 }
 0x2fc   : > { %v3151_v12 = vrot.slane %v3137_v45, %v8881_v62  ;;  %v4787_v60 = vcombine.low %v4778_v14, %v4786_v49  ;;  %v4827_v47 = vrot.slane %v4820_v32, %v8881_v62  ;;  %v3170_v29 = vrot.slane %v3156_v57, %v8874_v61 }
 0x2fd   : > { %v3171_v54 = vcombine.high %v3163_v41, %v8224_v48  ;;  %v4835_v0 = vrot.slane %v4828_v33, %v8881_v62  ;;  %v5706_v18 = vrot.slane %v5699_v55, %v8874_v61  ;;  %v7560_v43 = vcombine.high %v3129_v52, %v3136_v50  ;;  %v9380_v36 = vpop.f32.mrf.mxu0 }
 0x2fe   : > { %v5715_v2 = vcombine.low %v3144_v46, %v3151_v12  ;;  %v5066_v58 = vshrl.u32 %v4787_v60, 16  ;;  %v3178_v24 = vrot.slane %v3163_v41, %v8881_v62  ;;  %v3186_v4 = vcombine.high %v3170_v29, %v8224_v48 }
 0x2ff   : > { %v3185_v3 = vrot.slane %v3171_v54, %v8881_v62  ;;  %v4836_v27 = vcombine.low %v4827_v47, %v4835_v0  ;;  %v3193_v28 = vrot.slane %v3170_v29, %v8881_v62  ;;  %v5714_v7 = vrot.slane %v7560_v43, %v8874_v61  ;;  %v1420_v15 = vpop.f32.mrf.mxu0  ;;  %v1529_v29 = vpop.f32.mrf.mxu1 }
 0x300   : > { %v7561_v20 = vcombine.high %v3144_v46, %v3151_v12  ;;  %v3200_v44 = vrot.slane %v3186_v4, %v8881_v62  ;;  %v5722_v34 = vrot.slane %v5715_v2, %v8874_v61  ;;  %v1757_v8 = vshrl.u32 %v9314_v25, 16 }
 0x301   : > { %v5748_v9 = vcombine.low %v3178_v24, %v3185_v3  ;;  %v7562_v17 = vcombine.high %v3178_v24, %v3185_v3  ;;  %v5065_v19 = vpack.i.b16 %v4836_v27, %v4787_v60  ;;  %v5067_v38 = vshrl.u32 %v4836_v27, 16 }
 0x302   : > { %v5730_v63 = vrot.slane %v7561_v20, %v8874_v61  ;;  %v5731_v59 = vcombine.low %v5706_v18, %v5714_v7  ;;  %v5764_v21 = vcombine.low %v3193_v28, %v3200_v44  ;;  %v7563_v37 = vcombine.high %v3193_v28, %v3200_v44  ;;  %v9418_v44 = vpop.f32.mrf.mxu1 }
 0x303   : > { %v5755_v35 = vrot.slane %v5748_v9, %v8874_v61  ;;  %v5763_v13 = vrot.slane %v7562_v17, %v8874_v61  ;;  %v5068_v6 = vpack.i.b16 %v5067_v38, %v5066_v58  ;;  %v7518_v23 = vcombine.low %v5065_v19, %v5065_v19 }
 0x304   : > { %v7519_v22 = vcombine.high %v5065_v19, %v5065_v19  ;;  %v5739_v5 = vcombine.low %v5722_v34, %v5730_v63  ;;  %v5771_v39 = vrot.slane %v5764_v21, %v8874_v61  ;;  %v5779_v56 = vrot.slane %v7563_v37, %v8874_v61 }
 0x305   : > { %v5780_v51 = vcombine.low %v5755_v35, %v5763_v13  ;;  %v7534_v16 = vcombine.low %v5068_v6, %v5068_v6  ;;  %v7535_v40 = vcombine.high %v5068_v6, %v5068_v6  ;;  %5187 = vst [vmem:[%s8969_s9 + $0x28] sm:$0xf] %v7518_v23  ;;  %v1688_v26 = vpack.c.bf16 %v1412_v1, %v9294_v30 }
 0x306   : > { %5188 = vst [vmem:[%s8969_s9 + $0x2c] sm:$0xf] %v7519_v22  ;;  %v1690_v50 = vpack.c.bf16 %v1525_v53, %v9332_v31  ;;  %v5738_v32 = vrot.slane %v5731_v59, %v8881_v62  ;;  %v5746_v52 = vrot.slane %v5739_v5, %v8881_v62  ;;  %v5788_v45 = vcombine.low %v5771_v39, %v5779_v56  ;;  %v1533_v5 = vpop.f32.mrf.mxu1 }
 0x307   : > { %v2605_v14 = vshrl.u32 %v9352_v42, 16  ;;  %5203 = vst [vmem:[%s8969_s9 + $0x68] sm:$0xf] %v7534_v16  ;;  %5204 = vst [vmem:[%s8969_s9 + $0x6c] sm:$0xf] %v7535_v40  ;;  %v1755_v49 = vpack.i.b16 %v1688_v26, %v9314_v25  ;;  %v1758_v57 = vshrl.u32 %v1688_v26, 16  ;;  %v5787_v30 = vrot.slane %v5780_v51, %v8881_v62 }
 0x308   : > { %v2603_v41 = vpack.i.b16 %v1690_v50, %v9352_v42  ;;  %v2606_v33 = vshrl.u32 %v1690_v50, 16  ;;  %v5747_v46 = vcombine.low %v5738_v32, %v5746_v52  ;;  %v5795_v31 = vrot.slane %v5788_v45, %v8881_v62 }
 0x309   : > { %v9400_v1 = vpack.c.bf16 %v1420_v15, %v1416_v11  ;;  %v1759_v12 = vpack.i.b16 %v1758_v57, %v1757_v8  ;;  %v2357_v55 = vcombine.high %v1755_v49, %v8878_v10  ;;  %v2364_v60 = vrot.slane %v1755_v49, %v8874_v61 }
 0x30a   : > { %v9404_v47 = vpack.i.b16 %v2606_v33, %v2605_v14  ;;  %v5796_v25 = vcombine.low %v5787_v30, %v5795_v31  ;;  %v6026_v54 = vshrl.u32 %v5747_v46, 16  ;;  %v3205_v42 = vcombine.high %v2603_v41, %v8878_v10 }
 0x30b   : > { %v3212_v0 = vrot.slane %v2603_v41, %v8874_v61  ;;  %v2371_v18 = vrot.slane %v2357_v55, %v8874_v61  ;;  %v2372_v43 = vcombine.high %v2364_v60, %v8224_v48  ;;  %v2379_v2 = vrot.slane %v2364_v60, %v8881_v62  ;;  %v1422_v55 = vpop.f32.mrf.mxu0 }
 0x30c   : > { %v2406_v11 = vcombine.high %v1759_v12, %v8878_v10  ;;  %v6025_v58 = vpack.i.b16 %v5796_v25, %v5747_v46  ;;  %v6027_v24 = vshrl.u32 %v5796_v25, 16  ;;  %v2413_v3 = vrot.slane %v1759_v12, %v8874_v61 }
 0x30d   : > { %v3219_v4 = vrot.slane %v3205_v42, %v8874_v61  ;;  %v2386_v27 = vrot.slane %v2372_v43, %v8881_v62  ;;  %v2387_v28 = vcombine.high %v2371_v18, %v8224_v48  ;;  %v2394_v7 = vrot.slane %v2371_v18, %v8881_v62 }
 0x30e   : > { %v2420_v20 = vrot.slane %v2406_v11, %v8874_v61  ;;  %v6028_v34 = vpack.i.b16 %v6027_v24, %v6026_v54  ;;  %v7582_v9 = vcombine.low %v6025_v58, %v6025_v58  ;;  %v7583_v17 = vcombine.high %v6025_v58, %v6025_v58 }
 0x30f   : > { %v2421_v19 = vcombine.high %v2413_v3, %v8224_v48  ;;  %v2401_v38 = vrot.slane %v2387_v28, %v8881_v62  ;;  %v2428_v63 = vrot.slane %v2413_v3, %v8881_v62  ;;  %v4837_v53 = vcombine.low %v2379_v2, %v2386_v27 }
 0x310   : > { %v2436_v59 = vcombine.high %v2420_v20, %v8224_v48  ;;  %v2443_v35 = vrot.slane %v2420_v20, %v8881_v62  ;;  %v7598_v13 = vcombine.low %v6028_v34, %v6028_v34  ;;  %v7599_v21 = vcombine.high %v6028_v34, %v6028_v34  ;;  %6147 = vst [vmem:[%s9002_s10 + $0x28] sm:$0xf] %v7582_v9 }
 0x311   : > { %6148 = vst [vmem:[%s9002_s10 + $0x2c] sm:$0xf] %v7583_v17  ;;  %v2435_v37 = vrot.slane %v2421_v19, %v8881_v62  ;;  %v7500_v23 = vcombine.high %v2379_v2, %v2386_v27  ;;  %v4853_v22 = vcombine.low %v2394_v7, %v2401_v38  ;;  %v7501_v8 = vcombine.high %v2394_v7, %v2401_v38 }
 0x312   : > { %v2450_v6 = vrot.slane %v2436_v59, %v8881_v62  ;;  %6163 = vst [vmem:[%s9002_s10 + $0x68] sm:$0xf] %v7598_v13  ;;  %6164 = vst [vmem:[%s9002_s10 + $0x6c] sm:$0xf] %v7599_v21  ;;  %v4844_v39 = vrot.slane %v4837_v53, %v8874_v61  ;;  %v3220_v16 = vcombine.high %v3212_v0, %v8224_v48 }
 0x313   : > { %v4886_v56 = vcombine.low %v2428_v63, %v2435_v37  ;;  %v7502_v51 = vcombine.high %v2428_v63, %v2435_v37  ;;  %v4852_v40 = vrot.slane %v7500_v23, %v8874_v61  ;;  %v4860_v26 = vrot.slane %v4853_v22, %v8874_v61 }
 0x314   : > { %v4868_v50 = vrot.slane %v7501_v8, %v8874_v61  ;;  %v4902_v15 = vcombine.low %v2443_v35, %v2450_v6  ;;  %v7503_v45 = vcombine.high %v2443_v35, %v2450_v6  ;;  %v9438_v14 = vpack.c.bf16 %v1533_v5, %v1529_v29 }
 0x315   : > { %v4893_v32 = vrot.slane %v4886_v56, %v8874_v61  ;;  %v4901_v52 = vrot.slane %v7502_v51, %v8874_v61  ;;  %v4869_v49 = vcombine.low %v4844_v39, %v4852_v40  ;;  %v3234_v33 = vrot.slane %v3220_v16, %v8881_v62  ;;  %v1535_v51 = vpop.f32.mrf.mxu1 }
 0x316   : > { %v4877_v57 = vcombine.low %v4860_v26, %v4868_v50  ;;  %v4909_v41 = vrot.slane %v4902_v15, %v8874_v61  ;;  %v4917_v46 = vrot.slane %v7503_v45, %v8874_v61  ;;  %v3227_v31 = vrot.slane %v3212_v0, %v8881_v62 }
 0x317   : > { %v4918_v30 = vcombine.low %v4893_v32, %v4901_v52  ;;  %v3235_v12 = vcombine.high %v3219_v4, %v8224_v48  ;;  %v4876_v60 = vrot.slane %v4869_v49, %v8881_v62  ;;  %v3254_v29 = vcombine.high %v9404_v47, %v8878_v10 }
 0x318   : > { %v4884_v25 = vrot.slane %v4877_v57, %v8881_v62  ;;  %v3261_v54 = vrot.slane %v9404_v47, %v8874_v61  ;;  %v4926_v42 = vcombine.low %v4909_v41, %v4917_v46  ;;  %v3242_v18 = vrot.slane %v3219_v4, %v8881_v62  ;;  %v1572_v47 = vpop.f32.mrf.mxu0 }
 0x319   : > { %v3249_v43 = vrot.slane %v3235_v12, %v8881_v62  ;;  %v5797_v2 = vcombine.low %v3227_v31, %v3234_v33  ;;  %v4925_v11 = vrot.slane %v4918_v30, %v8881_v62  ;;  %v3268_v58 = vrot.slane %v3254_v29, %v8874_v61 }
 0x31a   : > { %v4885_v0 = vcombine.low %v4876_v60, %v4884_v25  ;;  %v3269_v24 = vcombine.high %v3261_v54, %v8224_v48  ;;  %v4933_v3 = vrot.slane %v4926_v42, %v8881_v62  ;;  %v7564_v28 = vcombine.high %v3227_v31, %v3234_v33  ;;  %v9466_v22 = vpop.f32.mrf.mxu0 }
 0x31b   : > { %v5804_v27 = vrot.slane %v5797_v2, %v8874_v61  ;;  %v5813_v7 = vcombine.low %v3242_v18, %v3249_v43  ;;  %v3276_v4 = vrot.slane %v3261_v54, %v8881_v62  ;;  %v3284_v9 = vcombine.high %v3268_v58, %v8224_v48 }
 0x31c   : > { %v5072_v20 = vshrl.u32 %v4885_v0, 16  ;;  %v3283_v34 = vrot.slane %v3269_v24, %v8881_v62  ;;  %v4934_v17 = vcombine.low %v4925_v11, %v4933_v3  ;;  %v3291_v19 = vrot.slane %v3268_v58, %v8881_v62  ;;  %v1576_v46 = vpop.f32.mrf.mxu0  ;;  %v1612_v58 = vpop.f32.mrf.mxu1 }
 0x31d   : > { %v5812_v38 = vrot.slane %v7564_v28, %v8874_v61  ;;  %v7565_v63 = vcombine.high %v3242_v18, %v3249_v43  ;;  %v3298_v59 = vrot.slane %v3284_v9, %v8881_v62  ;;  %v5820_v35 = vrot.slane %v5813_v7, %v8874_v61 }
 0x31e   : > { %v5846_v13 = vcombine.low %v3276_v4, %v3283_v34  ;;  %v7566_v21 = vcombine.high %v3276_v4, %v3283_v34  ;;  %v5071_v37 = vpack.i.b16 %v4934_v17, %v4885_v0  ;;  %v5073_v53 = vshrl.u32 %v4934_v17, 16 }
 0x31f   : > { %v5828_v6 = vrot.slane %v7565_v63, %v8874_v61  ;;  %v5829_v23 = vcombine.low %v5804_v27, %v5812_v38  ;;  %v5862_v39 = vcombine.low %v3291_v19, %v3298_v59  ;;  %v7567_v56 = vcombine.high %v3291_v19, %v3298_v59  ;;  %v9504_v59 = vpop.f32.mrf.mxu1 }
 0x320   : > { %v5853_v8 = vrot.slane %v5846_v13, %v8874_v61  ;;  %v5861_v5 = vrot.slane %v7566_v21, %v8874_v61  ;;  %v5074_v16 = vpack.i.b16 %v5073_v53, %v5072_v20  ;;  %v7520_v40 = vcombine.low %v5071_v37, %v5071_v37 }
 0x321   : > { %v7521_v26 = vcombine.high %v5071_v37, %v5071_v37  ;;  %v1765_v50 = vshrl.u32 %v9400_v1, 16  ;;  %v5837_v15 = vcombine.low %v5820_v35, %v5828_v6  ;;  %v5869_v32 = vrot.slane %v5862_v39, %v8874_v61 }
 0x322   : > { %v5877_v52 = vrot.slane %v7567_v56, %v8874_v61  ;;  %v5878_v45 = vcombine.low %v5853_v8, %v5861_v5  ;;  %v7536_v49 = vcombine.low %v5074_v16, %v5074_v16  ;;  %v7537_v57 = vcombine.high %v5074_v16, %v5074_v16  ;;  %5189 = vst [vmem:[%s8969_s9 + $0x30] sm:$0xf] %v7520_v40 }
 0x323   : > { %5190 = vst [vmem:[%s8969_s9 + $0x34] sm:$0xf] %v7521_v26  ;;  %v1694_v41 = vpack.c.bf16 %v1422_v55, %v9380_v36  ;;  %v1696_v33 = vpack.c.bf16 %v1535_v51, %v9418_v44  ;;  %v5836_v30 = vrot.slane %v5829_v23, %v8881_v62  ;;  %v5844_v31 = vrot.slane %v5837_v15, %v8881_v62  ;;  %v1616_v15 = vpop.f32.mrf.mxu1 }
 0x324   : > { %v5886_v12 = vcombine.low %v5869_v32, %v5877_v52  ;;  %v2613_v60 = vshrl.u32 %v9438_v14, 16  ;;  %5205 = vst [vmem:[%s8969_s9 + $0x70] sm:$0xf] %v7536_v49  ;;  %5206 = vst [vmem:[%s8969_s9 + $0x74] sm:$0xf] %v7537_v57  ;;  %v5885_v36 = vrot.slane %v5878_v45, %v8881_v62  ;;  %v9486_v55 = vpack.c.bf16 %v1576_v46, %v1572_v47 }
 0x325   : > { %v1763_v25 = vpack.i.b16 %v1694_v41, %v9400_v1  ;;  %v1766_v29 = vshrl.u32 %v1694_v41, 16  ;;  %v2611_v54 = vpack.i.b16 %v1696_v33, %v9438_v14  ;;  %v2614_v42 = vshrl.u32 %v1696_v33, 16 }
 0x326   : > { %v5845_v18 = vcombine.low %v5836_v30, %v5844_v31  ;;  %v5893_v44 = vrot.slane %v5886_v12, %v8881_v62 }
 0x327   : > { %v1767_v43 = vpack.i.b16 %v1766_v29, %v1765_v50  ;;  %v2455_v2 = vcombine.high %v1763_v25, %v8878_v10  ;;  %v2462_v0 = vrot.slane %v1763_v25, %v8874_v61  ;;  %v9490_v11 = vpack.i.b16 %v2614_v42, %v2613_v60 }
 0x328   : > { %v5894_v1 = vcombine.low %v5885_v36, %v5893_v44  ;;  %v6032_v24 = vshrl.u32 %v5845_v18, 16  ;;  %v3303_v14 = vcombine.high %v2611_v54, %v8878_v10  ;;  %v3310_v3 = vrot.slane %v2611_v54, %v8874_v61 }
 0x329   : > { %v2469_v27 = vrot.slane %v2455_v2, %v8874_v61  ;;  %v2470_v28 = vcombine.high %v2462_v0, %v8224_v48  ;;  %v2477_v7 = vrot.slane %v2462_v0, %v8881_v62  ;;  %v2504_v47 = vcombine.high %v1767_v43, %v8878_v10  ;;  %v1578_v2 = vpop.f32.mrf.mxu0 }
 0x32a   : > { %v6031_v20 = vpack.i.b16 %v5894_v1, %v5845_v18  ;;  %v6033_v4 = vshrl.u32 %v5894_v1, 16  ;;  %v2511_v34 = vrot.slane %v1767_v43, %v8874_v61  ;;  %v3317_v9 = vrot.slane %v3303_v14, %v8874_v61 }
 0x32b   : > { %v2484_v17 = vrot.slane %v2470_v28, %v8881_v62  ;;  %v2485_v19 = vcombine.high %v2469_v27, %v8224_v48  ;;  %v2492_v38 = vrot.slane %v2469_v27, %v8881_v62  ;;  %v2518_v63 = vrot.slane %v2504_v47, %v8874_v61 }
 0x32c   : > { %v6034_v35 = vpack.i.b16 %v6033_v4, %v6032_v24  ;;  %v7584_v13 = vcombine.low %v6031_v20, %v6031_v20  ;;  %v7585_v21 = vcombine.high %v6031_v20, %v6031_v20  ;;  %v2519_v37 = vcombine.high %v2511_v34, %v8224_v48 }
 0x32d   : > { %v2499_v53 = vrot.slane %v2485_v19, %v8881_v62  ;;  %v2526_v6 = vrot.slane %v2511_v34, %v8881_v62  ;;  %v2534_v23 = vcombine.high %v2518_v63, %v8224_v48  ;;  %v2541_v8 = vrot.slane %v2518_v63, %v8881_v62 }
 0x32e   : > { %v7600_v5 = vcombine.low %v6034_v35, %v6034_v35  ;;  %v7601_v39 = vcombine.high %v6034_v35, %v6034_v35  ;;  %6149 = vst [vmem:[%s9002_s10 + $0x30] sm:$0xf] %v7584_v13  ;;  %6150 = vst [vmem:[%s9002_s10 + $0x34] sm:$0xf] %v7585_v21  ;;  %v2533_v56 = vrot.slane %v2519_v37, %v8881_v62 }
 0x32f   : > { %v4935_v51 = vcombine.low %v2477_v7, %v2484_v17  ;;  %v2548_v16 = vrot.slane %v2534_v23, %v8881_v62  ;;  %v7504_v40 = vcombine.high %v2477_v7, %v2484_v17  ;;  %v4951_v26 = vcombine.low %v2492_v38, %v2499_v53 }
 0x330   : > { %v7505_v50 = vcombine.high %v2492_v38, %v2499_v53  ;;  %6165 = vst [vmem:[%s9002_s10 + $0x70] sm:$0xf] %v7600_v5  ;;  %6166 = vst [vmem:[%s9002_s10 + $0x74] sm:$0xf] %v7601_v39  ;;  %v4984_v52 = vcombine.low %v2526_v6, %v2533_v56  ;;  %v7506_v45 = vcombine.high %v2526_v6, %v2533_v56 }
 0x331   : > { %v4942_v32 = vrot.slane %v4935_v51, %v8874_v61  ;;  %v3318_v49 = vcombine.high %v3310_v3, %v8224_v48  ;;  %v4950_v57 = vrot.slane %v7504_v40, %v8874_v61  ;;  %v4958_v41 = vrot.slane %v4951_v26, %v8874_v61 }
 0x332   : > { %v4966_v33 = vrot.slane %v7505_v50, %v8874_v61  ;;  %v5000_v46 = vcombine.low %v2541_v8, %v2548_v16  ;;  %v4991_v30 = vrot.slane %v4984_v52, %v8874_v61  ;;  %v4999_v31 = vrot.slane %v7506_v45, %v8874_v61  ;;  %v1618_v45 = vpop.f32.mrf.mxu1 }
 0x333   : > { %v7507_v12 = vcombine.high %v2541_v8, %v2548_v16  ;;  %v9524_v60 = vpack.c.bf16 %v1616_v15, %v1612_v58  ;;  %v4967_v25 = vcombine.low %v4942_v32, %v4950_v57  ;;  %v3332_v42 = vrot.slane %v3318_v49, %v8881_v62 }
 0x334   : > { %v4975_v29 = vcombine.low %v4958_v41, %v4966_v33  ;;  %v5007_v54 = vrot.slane %v5000_v46, %v8874_v61  ;;  %v5016_v36 = vcombine.low %v4991_v30, %v4999_v31  ;;  %v3325_v44 = vrot.slane %v3310_v3, %v8881_v62 }
 0x335   : > { %v5015_v18 = vrot.slane %v7507_v12, %v8874_v61  ;;  %v3333_v43 = vcombine.high %v3317_v9, %v8224_v48  ;;  %v4974_v0 = vrot.slane %v4967_v25, %v8881_v62  ;;  %v3352_v58 = vcombine.high %v9490_v11, %v8878_v10 }
 0x336   : > { %v4982_v1 = vrot.slane %v4975_v29, %v8881_v62  ;;  %v3359_v24 = vrot.slane %v9490_v11, %v8874_v61  ;;  %v3340_v27 = vrot.slane %v3317_v9, %v8881_v62  ;;  %v5895_v7 = vcombine.low %v3325_v44, %v3332_v42  ;;  %v1582_v11 = vpop.f32.mrf.mxu0 }
 0x337   : > { %v5024_v14 = vcombine.low %v5007_v54, %v5015_v18  ;;  %v3347_v28 = vrot.slane %v3333_v43, %v8881_v62  ;;  %v5023_v47 = vrot.slane %v5016_v36, %v8881_v62  ;;  %v3366_v20 = vrot.slane %v3352_v58, %v8874_v61 }
 0x338   : > { %v4983_v3 = vcombine.low %v4974_v0, %v4982_v1  ;;  %v3367_v4 = vcombine.high %v3359_v24, %v8224_v48  ;;  %v5902_v17 = vrot.slane %v5895_v7, %v8874_v61  ;;  %v7568_v19 = vcombine.high %v3325_v44, %v3332_v42  ;;  %v9552_v26 = vpop.f32.mrf.mxu0 }
 0x339   : > { %v5031_v34 = vrot.slane %v5024_v14, %v8881_v62  ;;  %v5911_v38 = vcombine.low %v3340_v27, %v3347_v28  ;;  %v3374_v9 = vrot.slane %v3359_v24, %v8881_v62  ;;  %v3382_v13 = vcombine.high %v3366_v20, %v8224_v48 }
 0x33a   : > { %v5078_v63 = vshrl.u32 %v4983_v3, 16  ;;  %v3381_v35 = vrot.slane %v3367_v4, %v8881_v62  ;;  %v3389_v37 = vrot.slane %v3366_v20, %v8881_v62  ;;  %v5910_v53 = vrot.slane %v7568_v19, %v8874_v61  ;;  %v1586_v18 = vpop.f32.mrf.mxu0 }
 0x33b   : > { %v5032_v21 = vcombine.low %v5023_v47, %v5031_v34  ;;  %v7569_v6 = vcombine.high %v3340_v27, %v3347_v28  ;;  %v3396_v23 = vrot.slane %v3382_v13, %v8881_v62  ;;  %v5918_v8 = vrot.slane %v5911_v38, %v8874_v61 }
 0x33c   : > { %v5944_v5 = vcombine.low %v3374_v9, %v3381_v35  ;;  %v7570_v39 = vcombine.high %v3374_v9, %v3381_v35  ;;  %v5927_v40 = vcombine.low %v5902_v17, %v5910_v53  ;;  %v3405_v33 = vshrl.u32 %v9486_v55, 16 }
 0x33d   : > { %v5077_v56 = vpack.i.b16 %v5032_v21, %v4983_v3  ;;  %v5079_v51 = vshrl.u32 %v5032_v21, 16  ;;  %v5926_v16 = vrot.slane %v7569_v6, %v8874_v61  ;;  %v5960_v32 = vcombine.low %v3389_v37, %v3396_v23 }
 0x33e   : > { %v5951_v50 = vrot.slane %v5944_v5, %v8874_v61  ;;  %v5959_v15 = vrot.slane %v7570_v39, %v8874_v61  ;;  %v7571_v52 = vcombine.high %v3389_v37, %v3396_v23  ;;  %v1656_v54 = vpack.c.bf16 %v1578_v2, %v9466_v22 }
 0x33f   : > { %v5080_v49 = vpack.i.b16 %v5079_v51, %v5078_v63  ;;  %v7522_v57 = vcombine.low %v5077_v56, %v5077_v56  ;;  %v7523_v41 = vcombine.high %v5077_v56, %v5077_v56  ;;  %v5935_v46 = vcombine.low %v5918_v8, %v5926_v16 }
 0x340   : > { %v5967_v30 = vrot.slane %v5960_v32, %v8874_v61  ;;  %v5975_v31 = vrot.slane %v7571_v52, %v8874_v61  ;;  %v5976_v12 = vcombine.low %v5951_v50, %v5959_v15  ;;  %v1680_v42 = vpack.c.bf16 %v1618_v45, %v9504_v59 }
 0x341   : > { %v7538_v25 = vcombine.low %v5080_v49, %v5080_v49  ;;  %v7539_v29 = vcombine.high %v5080_v49, %v5080_v49  ;;  %5191 = vst [vmem:[%s8969_s9 + $0x38] sm:$0xf] %v7522_v57  ;;  %5192 = vst [vmem:[%s8969_s9 + $0x3c] sm:$0xf] %v7523_v41  ;;  %v5934_v36 = vrot.slane %v5927_v40, %v8881_v62  ;;  %v3437_v0 = vshrl.u32 %v9524_v60, 16 }
 0x342   : > { %v5942_v44 = vrot.slane %v5935_v46, %v8881_v62  ;;  %v5984_v43 = vcombine.low %v5967_v30, %v5975_v31  ;;  %v3403_v1 = vpack.i.b16 %v1656_v54, %v9486_v55  ;;  %v3406_v58 = vshrl.u32 %v1656_v54, 16  ;;  %v9581_v55 = vpop.f32.mrf.mxu1 }
 0x343   : > { %5207 = vst [vmem:[%s8969_s9 + $0x78] sm:$0xf] %v7538_v25  ;;  %5208 = vst [vmem:[%s8969_s9 + $0x7c] sm:$0xf] %v7539_v29  ;;  %v3435_v22 = vpack.i.b16 %v1680_v42, %v9524_v60  ;;  %v3438_v59 = vshrl.u32 %v1680_v42, 16  ;;  %v5983_v24 = vrot.slane %v5976_v12, %v8881_v62  ;;  %v9575_v27 = vpack.c.bf16 %v1586_v18, %v1582_v11 }
 0x344   : > { %v5943_v2 = vcombine.low %v5934_v36, %v5942_v44  ;;  %v5991_v14 = vrot.slane %v5984_v43, %v8881_v62  ;;  %v3407_v28 = vpack.i.b16 %v3406_v58, %v3405_v33  ;;  %v3465_v7 = vcombine.high %v3403_v1, %v8878_v10 }
 0x345   : > { %v3472_v3 = vrot.slane %v3403_v1, %v8874_v61  ;;  %v9579_v47 = vpack.i.b16 %v3438_v59, %v3437_v0  ;;  %v3857_v4 = vcombine.high %v3435_v22, %v8878_v10  ;;  %v9592_v34 = vrot.slane %v3435_v22, %v8874_v61 }
 0x346   : > { %v5992_v60 = vcombine.low %v5983_v24, %v5991_v14  ;;  %v6038_v20 = vshrl.u32 %v5943_v2, 16  ;;  %v3479_v17 = vrot.slane %v3465_v7, %v8874_v61  ;;  %v3514_v11 = vcombine.high %v3407_v28, %v8878_v10 }
 0x347   : > { %v3480_v19 = vcombine.high %v3472_v3, %v8224_v48  ;;  %v9599_v38 = vrot.slane %v3472_v3, %v8881_v62 }
 0x348   : > { %8086 = shalt.err (!%p8083_p6)
}
 0x349   : > { %s8087_s16 = scalar_lea.hbm %s9587_s28, 2048  ;;  %s8091_s29 = scalar_lea.hbm %s10060_s4, 4096 }
 0x34a   : > { %p8088_p11 = scmp.ne.s32.totalorder %s9587_s28, %s8087_s16  ;;  %p8092_p10 = scmp.lt.s32.totalorder %s9587_s28, %s10060_s4 }
 0x34b   : > { %p8093_p5 = scmp.lt.s32.totalorder %s8091_s29, %s8087_s16 }
 0x34c   : > { %p8089_p1 = pnand %p8088_p11, %p10092_p8 }
 0x34d   : > { %p8094_p3 = por %p8093_p5, %p8092_p10 }
 0x34e   : > { %p8090_p0 = pneg %p8089_p1 }
 0x350   : > { %p8095_p7 = pnand %p8094_p3, %p8090_p0 }
 0x352   : > { %8098 = shalt.err (!%p8095_p7)
}
 0x353   : > { %s8226_s15 = smov 64   ;;  %s8227_s1 = smov 4   ;;  %v6037_v63 = vpack.i.b16 %v5992_v60, %v5943_v2  ;;  %v6039_v9 = vshrl.u32 %v5992_v60, 16  ;;  %v3521_v35 = vrot.slane %v3407_v28, %v8874_v61  ;;  %v9630_v13 = vrot.slane %v3857_v4, %v8874_v61  ;;  %v9637_v23 = vpop.f32.mrf.mxu1 }
 0x354   : > { %7725 = dma.vmem_to_hbm [thread:$0]  (%p10092_p8), %s9594_s11, 2048, %s9587_s28, %s7130_s12, %s8226_s15, %s8226_s15, %s8227_s1   ;;  %v3494_v21 = vrot.slane %v3480_v19, %v8881_v62  ;;  %v3495_v37 = vcombine.high %v3479_v17, %v8224_v48  ;;  %v3502_v53 = vrot.slane %v3479_v17, %v8881_v62  ;;  %v3528_v6 = vrot.slane %v3514_v11, %v8874_v61 }
 0x355   : > { %s7134_s26 = sand.u32 1, %s8296_s27   ;;  %s7173_s19 = sshll.u32 %s9002_s10, 4  ;;  %v6040_v8 = vpack.i.b16 %v6039_v9, %v6038_v20  ;;  %v7586_v5 = vcombine.low %v6037_v63, %v6037_v63  ;;  %v7587_v39 = vcombine.high %v6037_v63, %v6037_v63  ;;  %v3529_v56 = vcombine.high %v3521_v35, %v8224_v48  ;;  %v1626_v46 = vpop.f32.mrf.mxu1  ;;  %s9655_s19 = int_to_ptr.vmem [resolvable:$true] %s7173_s19 }
 0x356   : > { %v3509_v51 = vrot.slane %v3495_v37, %v8881_v62  ;;  %v3536_v16 = vrot.slane %v3521_v35, %v8881_v62  ;;  %v3544_v40 = vcombine.high %v3528_v6, %v8224_v48  ;;  %v3551_v50 = vrot.slane %v3528_v6, %v8881_v62  ;;  %s9653_s12 = scalar_lea.hbm %s10061_s5, %s9567_s13  ;;  %s9669_s14 = scalar_lea.sflag [#allocation10], %s7134_s26 }
 0x357   : > { %v7602_v15 = vcombine.low %v6040_v8, %v6040_v8  ;;  %v7603_v32 = vcombine.high %v6040_v8, %v6040_v8  ;;  %6151 = vst [vmem:[%s9002_s10 + $0x38] sm:$0xf] %v7586_v5  ;;  %6152 = vst [vmem:[%s9002_s10 + $0x3c] sm:$0xf] %v7587_v39  ;;  %v3543_v52 = vrot.slane %v3529_v56, %v8881_v62  ;;  %s8099_s20 = scalar_lea.vmem %s9655_s19, 2048 }
 0x358   : > { %v6169_v45 = vcombine.low %v9599_v38, %v3494_v21  ;;  %v3558_v49 = vrot.slane %v3544_v40, %v8881_v62  ;;  %v7604_v57 = vcombine.high %v9599_v38, %v3494_v21  ;;  %v6185_v41 = vcombine.low %v3502_v53, %v3509_v51  ;;  %p8100_p9 = scmp.ne.s32.totalorder %s9655_s19, %s8099_s20 }
 0x359   : > { %v7605_v33 = vcombine.high %v3502_v53, %v3509_v51  ;;  %6167 = vst [vmem:[%s9002_s10 + $0x78] sm:$0xf] %v7602_v15  ;;  %6168 = vst [vmem:[%s9002_s10 + $0x7c] sm:$0xf] %v7603_v32  ;;  %v6218_v31 = vcombine.low %v3536_v16, %v3543_v52  ;;  %v7606_v12 = vcombine.high %v3536_v16, %v3543_v52  ;;  %s8228_s10 = smov [#allocation9]  }
 0x35a   : > { %v6176_v30 = vrot.slane %v6169_v45, %v8874_v61  ;;  %v3872_v25 = vcombine.high %v9592_v34, %v8224_v48  ;;  %v6184_v29 = vrot.slane %v7604_v57, %v8874_v61  ;;  %v6192_v54 = vrot.slane %v6185_v41, %v8874_v61  ;;  %p8101_p12 = pnand %p8100_p9, %p10092_p8  ;;  %s8103_s16 = sshll.u32 %s8228_s10, 4  ;;  %s8104_s16 = int_to_ptr.vmem [resolvable:$false] %s8103_s16 }
 0x35b   : > { %v6200_v42 = vrot.slane %v7605_v33, %v8874_v61  ;;  %v6234_v18 = vcombine.low %v3551_v50, %v3558_v49  ;;  %s8105_s30 = scalar_lea.vmem %s8104_s16, 4096  ;;  %p8106_p4 = scmp.lt.s32.totalorder %s9655_s19, %s8104_s16 }
 0x35c   : > { %p8102_p13 = pneg %p8101_p12  ;;  %p8107_p2 = scmp.lt.s32.totalorder %s8105_s30, %s8099_s20 }
 0x35e   : > { %p8108_p6 = por %p8107_p2, %p8106_p4 }
 0x360   : > { %p8109_p11 = pnand %p8108_p6, %p8102_p13 }
 0x362   : > { %8112 = shalt.err (!%p8109_p11)
}
 0x363   : > { %s8113_s27 = scalar_lea.hbm %s9653_s12, 2048  ;;  %s8117_s9 = scalar_lea.hbm %s10061_s5, 4096 }
 0x364   : > { %p8114_p1 = scmp.ne.s32.totalorder %s9653_s12, %s8113_s27  ;;  %p8118_p5 = scmp.lt.s32.totalorder %s9653_s12, %s10061_s5 }
 0x365   : > { %p8119_p3 = scmp.lt.s32.totalorder %s8117_s9, %s8113_s27 }
 0x366   : > { %p8115_p0 = pnand %p8114_p1, %p10092_p8 }
 0x367   : > { %p8120_p7 = por %p8119_p3, %p8118_p5 }
 0x368   : > { %p8116_p10 = pneg %p8115_p0 }
 0x36a   : > { %p8121_p9 = pnand %p8120_p7, %p8116_p10 }
 0x36c   : > { %8124 = shalt.err (!%p8121_p9)
}
 0x36d   : > { %7726 = dma.vmem_to_hbm [thread:$0]  (%p10092_p8), %s9655_s19, 2048, %s9653_s12, %s9669_s14, %s8226_s15, %s8226_s15, %s8227_s1   ;;  %v6225_v36 = vrot.slane %v6218_v31, %v8874_v61  ;;  %v6233_v44 = vrot.slane %v7606_v12, %v8874_v61  ;;  %v7607_v43 = vcombine.high %v3551_v50, %v3558_v49  ;;  %v9698_v0 = vpack.c.bf16 %v1626_v46, %v9581_v55  ;;  %v1588_v7 = vpop.f32.mrf.mxu0  ;;  %v1628_v12 = vpop.f32.mrf.mxu1 }
 0x36e   : > { %v6201_v1 = vcombine.low %v6176_v30, %v6184_v29  ;;  %v6209_v58 = vcombine.low %v6192_v54, %v6200_v42  ;;  %v6241_v22 = vrot.slane %v6234_v18, %v8874_v61  ;;  %v3886_v59 = vrot.slane %v3872_v25, %v8881_v62  ;;  %s9737_s19 = scalar_lea.vmem [#allocation11], %s8950_s7  ;;  %s10001_s12 = scalar_lea.hbm %s10062_s6, %s9567_s13 }
 0x36f   : > { %v6249_v2 = vrot.slane %v7607_v43, %v8874_v61  ;;  %v6250_v24 = vcombine.low %v6225_v36, %v6233_v44  ;;  %v3879_v14 = vrot.slane %v9592_v34, %v8881_v62  ;;  %v3887_v28 = vcombine.high %v9630_v13, %v8224_v48  ;;  %v1592_v53 = vpop.f32.mrf.mxu0  ;;  %s7191_s7 = sshll.u32 %s9737_s19, 4  ;;  %s8229_s10 = smov [#allocation11]   ;;  %s10003_s7 = int_to_ptr.vmem [resolvable:$true] %s7191_s7 }
 0x370   : > { %v6208_v3 = vrot.slane %v6201_v1, %v8881_v62  ;;  %v6216_v55 = vrot.slane %v6209_v58, %v8881_v62  ;;  %v3906_v60 = vcombine.high %v9579_v47, %v8878_v10  ;;  %v3913_v20 = vrot.slane %v9579_v47, %v8874_v61  ;;  %s8125_s20 = scalar_lea.vmem %s10003_s7, 2048  ;;  %s8129_s16 = sshll.u32 %s8229_s10, 4  ;;  %s8130_s16 = int_to_ptr.vmem [resolvable:$false] %s8129_s16 }
 0x371   : > { %v6258_v4 = vcombine.low %v6241_v22, %v6249_v2  ;;  %v3894_v17 = vrot.slane %v9630_v13, %v8881_v62  ;;  %v3901_v34 = vrot.slane %v3887_v28, %v8881_v62  ;;  %v6561_v19 = vcombine.low %v3879_v14, %v3886_v59  ;;  %v9729_v41 = vpop.f32.mrf.mxu0  ;;  %p8126_p12 = scmp.ne.s32.totalorder %s10003_s7, %s8125_s20  ;;  %s8131_s30 = scalar_lea.vmem %s8130_s16, 4096 }
 0x372   : > { %v6217_v38 = vcombine.low %v6208_v3, %v6216_v55  ;;  %v6257_v11 = vrot.slane %v6250_v24, %v8881_v62  ;;  %v3920_v63 = vrot.slane %v3906_v60, %v8874_v61  ;;  %v3921_v9 = vcombine.high %v3913_v20, %v8224_v48  ;;  %p8132_p2 = scmp.lt.s32.totalorder %s10003_s7, %s8130_s16  ;;  %p8133_p6 = scmp.lt.s32.totalorder %s8131_s30, %s8125_s20 }
 0x373   : > { %v6265_v35 = vrot.slane %v6258_v4, %v8881_v62  ;;  %v6568_v21 = vrot.slane %v6561_v19, %v8874_v61  ;;  %v7620_v37 = vcombine.high %v3879_v14, %v3886_v59  ;;  %v6577_v47 = vcombine.low %v3894_v17, %v3901_v34  ;;  %v1596_v2 = vpop.f32.mrf.mxu0  ;;  %p8127_p13 = pnand %p8126_p12, %p10092_p8 }
 0x374   : > { %v6956_v6 = vshrl.u32 %v6217_v38, 16  ;;  %v3928_v13 = vrot.slane %v3913_v20, %v8881_v62  ;;  %v3935_v8 = vrot.slane %v3921_v9, %v8881_v62  ;;  %v3936_v5 = vcombine.high %v3920_v63, %v8224_v48  ;;  %p8134_p11 = por %p8133_p6, %p8132_p2 }
 0x375   : > { %v6266_v39 = vcombine.low %v6257_v11, %v6265_v35  ;;  %v3943_v56 = vrot.slane %v3920_v63, %v8881_v62  ;;  %v6576_v51 = vrot.slane %v7620_v37, %v8874_v61  ;;  %v7621_v16 = vcombine.high %v3894_v17, %v3901_v34  ;;  %v1632_v63 = vpop.f32.mrf.mxu1  ;;  %p8128_p4 = pneg %p8127_p13 }
 0x376   : > { %v3950_v40 = vrot.slane %v3936_v5, %v8881_v62  ;;  %v6584_v50 = vrot.slane %v6577_v47, %v8874_v61  ;;  %v6610_v15 = vcombine.low %v3928_v13, %v3935_v8  ;;  %v7622_v32 = vcombine.high %v3928_v13, %v3935_v8 }
 0x377   : > { %v6955_v52 = vpack.i.b16 %v6266_v39, %v6217_v38  ;;  %v6957_v45 = vshrl.u32 %v6266_v39, 16  ;;  %v6592_v49 = vrot.slane %v7621_v16, %v8874_v61  ;;  %v6593_v57 = vcombine.low %v6568_v21, %v6576_v51  ;;  %p8135_p1 = pnand %p8134_p11, %p8128_p4 }
 0x378   : > { %v6617_v33 = vrot.slane %v6610_v15, %v8874_v61  ;;  %v6625_v46 = vrot.slane %v7622_v32, %v8874_v61  ;;  %v6626_v30 = vcombine.low %v3943_v56, %v3950_v40  ;;  %v7623_v31 = vcombine.high %v3943_v56, %v3950_v40  ;;  %v9770_v40 = vpop.f32.mrf.mxu1 }
 0x379   : > { %v6958_v25 = vpack.i.b16 %v6957_v45, %v6956_v6  ;;  %v7636_v29 = vcombine.low %v6955_v52, %v6955_v52  ;;  %v7637_v54 = vcombine.high %v6955_v52, %v6955_v52  ;;  %v3413_v42 = vshrl.u32 %v9575_v27, 16 }
 0x37a   : > { %v6601_v18 = vcombine.low %v6584_v50, %v6592_v49  ;;  %v6633_v36 = vrot.slane %v6626_v30, %v8874_v61  ;;  %v6641_v44 = vrot.slane %v7623_v31, %v8874_v61  ;;  %v6642_v43 = vcombine.low %v6617_v33, %v6625_v46 }
 0x37b   : > { %v7652_v1 = vcombine.low %v6958_v25, %v6958_v25  ;;  %v7653_v58 = vcombine.high %v6958_v25, %v6958_v25  ;;  %7097 = vst [vmem:[%s9737_s19] sm:$0xf] %v7636_v29  ;;  %7098 = vst [vmem:[%s9737_s19 + $0x4] sm:$0xf] %v7637_v54  ;;  %v1662_v22 = vpack.c.bf16 %v1588_v7, %v9552_v26  ;;  %v3445_v3 = vshrl.u32 %v9698_v0, 16 }
 0x37c   : > { %v1686_v59 = vpack.c.bf16 %v1628_v12, %v9637_v23  ;;  %v6600_v24 = vrot.slane %v6593_v57, %v8881_v62  ;;  %v6608_v14 = vrot.slane %v6601_v18, %v8881_v62  ;;  %v6650_v28 = vcombine.low %v6633_v36, %v6641_v44  ;;  %v1636_v18 = vpop.f32.mrf.mxu1 }
 0x37d   : > { %7113 = vst [vmem:[%s9737_s19 + $0x40] sm:$0xf] %v7652_v1  ;;  %7114 = vst [vmem:[%s9737_s19 + $0x44] sm:$0xf] %v7653_v58  ;;  %v3411_v55 = vpack.i.b16 %v1662_v22, %v9575_v27  ;;  %v3414_v60 = vshrl.u32 %v1662_v22, 16  ;;  %v6649_v26 = vrot.slane %v6642_v43, %v8881_v62  ;;  %v9752_v7 = vpack.c.bf16 %v1596_v2, %v1592_v53 }
 0x37e   : > { %v3443_v20 = vpack.i.b16 %v1686_v59, %v9698_v0  ;;  %v3446_v4 = vshrl.u32 %v1686_v59, 16  ;;  %v6609_v17 = vcombine.low %v6600_v24, %v6608_v14  ;;  %v6657_v23 = vrot.slane %v6650_v28, %v8881_v62 }
 0x37f   : > { %v3415_v34 = vpack.i.b16 %v3414_v60, %v3413_v42  ;;  %v3563_v19 = vcombine.high %v3411_v55, %v8878_v10  ;;  %v3570_v38 = vrot.slane %v3411_v55, %v8874_v61 }
 0x380   : > { %v9756_v11 = vpack.i.b16 %v3446_v4, %v3445_v3  ;;  %v6658_v27 = vcombine.low %v6649_v26, %v6657_v23  ;;  %v6980_v9 = vshrl.u32 %v6609_v17, 16  ;;  %v3955_v0 = vcombine.high %v3443_v20, %v8878_v10 }
 0x381   : > { %v3962_v35 = vrot.slane %v3443_v20, %v8874_v61  ;;  %v3577_v21 = vrot.slane %v3563_v19, %v8874_v61  ;;  %v3578_v37 = vcombine.high %v3570_v38, %v8224_v48  ;;  %v3585_v47 = vrot.slane %v3570_v38, %v8881_v62  ;;  %v1598_v19 = vpop.f32.mrf.mxu0 }
 0x382   : > { %v3612_v53 = vcombine.high %v3415_v34, %v8878_v10  ;;  %v6979_v6 = vpack.i.b16 %v6658_v27, %v6609_v17  ;;  %v6981_v13 = vshrl.u32 %v6658_v27, 16  ;;  %v3619_v8 = vrot.slane %v3415_v34, %v8874_v61 }
 0x383   : > { %v3969_v5 = vrot.slane %v3955_v0, %v8874_v61  ;;  %v3592_v39 = vrot.slane %v3578_v37, %v8881_v62  ;;  %v3593_v56 = vcombine.high %v3577_v21, %v8224_v48  ;;  %v3600_v51 = vrot.slane %v3577_v21, %v8881_v62 }
 0x384   : > { %v3626_v16 = vrot.slane %v3612_v53, %v8874_v61  ;;  %v6982_v50 = vpack.i.b16 %v6981_v13, %v6980_v9  ;;  %v7644_v15 = vcombine.low %v6979_v6, %v6979_v6  ;;  %v7645_v32 = vcombine.high %v6979_v6, %v6979_v6 }
 0x385   : > { %v3627_v52 = vcombine.high %v3619_v8, %v8224_v48  ;;  %v3607_v45 = vrot.slane %v3593_v56, %v8881_v62  ;;  %v3634_v49 = vrot.slane %v3619_v8, %v8881_v62  ;;  %v6267_v12 = vcombine.low %v3585_v47, %v3592_v39 }
 0x386   : > { %v3642_v57 = vcombine.high %v3626_v16, %v8224_v48  ;;  %v3649_v33 = vrot.slane %v3626_v16, %v8881_v62  ;;  %v7660_v46 = vcombine.low %v6982_v50, %v6982_v50  ;;  %v7661_v30 = vcombine.high %v6982_v50, %v6982_v50  ;;  %7105 = vst [vmem:[%s9737_s19 + $0x20] sm:$0xf] %v7644_v15 }
 0x387   : > { %7106 = vst [vmem:[%s9737_s19 + $0x24] sm:$0xf] %v7645_v32  ;;  %v3641_v31 = vrot.slane %v3627_v52, %v8881_v62  ;;  %v7608_v29 = vcombine.high %v3585_v47, %v3592_v39  ;;  %v6283_v54 = vcombine.low %v3600_v51, %v3607_v45  ;;  %v7609_v42 = vcombine.high %v3600_v51, %v3607_v45 }
 0x388   : > { %v3656_v25 = vrot.slane %v3642_v57, %v8881_v62  ;;  %7121 = vst [vmem:[%s9737_s19 + $0x60] sm:$0xf] %v7660_v46  ;;  %7122 = vst [vmem:[%s9737_s19 + $0x64] sm:$0xf] %v7661_v30  ;;  %v6274_v36 = vrot.slane %v6267_v12, %v8874_v61  ;;  %v3970_v1 = vcombine.high %v3962_v35, %v8224_v48 }
 0x389   : > { %v6316_v44 = vcombine.low %v3634_v49, %v3641_v31  ;;  %v7610_v43 = vcombine.high %v3634_v49, %v3641_v31  ;;  %v6282_v58 = vrot.slane %v7608_v29, %v8874_v61  ;;  %v6290_v22 = vrot.slane %v6283_v54, %v8874_v61 }
 0x38a   : > { %v6298_v59 = vrot.slane %v7609_v42, %v8874_v61  ;;  %v6332_v2 = vcombine.low %v3649_v33, %v3656_v25  ;;  %v7611_v28 = vcombine.high %v3649_v33, %v3656_v25  ;;  %v9790_v3 = vpack.c.bf16 %v1636_v18, %v1632_v63 }
 0x38b   : > { %v6323_v24 = vrot.slane %v6316_v44, %v8874_v61  ;;  %v6331_v14 = vrot.slane %v7610_v43, %v8874_v61  ;;  %v6299_v55 = vcombine.low %v6274_v36, %v6282_v58  ;;  %v3984_v4 = vrot.slane %v3970_v1, %v8881_v62  ;;  %v1638_v43 = vpop.f32.mrf.mxu1 }
 0x38c   : > { %v6307_v60 = vcombine.low %v6290_v22, %v6298_v59  ;;  %v6339_v20 = vrot.slane %v6332_v2, %v8874_v61  ;;  %v6347_v17 = vrot.slane %v7611_v28, %v8874_v61  ;;  %v3977_v23 = vrot.slane %v3962_v35, %v8881_v62 }
 0x38d   : > { %v6348_v26 = vcombine.low %v6323_v24, %v6331_v14  ;;  %v3985_v34 = vcombine.high %v3969_v5, %v8224_v48  ;;  %v6306_v38 = vrot.slane %v6299_v55, %v8881_v62  ;;  %v4004_v63 = vcombine.high %v9756_v11, %v8878_v10 }
 0x38e   : > { %v6314_v27 = vrot.slane %v6307_v60, %v8881_v62  ;;  %v4011_v9 = vrot.slane %v9756_v11, %v8874_v61  ;;  %v6356_v0 = vcombine.low %v6339_v20, %v6347_v17  ;;  %v3992_v21 = vrot.slane %v3969_v5, %v8881_v62  ;;  %v1602_v11 = vpop.f32.mrf.mxu0 }
 0x38f   : > { %v3999_v37 = vrot.slane %v3985_v34, %v8881_v62  ;;  %v6659_v47 = vcombine.low %v3977_v23, %v3984_v4  ;;  %v6355_v53 = vrot.slane %v6348_v26, %v8881_v62  ;;  %v4018_v6 = vrot.slane %v4004_v63, %v8874_v61 }
 0x390   : > { %v6315_v35 = vcombine.low %v6306_v38, %v6314_v27  ;;  %v4019_v13 = vcombine.high %v4011_v9, %v8224_v48  ;;  %v6363_v8 = vrot.slane %v6356_v0, %v8881_v62  ;;  %v7624_v56 = vcombine.high %v3977_v23, %v3984_v4  ;;  %v9818_v54 = vpop.f32.mrf.mxu0 }
 0x391   : > { %v6666_v39 = vrot.slane %v6659_v47, %v8874_v61  ;;  %v6675_v51 = vcombine.low %v3992_v21, %v3999_v37  ;;  %v4026_v5 = vrot.slane %v4011_v9, %v8881_v62  ;;  %v4034_v15 = vcombine.high %v4018_v6, %v8224_v48 }
 0x392   : > { %v6962_v16 = vshrl.u32 %v6315_v35, 16  ;;  %v4033_v50 = vrot.slane %v4019_v13, %v8881_v62  ;;  %v6364_v32 = vcombine.low %v6355_v53, %v6363_v8  ;;  %v4041_v52 = vrot.slane %v4018_v6, %v8881_v62  ;;  %v1606_v17 = vpop.f32.mrf.mxu0  ;;  %v1642_v6 = vpop.f32.mrf.mxu1 }
 0x393   : > { %v6674_v45 = vrot.slane %v7624_v56, %v8874_v61  ;;  %v7625_v49 = vcombine.high %v3992_v21, %v3999_v37  ;;  %v4048_v57 = vrot.slane %v4034_v15, %v8881_v62  ;;  %v6682_v33 = vrot.slane %v6675_v51, %v8874_v61 }
 0x394   : > { %v6708_v46 = vcombine.low %v4026_v5, %v4033_v50  ;;  %v7626_v30 = vcombine.high %v4026_v5, %v4033_v50  ;;  %v6961_v31 = vpack.i.b16 %v6364_v32, %v6315_v35  ;;  %v6963_v12 = vshrl.u32 %v6364_v32, 16 }
 0x395   : > { %v6690_v25 = vrot.slane %v7625_v49, %v8874_v61  ;;  %v6691_v29 = vcombine.low %v6666_v39, %v6674_v45  ;;  %v6724_v36 = vcombine.low %v4041_v52, %v4048_v57  ;;  %v7627_v44 = vcombine.high %v4041_v52, %v4048_v57  ;;  %v9856_v57 = vpop.f32.mrf.mxu1 }
 0x396   : > { %v6715_v42 = vrot.slane %v6708_v46, %v8874_v61  ;;  %v6723_v18 = vrot.slane %v7626_v30, %v8874_v61  ;;  %v6964_v1 = vpack.i.b16 %v6963_v12, %v6962_v16  ;;  %v7638_v58 = vcombine.low %v6961_v31, %v6961_v31 }
 0x397   : > { %v7639_v22 = vcombine.high %v6961_v31, %v6961_v31  ;;  %v3421_v59 = vshrl.u32 %v9752_v7, 16  ;;  %v6699_v2 = vcombine.low %v6682_v33, %v6690_v25  ;;  %v6731_v24 = vrot.slane %v6724_v36, %v8874_v61 }
 0x398   : > { %v6739_v14 = vrot.slane %v7627_v44, %v8874_v61  ;;  %v6740_v28 = vcombine.low %v6715_v42, %v6723_v18  ;;  %v7654_v55 = vcombine.low %v6964_v1, %v6964_v1  ;;  %v7655_v60 = vcombine.high %v6964_v1, %v6964_v1  ;;  %7099 = vst [vmem:[%s9737_s19 + $0x8] sm:$0xf] %v7638_v58 }
 0x399   : > { %7100 = vst [vmem:[%s9737_s19 + $0xc] sm:$0xf] %v7639_v22  ;;  %v1668_v20 = vpack.c.bf16 %v1598_v19, %v9729_v41  ;;  %v1692_v4 = vpack.c.bf16 %v1638_v43, %v9770_v40  ;;  %v6698_v26 = vrot.slane %v6691_v29, %v8881_v62  ;;  %v6706_v23 = vrot.slane %v6699_v2, %v8881_v62  ;;  %v1646_v2 = vpop.f32.mrf.mxu1 }
 0x39a   : > { %v6748_v34 = vcombine.low %v6731_v24, %v6739_v14  ;;  %v3453_v38 = vshrl.u32 %v9790_v3, 16  ;;  %7115 = vst [vmem:[%s9737_s19 + $0x48] sm:$0xf] %v7654_v55  ;;  %7116 = vst [vmem:[%s9737_s19 + $0x4c] sm:$0xf] %v7655_v60  ;;  %v6747_v41 = vrot.slane %v6740_v28, %v8881_v62  ;;  %v9838_v19 = vpack.c.bf16 %v1606_v17, %v1602_v11 }
 0x39b   : > { %v3419_v27 = vpack.i.b16 %v1668_v20, %v9752_v7  ;;  %v3422_v63 = vshrl.u32 %v1668_v20, 16  ;;  %v3451_v9 = vpack.i.b16 %v1692_v4, %v9790_v3  ;;  %v3454_v0 = vshrl.u32 %v1692_v4, 16 }
 0x39c   : > { %v6707_v21 = vcombine.low %v6698_v26, %v6706_v23  ;;  %v6755_v40 = vrot.slane %v6748_v34, %v8881_v62 }
 0x39d   : > { %v3423_v37 = vpack.i.b16 %v3422_v63, %v3421_v59  ;;  %v3661_v47 = vcombine.high %v3419_v27, %v8878_v10  ;;  %v3668_v35 = vrot.slane %v3419_v27, %v8874_v61  ;;  %v9842_v53 = vpack.i.b16 %v3454_v0, %v3453_v38 }
 0x39e   : > { %v6756_v7 = vcombine.low %v6747_v41, %v6755_v40  ;;  %v6986_v13 = vshrl.u32 %v6707_v21, 16  ;;  %v4053_v3 = vcombine.high %v3451_v9, %v8878_v10  ;;  %v4060_v8 = vrot.slane %v3451_v9, %v8874_v61 }
 0x39f   : > { %v3675_v39 = vrot.slane %v3661_v47, %v8874_v61  ;;  %v3676_v56 = vcombine.high %v3668_v35, %v8224_v48  ;;  %v3683_v51 = vrot.slane %v3668_v35, %v8881_v62  ;;  %v3710_v11 = vcombine.high %v3423_v37, %v8878_v10 }
 0x3a0   : > { %v6985_v16 = vpack.i.b16 %v6756_v7, %v6707_v21  ;;  %v6987_v5 = vshrl.u32 %v6756_v7, 16  ;;  %v3717_v50 = vrot.slane %v3423_v37, %v8874_v61  ;;  %v4067_v15 = vrot.slane %v4053_v3, %v8874_v61 }
 0x3a1   : > { %v3690_v32 = vrot.slane %v3676_v56, %v8881_v62  ;;  %v3691_v52 = vcombine.high %v3675_v39, %v8224_v48  ;;  %v3698_v45 = vrot.slane %v3675_v39, %v8881_v62  ;;  %v3724_v49 = vrot.slane %v3710_v11, %v8874_v61 }
 0x3a2   : > { %v6988_v33 = vpack.i.b16 %v6987_v5, %v6986_v13  ;;  %v7646_v46 = vcombine.low %v6985_v16, %v6985_v16  ;;  %v7647_v30 = vcombine.high %v6985_v16, %v6985_v16  ;;  %v3725_v31 = vcombine.high %v3717_v50, %v8224_v48 }
 0x3a3   : > { %v3705_v12 = vrot.slane %v3691_v52, %v8881_v62  ;;  %v3732_v25 = vrot.slane %v3717_v50, %v8881_v62  ;;  %v3740_v29 = vcombine.high %v3724_v49, %v8224_v48  ;;  %v3747_v42 = vrot.slane %v3724_v49, %v8881_v62 }
 0x3a4   : > { %v7662_v18 = vcombine.low %v6988_v33, %v6988_v33  ;;  %v7663_v36 = vcombine.high %v6988_v33, %v6988_v33  ;;  %7107 = vst [vmem:[%s9737_s19 + $0x28] sm:$0xf] %v7646_v46  ;;  %7108 = vst [vmem:[%s9737_s19 + $0x2c] sm:$0xf] %v7647_v30  ;;  %v3739_v44 = vrot.slane %v3725_v31, %v8881_v62 }
 0x3a5   : > { %v6365_v43 = vcombine.low %v3683_v51, %v3690_v32  ;;  %v3754_v1 = vrot.slane %v3740_v29, %v8881_v62  ;;  %v7612_v58 = vcombine.high %v3683_v51, %v3690_v32  ;;  %v6381_v22 = vcombine.low %v3698_v45, %v3705_v12 }
 0x3a6   : > { %v7613_v59 = vcombine.high %v3698_v45, %v3705_v12  ;;  %7123 = vst [vmem:[%s9737_s19 + $0x68] sm:$0xf] %v7662_v18  ;;  %7124 = vst [vmem:[%s9737_s19 + $0x6c] sm:$0xf] %v7663_v36  ;;  %v6414_v14 = vcombine.low %v3732_v25, %v3739_v44  ;;  %v7614_v28 = vcombine.high %v3732_v25, %v3739_v44 }
 0x3a7   : > { %v6372_v24 = vrot.slane %v6365_v43, %v8874_v61  ;;  %v4068_v55 = vcombine.high %v4060_v8, %v8224_v48  ;;  %v6380_v60 = vrot.slane %v7612_v58, %v8874_v61  ;;  %v6388_v20 = vrot.slane %v6381_v22, %v8874_v61 }
 0x3a8   : > { %v6396_v4 = vrot.slane %v7613_v59, %v8874_v61  ;;  %v6430_v17 = vcombine.low %v3747_v42, %v3754_v1  ;;  %v6421_v26 = vrot.slane %v6414_v14, %v8874_v61  ;;  %v6429_v23 = vrot.slane %v7614_v28, %v8874_v61 }
 0x3a9   : > { %v7615_v34 = vcombine.high %v3747_v42, %v3754_v1  ;;  %v9876_v38 = vpack.c.bf16 %v1646_v2, %v1642_v6  ;;  %v6397_v27 = vcombine.low %v6372_v24, %v6380_v60  ;;  %v4082_v0 = vrot.slane %v4068_v55, %v8881_v62  ;;  %v1608_v2 = vpop.f32.mrf.mxu0  ;;  %v1648_v24 = vpop.f32.mrf.mxu1 }
 0x3aa   : > { %v6405_v63 = vcombine.low %v6388_v20, %v6396_v4  ;;  %v6437_v9 = vrot.slane %v6430_v17, %v8874_v61  ;;  %v6446_v41 = vcombine.low %v6421_v26, %v6429_v23  ;;  %v4075_v40 = vrot.slane %v4060_v8, %v8881_v62 }
 0x3ab   : > { %v6445_v21 = vrot.slane %v7615_v34, %v8874_v61  ;;  %v4083_v37 = vcombine.high %v4067_v15, %v8224_v48  ;;  %v6404_v47 = vrot.slane %v6397_v27, %v8881_v62  ;;  %v4102_v6 = vcombine.high %v9842_v53, %v8878_v10 }
 0x3ac   : > { %v6412_v35 = vrot.slane %v6405_v63, %v8881_v62  ;;  %v4109_v7 = vrot.slane %v9842_v53, %v8874_v61  ;;  %v4090_v3 = vrot.slane %v4067_v15, %v8881_v62  ;;  %v6757_v56 = vcombine.low %v4075_v40, %v4082_v0 }
 0x3ad   : > { %v6454_v13 = vcombine.low %v6437_v9, %v6445_v21  ;;  %v4097_v39 = vrot.slane %v4083_v37, %v8881_v62  ;;  %v6453_v8 = vrot.slane %v6446_v41, %v8881_v62  ;;  %v4116_v11 = vrot.slane %v4102_v6, %v8874_v61 }
 0x3ae   : > { %v6413_v51 = vcombine.low %v6404_v47, %v6412_v35  ;;  %v4117_v16 = vcombine.high %v4109_v7, %v8224_v48  ;;  %v6764_v50 = vrot.slane %v6757_v56, %v8874_v61  ;;  %v7628_v32 = vcombine.high %v4075_v40, %v4082_v0 }
 0x3af   : > { %v6461_v5 = vrot.slane %v6454_v13, %v8881_v62  ;;  %v6773_v52 = vcombine.low %v4090_v3, %v4097_v39  ;;  %v4124_v45 = vrot.slane %v4109_v7, %v8881_v62  ;;  %v4132_v49 = vcombine.high %v4116_v11, %v8224_v48 }
 0x3b0   : > { %v6968_v53 = vshrl.u32 %v6413_v51, 16  ;;  %v4131_v15 = vrot.slane %v4117_v16, %v8881_v62  ;;  %v4139_v46 = vrot.slane %v4116_v11, %v8881_v62  ;;  %v6772_v30 = vrot.slane %v7628_v32, %v8874_v61 }
 0x3b1   : > { %v6462_v33 = vcombine.low %v6453_v8, %v6461_v5  ;;  %v7629_v31 = vcombine.high %v4090_v3, %v4097_v39  ;;  %v4146_v12 = vrot.slane %v4132_v49, %v8881_v62  ;;  %v6780_v25 = vrot.slane %v6773_v52, %v8874_v61 }
 0x3b2   : > { %v6806_v29 = vcombine.low %v4124_v45, %v4131_v15  ;;  %v7630_v42 = vcombine.high %v4124_v45, %v4131_v15  ;;  %v6789_v43 = vcombine.low %v6764_v50, %v6772_v30  ;;  %v3429_v60 = vshrl.u32 %v9838_v19, 16 }
 0x3b3   : > { %v6967_v18 = vpack.i.b16 %v6462_v33, %v6413_v51  ;;  %v6969_v36 = vshrl.u32 %v6462_v33, 16  ;;  %v6788_v44 = vrot.slane %v7629_v31, %v8874_v61  ;;  %v6822_v22 = vcombine.low %v4139_v46, %v4146_v12 }
 0x3b4   : > { %v6813_v1 = vrot.slane %v6806_v29, %v8874_v61  ;;  %v6821_v58 = vrot.slane %v7630_v42, %v8874_v61  ;;  %v7631_v59 = vcombine.high %v4139_v46, %v4146_v12  ;;  %v1674_v27 = vpack.c.bf16 %v1608_v2, %v9818_v54 }
 0x3b5   : > { %v6970_v14 = vpack.i.b16 %v6969_v36, %v6968_v53  ;;  %v7640_v28 = vcombine.low %v6967_v18, %v6967_v18  ;;  %v7641_v55 = vcombine.high %v6967_v18, %v6967_v18  ;;  %v6797_v20 = vcombine.low %v6780_v25, %v6788_v44 }
 0x3b6   : > { %v6829_v4 = vrot.slane %v6822_v22, %v8874_v61  ;;  %v6837_v17 = vrot.slane %v7631_v59, %v8874_v61  ;;  %v6838_v26 = vcombine.low %v6813_v1, %v6821_v58  ;;  %v1698_v63 = vpack.c.bf16 %v1648_v24, %v9856_v57 }
 0x3b7   : > { %v7656_v23 = vcombine.low %v6970_v14, %v6970_v14  ;;  %v7657_v34 = vcombine.high %v6970_v14, %v6970_v14  ;;  %7101 = vst [vmem:[%s9737_s19 + $0x10] sm:$0xf] %v7640_v28  ;;  %7102 = vst [vmem:[%s9737_s19 + $0x14] sm:$0xf] %v7641_v55  ;;  %v6796_v9 = vrot.slane %v6789_v43, %v8881_v62  ;;  %v3461_v41 = vshrl.u32 %v9876_v38, 16 }
 0x3b8   : > { %v6804_v0 = vrot.slane %v6797_v20, %v8881_v62  ;;  %v6846_v21 = vcombine.low %v6829_v4, %v6837_v17  ;;  %v3427_v40 = vpack.i.b16 %v1674_v27, %v9838_v19  ;;  %v3430_v37 = vshrl.u32 %v1674_v27, 16 }
 0x3b9   : > { %7117 = vst [vmem:[%s9737_s19 + $0x50] sm:$0xf] %v7656_v23  ;;  %7118 = vst [vmem:[%s9737_s19 + $0x54] sm:$0xf] %v7657_v34  ;;  %v3459_v47 = vpack.i.b16 %v1698_v63, %v9876_v38  ;;  %v3462_v35 = vshrl.u32 %v1698_v63, 16  ;;  %v6845_v54 = vrot.slane %v6838_v26, %v8881_v62 }
 0x3ba   : > { %v6805_v6 = vcombine.low %v6796_v9, %v6804_v0  ;;  %v6853_v57 = vrot.slane %v6846_v21, %v8881_v62  ;;  %v3431_v7 = vpack.i.b16 %v3430_v37, %v3429_v60  ;;  %v3759_v13 = vcombine.high %v3427_v40, %v8878_v10 }
 0x3bb   : > { %v3766_v3 = vrot.slane %v3427_v40, %v8874_v61  ;;  %v9924_v39 = vpack.i.b16 %v3462_v35, %v3461_v41  ;;  %v4151_v19 = vcombine.high %v3459_v47, %v8878_v10  ;;  %v4158_v8 = vrot.slane %v3459_v47, %v8874_v61 }
 0x3bc   : > { %v6854_v56 = vcombine.low %v6845_v54, %v6853_v57  ;;  %v6992_v51 = vshrl.u32 %v6805_v6, 16  ;;  %v3773_v38 = vrot.slane %v3759_v13, %v8874_v61  ;;  %v3808_v5 = vcombine.high %v3431_v7, %v8878_v10 }
 0x3bd   : > { %v3774_v11 = vcombine.high %v3766_v3, %v8224_v48  ;;  %v3781_v16 = vrot.slane %v3766_v3, %v8881_v62  ;;  %v3815_v52 = vrot.slane %v3431_v7, %v8874_v61  ;;  %v4165_v53 = vrot.slane %v4151_v19, %v8874_v61 }
 0x3be   : > { %v6991_v50 = vpack.i.b16 %v6854_v56, %v6805_v6  ;;  %v6993_v32 = vshrl.u32 %v6854_v56, 16  ;;  %v3789_v15 = vcombine.high %v3773_v38, %v8224_v48  ;;  %v3796_v49 = vrot.slane %v3773_v38, %v8881_v62 }
 0x3bf   : > { %v3788_v45 = vrot.slane %v3774_v11, %v8881_v62  ;;  %v3822_v33 = vrot.slane %v3808_v5, %v8874_v61  ;;  %v3823_v12 = vcombine.high %v3815_v52, %v8224_v48  ;;  %v3830_v29 = vrot.slane %v3815_v52, %v8881_v62 }
 0x3c0   : > { %v6994_v46 = vpack.i.b16 %v6993_v32, %v6992_v51  ;;  %v7648_v30 = vcombine.low %v6991_v50, %v6991_v50  ;;  %v7649_v31 = vcombine.high %v6991_v50, %v6991_v50  ;;  %v3803_v25 = vrot.slane %v3789_v15, %v8881_v62 }
 0x3c1   : > { %v3838_v42 = vcombine.high %v3822_v33, %v8224_v48  ;;  %v3845_v18 = vrot.slane %v3822_v33, %v8881_v62  ;;  %v3837_v43 = vrot.slane %v3823_v12, %v8881_v62  ;;  %v6463_v1 = vcombine.low %v3781_v16, %v3788_v45 }
 0x3c2   : > { %v7664_v36 = vcombine.low %v6994_v46, %v6994_v46  ;;  %v7665_v44 = vcombine.high %v6994_v46, %v6994_v46  ;;  %7109 = vst [vmem:[%s9737_s19 + $0x30] sm:$0xf] %v7648_v30  ;;  %7110 = vst [vmem:[%s9737_s19 + $0x34] sm:$0xf] %v7649_v31  ;;  %v7616_v22 = vcombine.high %v3781_v16, %v3788_v45 }
 0x3c3   : > { %v3852_v58 = vrot.slane %v3838_v42, %v8881_v62  ;;  %v6479_v59 = vcombine.low %v3796_v49, %v3803_v25  ;;  %v7617_v2 = vcombine.high %v3796_v49, %v3803_v25  ;;  %v6470_v24 = vrot.slane %v6463_v1, %v8874_v61 }
 0x3c4   : > { %7125 = vst [vmem:[%s9737_s19 + $0x70] sm:$0xf] %v7664_v36  ;;  %7126 = vst [vmem:[%s9737_s19 + $0x74] sm:$0xf] %v7665_v44  ;;  %v6512_v14 = vcombine.low %v3830_v29, %v3837_v43  ;;  %v7618_v28 = vcombine.high %v3830_v29, %v3837_v43  ;;  %v4166_v55 = vcombine.high %v4158_v8, %v8224_v48 }
 0x3c5   : > { %v6478_v60 = vrot.slane %v7616_v22, %v8874_v61  ;;  %v6486_v20 = vrot.slane %v6479_v59, %v8874_v61  ;;  %v6494_v4 = vrot.slane %v7617_v2, %v8874_v61  ;;  %v6528_v17 = vcombine.low %v3845_v18, %v3852_v58 }
 0x3c6   : > { %v6519_v26 = vrot.slane %v6512_v14, %v8874_v61  ;;  %v6527_v23 = vrot.slane %v7618_v28, %v8874_v61  ;;  %v7619_v34 = vcombine.high %v3845_v18, %v3852_v58  ;;  %v4180_v0 = vrot.slane %v4166_v55, %v8881_v62 }
 0x3c7   : > { %v6495_v27 = vcombine.low %v6470_v24, %v6478_v60  ;;  %v6503_v63 = vcombine.low %v6486_v20, %v6494_v4  ;;  %v6535_v9 = vrot.slane %v6528_v17, %v8874_v61  ;;  %v4173_v40 = vrot.slane %v4158_v8, %v8881_v62 }
 0x3c8   : > { %v6543_v21 = vrot.slane %v7619_v34, %v8874_v61  ;;  %v6544_v41 = vcombine.low %v6519_v26, %v6527_v23  ;;  %v4181_v37 = vcombine.high %v4165_v53, %v8224_v48  ;;  %v4200_v6 = vcombine.high %v9924_v39, %v8878_v10 }
 0x3c9   : > { %v6502_v47 = vrot.slane %v6495_v27, %v8881_v62  ;;  %v6510_v35 = vrot.slane %v6503_v63, %v8881_v62  ;;  %v4207_v54 = vrot.slane %v9924_v39, %v8874_v61  ;;  %v4188_v7 = vrot.slane %v4165_v53, %v8881_v62 }
 0x3ca   : > { %v6552_v57 = vcombine.low %v6535_v9, %v6543_v21  ;;  %v4195_v13 = vrot.slane %v4181_v37, %v8881_v62  ;;  %v6855_v3 = vcombine.low %v4173_v40, %v4180_v0  ;;  %v6551_v51 = vrot.slane %v6544_v41, %v8881_v62 }
 0x3cb   : > { %v6511_v56 = vcombine.low %v6502_v47, %v6510_v35  ;;  %v4214_v19 = vrot.slane %v4200_v6, %v8874_v61  ;;  %v4215_v8 = vcombine.high %v4207_v54, %v8224_v48  ;;  %v7632_v11 = vcombine.high %v4173_v40, %v4180_v0 }
 0x3cc   : > { %v6559_v38 = vrot.slane %v6552_v57, %v8881_v62  ;;  %v6862_v10 = vrot.slane %v6855_v3, %v8874_v61  ;;  %v6871_v16 = vcombine.low %v4188_v7, %v4195_v13  ;;  %v4222_v5 = vrot.slane %v4207_v54, %v8881_v62 }
 0x3cd   : > { %v6974_v39 = vshrl.u32 %v6511_v56, 16  ;;  %v4229_v50 = vrot.slane %v4215_v8, %v8881_v62  ;;  %v4230_v32 = vcombine.high %v4214_v19, %v8224_v48  ;;  %v4237_v53 = vrot.slane %v4214_v19, %v8881_v62 }
 0x3ce   : > { %v6560_v52 = vcombine.low %v6551_v51, %v6559_v38  ;;  %v6870_v45 = vrot.slane %v7632_v11, %v8874_v61  ;;  %v7633_v15 = vcombine.high %v4188_v7, %v4195_v13  ;;  %v6878_v33 = vrot.slane %v6871_v16, %v8874_v61 }
 0x3cf   : > { %v4244_v49 = vrot.slane %v4230_v32, %v8881_v62  ;;  %v6904_v46 = vcombine.low %v4222_v5, %v4229_v50  ;;  %v7634_v30 = vcombine.high %v4222_v5, %v4229_v50 }
 0x3d0   : > { %v6973_v31 = vpack.i.b16 %v6560_v52, %v6511_v56  ;;  %v6975_v12 = vshrl.u32 %v6560_v52, 16  ;;  %v6886_v25 = vrot.slane %v7633_v15, %v8874_v61  ;;  %v6887_v29 = vcombine.low %v6862_v10, %v6870_v45 }
 0x3d1   : > { %v6911_v48 = vrot.slane %v6904_v46, %v8874_v61  ;;  %v6919_v42 = vrot.slane %v7634_v30, %v8874_v61  ;;  %v6920_v18 = vcombine.low %v4237_v53, %v4244_v49  ;;  %v7635_v36 = vcombine.high %v4237_v53, %v4244_v49 }
 0x3d2   : > { %v6976_v44 = vpack.i.b16 %v6975_v12, %v6974_v39  ;;  %v7642_v43 = vcombine.low %v6973_v31, %v6973_v31  ;;  %v7643_v1 = vcombine.high %v6973_v31, %v6973_v31  ;;  %v6895_v58 = vcombine.low %v6878_v33, %v6886_v25 }
 0x3d3   : > { %v6927_v22 = vrot.slane %v6920_v18, %v8874_v61  ;;  %v6935_v59 = vrot.slane %v7635_v36, %v8874_v61  ;;  %v6936_v2 = vcombine.low %v6911_v48, %v6919_v42  ;;  %v6894_v28 = vrot.slane %v6887_v29, %v8881_v62 }
 0x3d4   : > { %v7658_v24 = vcombine.low %v6976_v44, %v6976_v44  ;;  %v7659_v14 = vcombine.high %v6976_v44, %v6976_v44  ;;  %7103 = vst [vmem:[%s9737_s19 + $0x18] sm:$0xf] %v7642_v43  ;;  %7104 = vst [vmem:[%s9737_s19 + $0x1c] sm:$0xf] %v7643_v1  ;;  %v6902_v55 = vrot.slane %v6895_v58, %v8881_v62 }
 0x3d5   : > { %v6944_v60 = vcombine.low %v6927_v22, %v6935_v59  ;;  %v6943_v4 = vrot.slane %v6936_v2, %v8881_v62 }
 0x3d6   : > { %7119 = vst [vmem:[%s9737_s19 + $0x58] sm:$0xf] %v7658_v24  ;;  %7120 = vst [vmem:[%s9737_s19 + $0x5c] sm:$0xf] %v7659_v14  ;;  %v6903_v20 = vcombine.low %v6894_v28, %v6902_v55 }
 0x3d7   : > { %v6951_v61 = vrot.slane %v6944_v60, %v8881_v62 }
 0x3d8   : > { %v6998_v23 = vshrl.u32 %v6903_v20, 16 }
 0x3d9   : > { %v6952_v17 = vcombine.low %v6943_v4, %v6951_v61 }
 0x3db   : > { %v6997_v26 = vpack.i.b16 %v6952_v17, %v6903_v20  ;;  %v6999_v34 = vshrl.u32 %v6952_v17, 16 }
 0x3dd   : > { %v7000_v27 = vpack.i.b16 %v6999_v34, %v6998_v23  ;;  %v7650_v63 = vcombine.low %v6997_v26, %v6997_v26  ;;  %v7651_v9 = vcombine.high %v6997_v26, %v6997_v26 }
 0x3df   : > { %v7666_v0 = vcombine.low %v7000_v27, %v7000_v27  ;;  %v7667_v21 = vcombine.high %v7000_v27, %v7000_v27  ;;  %7111 = vst [vmem:[%s9737_s19 + $0x38] sm:$0xf] %v7650_v63  ;;  %7112 = vst [vmem:[%s9737_s19 + $0x3c] sm:$0xf] %v7651_v9 }
 0x3e1   : > { %7127 = vst [vmem:[%s9737_s19 + $0x78] sm:$0xf] %v7666_v0  ;;  %7128 = vst [vmem:[%s9737_s19 + $0x7c] sm:$0xf] %v7667_v21 }
 0x3e2   : > { %8138 = shalt.err (!%p8135_p1)
}
 0x3e3   : > { %s8139_s13 = scalar_lea.hbm %s10001_s12, 2048  ;;  %s8143_s29 = scalar_lea.hbm %s10062_s6, 4096 }
 0x3e4   : > { %p8140_p0 = scmp.ne.s32.totalorder %s10001_s12, %s8139_s13  ;;  %p8144_p3 = scmp.lt.s32.totalorder %s10001_s12, %s10062_s6 }
 0x3e5   : > { %p8145_p7 = scmp.lt.s32.totalorder %s8143_s29, %s8139_s13 }
 0x3e6   : > { %p8141_p10 = pnand %p8140_p0, %p10092_p8 }
 0x3e7   : > { %p8146_p9 = por %p8145_p7, %p8144_p3 }
 0x3e8   : > { %p8142_p5 = pneg %p8141_p10 }
 0x3ea   : > { %p8147_p12 = pnand %p8146_p9, %p8142_p5 }
 0x3ec   : > { %8150 = shalt.err (!%p8147_p12)
}
 0x3ed   : > { %7727 = dma.vmem_to_hbm [thread:$0]  (%p10092_p8), %s10003_s7, 2048, %s10001_s12, %s9669_s14, %s8226_s15, %s8226_s15, %s8227_s1  }
 0x3ee PF: > { %s10093_s26 = sld [smem:[#allocation16_spill]] }
 0x3ef   : > { %s10094_s19 = sld [smem:[#allocation18_spill]] }
 0x3f0   : > { %s10095_s28 = sld [smem:[#allocation17_spill]] }
 0x3f4   : > { %s7206_s11 = sand.u32 1, %s10093_s26  }
 0x3f5   : > { %p10096_p13 = scmp.ne.s32.totalorder %s10094_s19, 0  ;;  %s7207_s20 = scalar_lea.sflag [#allocation4], %s7206_s11 }
 0x3f6   : > { %p10097_p4 = scmp.ge.s32.totalorder %s10095_s28, 2 }
 0x3f8   : > { %p7743_p2 = pnand %p10097_p4, %p10096_p13 }
 0x3fa   : > { %p7744_p6 = pneg %p7743_p2 }
 0x3fc   : > { %8184 = dma.done.wait (%p7744_p6), %s7207_s20, 2048  }
 0x3fd   : > { %8186 = vsyncadd (%p7744_p6), %s7207_s20, 4294965248  ;;  %s10098_s8 = sadd.s32 4294967294, %s10095_s28  }
 0x3fe   : > { %s7215_s10 = sand.u32 1, %s10098_s8  }
 0x3ff   : > { %s7216_s16 = scalar_lea.sflag [#allocation10], %s7215_s10 }
 0x400   : > { %8188 = dma.done.wait (%p7744_p6), %s7216_s16, 4096  }
 0x401   : > { %8190 = vsyncadd (%p7744_p6), %s7216_s16, 4294963200  ;;  %s27_s26 = sadd.s32 1, %s10095_s28   ;;  %s10099_s21 = smov %s8197_s22 }
 0x402   : > { %p24_p8 = scmp.ge.s32.totalorder %s27_s26, 4   ;;  %s10100_s22 = smov %s8201_s23 }
 0x403   : > { %s10101_s23 = smov %s8390_s17  ;;  %s10102_s24 = smov %s8209_s25 }
 0x404   : > { %s10103_s25 = smov %s10105_s18  ;;  %26 = sbr.rel (!%p24_p8) target bundleno = 11 (0xb), region = 121 }
 0x409   :  { %7230 = vsyncpa [#allocation3], 1 }
 0x40a   :  { %7232 = vsyncpa [#allocation3 + $0x1], 1 }
 0x40b   :  { %7233 = vsyncpa [#allocation6], 1 }
 0x40c   :  { %7234 = vsyncpa [#allocation4], 1 }
 0x40d   :  { %7236 = vsyncpa [#allocation4 + $0x1], 1 }
 0x40e   :  { %7237 = vsyncpa [#allocation10], 1 }
 0x40f   :  { %7239 = vsyncpa [#allocation10 + $0x1], 1 }

</bundles_post_ra>
